<compile_context>
chip_gen: v5e
topology: v5e:2x2
jax: 0.10.0
libtpu: 0.0.40
codegen_flags: <defaults>
</compile_context>

<pallas_src>
import functools

import jax
import jax.numpy as jnp
import numpy as np
from jax.experimental import pallas as pl
from jax.experimental.pallas import tpu as pltpu


def _resnet_block_kernel(x_ref, w1_ref, w2_ref, o_ref, *, H, W):
    HW = H * W
    C = x_ref.shape[-1]
    eps = 1e-5

    # Column-boundary masks for the reflected column taps (hoisted and reused by
    # both convs so the broadcasts are emitted once).
    col = jax.lax.broadcasted_iota(jnp.int32, (HW, 1), 0) % W          # j index
    col_first = jnp.broadcast_to(col == 0, (HW, C))
    col_last = jnp.broadcast_to(col == (W - 1), (HW, C))

    def conv3x3(t32, w_ref):
        # t32: (HW, C) f32 activation. Returns (HW, C) f32 conv output (no bias:
        # it is exactly cancelled by the following InstanceNorm(affine=False)).
        #
        # Column taps (reflect at left/right): +-1 sublane rotations on the XLU
        # (32-bit rolls). Roll wrap-around rows only occur where the boundary
        # select picks the other operand, so they never leak into the result.
        cm = pltpu.roll(t32, shift=1, axis=0)        # t32[k-1]
        cp = pltpu.roll(t32, shift=HW - 1, axis=0)   # t32[k+1]  (roll by -1)
        tl = jnp.where(col_first, cp, cm).astype(jnp.bfloat16)   # x[i, refl(j-1)]
        tc = t32.astype(jnp.bfloat16)                            # x[i, j]
        tr = jnp.where(col_last, cm, cp).astype(jnp.bfloat16)    # x[i, refl(j+1)]

        def rows(v):
            # (HW, C) bf16 -> (HW, 3C): [row-1, row, row+1] taps with top/bottom
            # reflection. Offsets are multiples of W rows, which is sublane-tile
            # aligned for bf16 when W % 16 == 0 (true here); for other W these
            # row taps should also be routed through pltpu.roll.
            up = jnp.concatenate([v[W:2 * W], v[:HW - W]], axis=0)       # refl(i-1)
            down = jnp.concatenate([v[W:], v[HW - 2 * W:HW - W]], axis=0)  # refl(i+1)
            return jnp.concatenate([up, v, down], axis=-1)               # kh = 0,1,2

        # Three accumulated K = 3C dots; the (HW, 9C) patch matrix is never built.
        y = jnp.dot(rows(tl), w_ref[0], preferred_element_type=jnp.float32)
        y += jnp.dot(rows(tc), w_ref[1], preferred_element_type=jnp.float32)
        y += jnp.dot(rows(tr), w_ref[2], preferred_element_type=jnp.float32)
        return y

    def instance_norm(t):
        # One-pass stats: biased variance via E[x^2] - E[x]^2, f32, no affine.
        inv_n = 1.0 / HW
        mean = jnp.sum(t, axis=0, keepdims=True) * inv_n
        mean_sq = jnp.sum(t * t, axis=0, keepdims=True) * inv_n
        var = mean_sq - mean * mean
        return (t - mean) * jax.lax.rsqrt(var + eps)

    h = conv3x3(x_ref[0].astype(jnp.float32), w1_ref)
    h = jnp.maximum(instance_norm(h), 0.0)                              # ReLU
    h = conv3x3(h, w2_ref)
    h = instance_norm(h)
    o_ref[0] = (x_ref[0].astype(jnp.float32) + h).astype(o_ref.dtype)   # residual


def _pick_vmem_limit_bytes():
    # Raise the scoped-VMEM cap above the small defaults where the part is known;
    # leave the platform default otherwise.
    kind = jax.devices()[0].device_kind.lower()
    if ("v5 lite" in kind) or ("v5e" in kind) or ("v6" in kind):
        return 96 * 1024 * 1024      # 128 MiB physical
    if "v7" in kind:
        return 48 * 1024 * 1024      # 64 MiB physical
    return None


def resnet_block_pallas(x_nchw, w1, b1, w2, b2):
    """x_nchw: (N, C, H, W). w*: (Cout, Cin, 3, 3) PyTorch layout. b*: (C,).

    b1/b2 are accepted for API parity but unused: a constant per-channel bias is
    exactly cancelled by the InstanceNorm(affine=False) that follows each conv.
    """
    del b1, b2
    N, C, H, W = x_nchw.shape
    assert H >= 2 and W >= 2, "reflection padding needs H, W >= 2"
    HW = H * W

    # Layout glue (plain JAX): NCHW -> (N, H*W, C); weights (Cout, Cin, kh, kw)
    # -> (kw, kh, Cin, Cout) -> (3, 3C, C) so that w[kw][kh*C + ci, co] matches
    # the kernel's [up, v, down] lane-concat order; pre-cast to bf16 for the MXU.
    x = jnp.transpose(x_nchw, (0, 2, 3, 1)).reshape(N, HW, C)
    wm1 = jnp.transpose(w1, (3, 2, 1, 0)).reshape(3, 3 * C, C).astype(jnp.bfloat16)
    wm2 = jnp.transpose(w2, (3, 2, 1, 0)).reshape(3, 3 * C, C).astype(jnp.bfloat16)

    kernel = functools.partial(_resnet_block_kernel, H=H, W=W)

    compiler_kwargs = dict(dimension_semantics=("parallel",))
    vmem_limit = _pick_vmem_limit_bytes()
    if vmem_limit is not None:
        compiler_kwargs["vmem_limit_bytes"] = vmem_limit

    out = pl.pallas_call(
        kernel,
        out_shape=jax.ShapeDtypeStruct((N, HW, C), x.dtype),
        grid_spec=pltpu.PrefetchScalarGridSpec(
            num_scalar_prefetch=0,
            grid=(N,),
            in_specs=[
                pl.BlockSpec((1, HW, C), lambda n: (n, 0, 0)),
                # Constant-index blocks: the pipeline fetches each weight once and
                # keeps it resident across grid steps (no per-step re-DMA).
                pl.BlockSpec((3, 3 * C, C), lambda n: (0, 0, 0)),
                pl.BlockSpec((3, 3 * C, C), lambda n: (0, 0, 0)),
            ],
            out_specs=pl.BlockSpec((1, HW, C), lambda n: (n, 0, 0)),
        ),
        compiler_params=pltpu.CompilerParams(**compiler_kwargs),
    )(x, wm1, wm2)

    return jnp.transpose(out.reshape(N, H, W, C), (0, 3, 1, 2))       # back to NCHW


# ----------------------- pure-JAX reference (for checking) -----------------------
def _reference(x_nchw, w1, b1, w2, b2):
    def conv3x3_reflect(x, w, b):
        xp = jnp.pad(x, ((0, 0), (0, 0), (1, 1), (1, 1)), mode="reflect")
        y = jax.lax.conv_general_dilated(
            xp, w, window_strides=(1, 1), padding="VALID",
            dimension_numbers=("NCHW", "OIHW", "NCHW"))
        return y + b[None, :, None, None]

    def inorm(x, eps=1e-5):
        m = jnp.mean(x, axis=(2, 3), keepdims=True)
        v = jnp.mean((x - m) ** 2, axis=(2, 3), keepdims=True)
        return (x - m) * jax.lax.rsqrt(v + eps)

    h = jnp.maximum(inorm(conv3x3_reflect(x_nchw, w1, b1)), 0.0)
    h = inorm(conv3x3_reflect(h, w2, b2))
    return x_nchw + h


if __name__ == "__main__":
    # C=128 keeps the channel (lane) axis fully dense and every lane-dim concat
    # aligned; W=16 keeps the bf16 row-tap concats sublane-tile aligned.
    N, C, H, W = 2, 128, 16, 16
    key = jax.random.PRNGKey(0)
    kx, kw1, kb1, kw2, kb2 = jax.random.split(key, 5)

    x = jax.random.normal(kx, (N, C, H, W), dtype=jnp.float32)
    fan_in = C * 3 * 3
    bound = 1.0 / np.sqrt(fan_in)
    w1 = jax.random.uniform(kw1, (C, C, 3, 3), jnp.float32, -bound, bound)
    b1 = jax.random.uniform(kb1, (C,), jnp.float32, -bound, bound)
    w2 = jax.random.uniform(kw2, (C, C, 3, 3), jnp.float32, -bound, bound)
    b2 = jax.random.uniform(kb2, (C,), jnp.float32, -bound, bound)

    out = jax.block_until_ready(resnet_block_pallas(x, w1, b1, w2, b2))
    ref = jax.block_until_ready(_reference(x, w1, b1, w2, b2))

    assert out.shape == (N, C, H, W)
    # Tolerance is loosened vs. a pure-f32 reference because the MXU operands
    # (patch taps / weights) are bf16; accumulation and normalization are f32.
    np.testing.assert_allclose(np.asarray(out), np.asarray(ref),
                               rtol=3e-2, atol=3e-2)
    print("KERNEL_OK")
</pallas_src>

<mosaic_0001>
module attributes {stable_mosaic.version = 11 : i64} {
  func.func @_resnet_block_kernel(%arg0: i32, %arg1: memref<1x256x128xf32, #tpu.memory_space<vmem>>, %arg2: memref<3x384x128xbf16, #tpu.memory_space<vmem>>, %arg3: memref<3x384x128xbf16, #tpu.memory_space<vmem>>, %arg4: memref<1x256x128xf32, #tpu.memory_space<vmem>>) attributes {dimension_semantics = [#tpu.dimension_semantics<parallel>], iteration_bounds = array<i64: 2>, scalar_prefetch = 0 : i64, scratch_operands = 0 : i64, tpu.core_type = #tpu.core_type<tc>, window_params = [{transform_indices = @transform_0, window_bounds = array<i64: 1, 256, 128>}, {pipeline_mode = #tpu.pipeline_mode<synchronous>, transform_indices = @transform_1, window_bounds = array<i64: 3, 384, 128>}, {pipeline_mode = #tpu.pipeline_mode<synchronous>, transform_indices = @transform_2, window_bounds = array<i64: 3, 384, 128>}, {transform_indices = @transform_3, window_bounds = array<i64: 1, 256, 128>}]} {
    %0 = tpu.iota {dimensions = array<i32: 0>} : vector<256x1xi32>
    %c16_i32 = arith.constant 16 : i32
    %c0_i32 = arith.constant 0 : i32
    %1 = arith.cmpi eq, %c16_i32, %c0_i32 : i32
    %c1_i32 = arith.constant 1 : i32
    %2 = arith.select %1, %c1_i32, %c16_i32 : i32
    %3 = vector.broadcast %2 : i32 to vector<256x1xi32>
    %4 = arith.remsi %0, %3 : vector<256x1xi32>
    %c0_i32_0 = arith.constant 0 : i32
    %5 = vector.broadcast %c0_i32_0 : i32 to vector<256x1xi32>
    %6 = arith.cmpi ne, %4, %5 : vector<256x1xi32>
    %c0_i32_1 = arith.constant 0 : i32
    %7 = vector.broadcast %c0_i32_1 : i32 to vector<256x1xi32>
    %8 = arith.cmpi slt, %4, %7 : vector<256x1xi32>
    %c0_i32_2 = arith.constant 0 : i32
    %9 = arith.cmpi slt, %2, %c0_i32_2 : i32
    %10 = vector.broadcast %9 : i1 to vector<256x1xi1>
    %11 = vector.broadcast %10 : vector<256x1xi1> to vector<256x1xi1>
    %12 = arith.xori %8, %11 : vector<256x1xi1>
    %13 = arith.andi %12, %6 : vector<256x1xi1>
    %14 = vector.broadcast %2 : i32 to vector<256x1xi32>
    %15 = arith.addi %4, %14 : vector<256x1xi32>
    %16 = arith.select %13, %15, %4 : vector<256x1xi1>, vector<256x1xi32>
    %c0_i32_3 = arith.constant 0 : i32
    %17 = vector.broadcast %c0_i32_3 : i32 to vector<256x1xi32>
    %18 = arith.cmpi eq, %16, %17 : vector<256x1xi32>
    %19 = vector.shape_cast %18 : vector<256x1xi1> to vector<256x1xi1>
    %20 = vector.broadcast %19 : vector<256x1xi1> to vector<256x128xi1>
    %c15_i32 = arith.constant 15 : i32
    %21 = vector.broadcast %c15_i32 : i32 to vector<256x1xi32>
    %22 = arith.cmpi eq, %16, %21 : vector<256x1xi32>
    %23 = vector.shape_cast %22 : vector<256x1xi1> to vector<256x1xi1>
    %24 = vector.broadcast %23 : vector<256x1xi1> to vector<256x128xi1>
    %c0 = arith.constant 0 : index
    %c0_4 = arith.constant 0 : index
    %c0_5 = arith.constant 0 : index
    %25 = vector.load %arg1[%c0, %c0_4, %c0_5] : memref<1x256x128xf32, #tpu.memory_space<vmem>>, vector<1x256x128xf32>
    %26 = vector.shape_cast %25 : vector<1x256x128xf32> to vector<256x128xf32>
    %c1_i32_6 = arith.constant 1 : i32
    %27 = tpu.dynamic_rotate %26 by %c1_i32_6 dim 0 : vector<256x128xf32>, i32 -> vector<256x128xf32>
    %c255_i32 = arith.constant 255 : i32
    %28 = tpu.dynamic_rotate %26 by %c255_i32 dim 0 : vector<256x128xf32>, i32 -> vector<256x128xf32>
    %29 = arith.select %20, %28, %27 : vector<256x128xi1>, vector<256x128xf32>
    %30 = arith.truncf %29 : vector<256x128xf32> to vector<256x128xbf16>
    %31 = arith.truncf %26 : vector<256x128xf32> to vector<256x128xbf16>
    %32 = arith.select %24, %27, %28 : vector<256x128xi1>, vector<256x128xf32>
    %33 = arith.truncf %32 : vector<256x128xf32> to vector<256x128xbf16>
    %34 = vector.extract_strided_slice %30 {offsets = [16, 0], sizes = [16, 128], strides = [1, 1]} : vector<256x128xbf16> to vector<16x128xbf16>
    %35 = vector.extract_strided_slice %30 {offsets = [0, 0], sizes = [240, 128], strides = [1, 1]} : vector<256x128xbf16> to vector<240x128xbf16>
    %36 = tpu.concatenate %34, %35 in 0 : vector<16x128xbf16>, vector<240x128xbf16> -> vector<256x128xbf16>
    %37 = vector.extract_strided_slice %30 {offsets = [16, 0], sizes = [240, 128], strides = [1, 1]} : vector<256x128xbf16> to vector<240x128xbf16>
    %38 = vector.extract_strided_slice %30 {offsets = [224, 0], sizes = [16, 128], strides = [1, 1]} : vector<256x128xbf16> to vector<16x128xbf16>
    %39 = tpu.concatenate %37, %38 in 0 : vector<240x128xbf16>, vector<16x128xbf16> -> vector<256x128xbf16>
    %40 = tpu.concatenate %36, %30, %39 in 1 : vector<256x128xbf16>, vector<256x128xbf16>, vector<256x128xbf16> -> vector<256x384xbf16>
    %c0_7 = arith.constant 0 : index
    %c0_8 = arith.constant 0 : index
    %c0_9 = arith.constant 0 : index
    %41 = vector.load %arg2[%c0_7, %c0_8, %c0_9] : memref<3x384x128xbf16, #tpu.memory_space<vmem>>, vector<1x384x128xbf16>
    %42 = vector.shape_cast %41 : vector<1x384x128xbf16> to vector<384x128xbf16>
    %cst = arith.constant dense<0.000000e+00> : vector<256x128xf32>
    %43 = tpu.matmul %40, %42, %cst {dimension_numbers = #tpu.dot_dimension_numbers<[1], [0], [0], [1], [0, 0, 1, 1], [], []>} : vector<256x384xbf16>, vector<384x128xbf16>, vector<256x128xf32> -> vector<256x128xf32>
    %44 = vector.extract_strided_slice %31 {offsets = [16, 0], sizes = [16, 128], strides = [1, 1]} : vector<256x128xbf16> to vector<16x128xbf16>
    %45 = vector.extract_strided_slice %31 {offsets = [0, 0], sizes = [240, 128], strides = [1, 1]} : vector<256x128xbf16> to vector<240x128xbf16>
    %46 = tpu.concatenate %44, %45 in 0 : vector<16x128xbf16>, vector<240x128xbf16> -> vector<256x128xbf16>
    %47 = vector.extract_strided_slice %31 {offsets = [16, 0], sizes = [240, 128], strides = [1, 1]} : vector<256x128xbf16> to vector<240x128xbf16>
    %48 = vector.extract_strided_slice %31 {offsets = [224, 0], sizes = [16, 128], strides = [1, 1]} : vector<256x128xbf16> to vector<16x128xbf16>
    %49 = tpu.concatenate %47, %48 in 0 : vector<240x128xbf16>, vector<16x128xbf16> -> vector<256x128xbf16>
    %50 = tpu.concatenate %46, %31, %49 in 1 : vector<256x128xbf16>, vector<256x128xbf16>, vector<256x128xbf16> -> vector<256x384xbf16>
    %c1 = arith.constant 1 : index
    %c0_10 = arith.constant 0 : index
    %c0_11 = arith.constant 0 : index
    %51 = vector.load %arg2[%c1, %c0_10, %c0_11] : memref<3x384x128xbf16, #tpu.memory_space<vmem>>, vector<1x384x128xbf16>
    %52 = vector.shape_cast %51 : vector<1x384x128xbf16> to vector<384x128xbf16>
    %cst_12 = arith.constant dense<0.000000e+00> : vector<256x128xf32>
    %53 = tpu.matmul %50, %52, %cst_12 {dimension_numbers = #tpu.dot_dimension_numbers<[1], [0], [0], [1], [0, 0, 1, 1], [], []>} : vector<256x384xbf16>, vector<384x128xbf16>, vector<256x128xf32> -> vector<256x128xf32>
    %54 = arith.addf %43, %53 : vector<256x128xf32>
    %55 = vector.extract_strided_slice %33 {offsets = [16, 0], sizes = [16, 128], strides = [1, 1]} : vector<256x128xbf16> to vector<16x128xbf16>
    %56 = vector.extract_strided_slice %33 {offsets = [0, 0], sizes = [240, 128], strides = [1, 1]} : vector<256x128xbf16> to vector<240x128xbf16>
    %57 = tpu.concatenate %55, %56 in 0 : vector<16x128xbf16>, vector<240x128xbf16> -> vector<256x128xbf16>
    %58 = vector.extract_strided_slice %33 {offsets = [16, 0], sizes = [240, 128], strides = [1, 1]} : vector<256x128xbf16> to vector<240x128xbf16>
    %59 = vector.extract_strided_slice %33 {offsets = [224, 0], sizes = [16, 128], strides = [1, 1]} : vector<256x128xbf16> to vector<16x128xbf16>
    %60 = tpu.concatenate %58, %59 in 0 : vector<240x128xbf16>, vector<16x128xbf16> -> vector<256x128xbf16>
    %61 = tpu.concatenate %57, %33, %60 in 1 : vector<256x128xbf16>, vector<256x128xbf16>, vector<256x128xbf16> -> vector<256x384xbf16>
    %c2 = arith.constant 2 : index
    %c0_13 = arith.constant 0 : index
    %c0_14 = arith.constant 0 : index
    %62 = vector.load %arg2[%c2, %c0_13, %c0_14] : memref<3x384x128xbf16, #tpu.memory_space<vmem>>, vector<1x384x128xbf16>
    %63 = vector.shape_cast %62 : vector<1x384x128xbf16> to vector<384x128xbf16>
    %cst_15 = arith.constant dense<0.000000e+00> : vector<256x128xf32>
    %64 = tpu.matmul %61, %63, %cst_15 {dimension_numbers = #tpu.dot_dimension_numbers<[1], [0], [0], [1], [0, 0, 1, 1], [], []>} : vector<256x384xbf16>, vector<384x128xbf16>, vector<256x128xf32> -> vector<256x128xf32>
    %65 = arith.addf %54, %64 : vector<256x128xf32>
    %cst_16 = arith.constant dense<0.000000e+00> : vector<128xf32>
    %66 = vector.multi_reduction <add>, %65, %cst_16 [0] : vector<256x128xf32> to vector<128xf32>
    %67 = vector.shape_cast %66 : vector<128xf32> to vector<1x128xf32>
    %cst_17 = arith.constant 3.906250e-03 : f32
    %68 = vector.broadcast %cst_17 : f32 to vector<1x128xf32>
    %69 = arith.mulf %67, %68 : vector<1x128xf32>
    %70 = arith.mulf %65, %65 : vector<256x128xf32>
    %cst_18 = arith.constant dense<0.000000e+00> : vector<128xf32>
    %71 = vector.multi_reduction <add>, %70, %cst_18 [0] : vector<256x128xf32> to vector<128xf32>
    %72 = vector.shape_cast %71 : vector<128xf32> to vector<1x128xf32>
    %cst_19 = arith.constant 3.906250e-03 : f32
    %73 = vector.broadcast %cst_19 : f32 to vector<1x128xf32>
    %74 = arith.mulf %72, %73 : vector<1x128xf32>
    %75 = arith.mulf %69, %69 : vector<1x128xf32>
    %76 = arith.subf %74, %75 : vector<1x128xf32>
    %77 = vector.broadcast %69 : vector<1x128xf32> to vector<256x128xf32>
    %78 = arith.subf %65, %77 : vector<256x128xf32>
    %cst_20 = arith.constant 9.99999974E-6 : f32
    %79 = vector.broadcast %cst_20 : f32 to vector<1x128xf32>
    %80 = arith.addf %76, %79 : vector<1x128xf32>
    %81 = math.rsqrt %80 : vector<1x128xf32>
    %82 = vector.broadcast %81 : vector<1x128xf32> to vector<256x128xf32>
    %83 = arith.mulf %78, %82 : vector<256x128xf32>
    %cst_21 = arith.constant 0.000000e+00 : f32
    %84 = vector.broadcast %cst_21 : f32 to vector<256x128xf32>
    %85 = arith.maximumf %83, %84 : vector<256x128xf32>
    %c1_i32_22 = arith.constant 1 : i32
    %86 = tpu.dynamic_rotate %85 by %c1_i32_22 dim 0 : vector<256x128xf32>, i32 -> vector<256x128xf32>
    %c255_i32_23 = arith.constant 255 : i32
    %87 = tpu.dynamic_rotate %85 by %c255_i32_23 dim 0 : vector<256x128xf32>, i32 -> vector<256x128xf32>
    %88 = arith.select %20, %87, %86 : vector<256x128xi1>, vector<256x128xf32>
    %89 = arith.truncf %88 : vector<256x128xf32> to vector<256x128xbf16>
    %90 = arith.truncf %85 : vector<256x128xf32> to vector<256x128xbf16>
    %91 = arith.select %24, %86, %87 : vector<256x128xi1>, vector<256x128xf32>
    %92 = arith.truncf %91 : vector<256x128xf32> to vector<256x128xbf16>
    %93 = vector.extract_strided_slice %89 {offsets = [16, 0], sizes = [16, 128], strides = [1, 1]} : vector<256x128xbf16> to vector<16x128xbf16>
    %94 = vector.extract_strided_slice %89 {offsets = [0, 0], sizes = [240, 128], strides = [1, 1]} : vector<256x128xbf16> to vector<240x128xbf16>
    %95 = tpu.concatenate %93, %94 in 0 : vector<16x128xbf16>, vector<240x128xbf16> -> vector<256x128xbf16>
    %96 = vector.extract_strided_slice %89 {offsets = [16, 0], sizes = [240, 128], strides = [1, 1]} : vector<256x128xbf16> to vector<240x128xbf16>
    %97 = vector.extract_strided_slice %89 {offsets = [224, 0], sizes = [16, 128], strides = [1, 1]} : vector<256x128xbf16> to vector<16x128xbf16>
    %98 = tpu.concatenate %96, %97 in 0 : vector<240x128xbf16>, vector<16x128xbf16> -> vector<256x128xbf16>
    %99 = tpu.concatenate %95, %89, %98 in 1 : vector<256x128xbf16>, vector<256x128xbf16>, vector<256x128xbf16> -> vector<256x384xbf16>
    %c0_24 = arith.constant 0 : index
    %c0_25 = arith.constant 0 : index
    %c0_26 = arith.constant 0 : index
    %100 = vector.load %arg3[%c0_24, %c0_25, %c0_26] : memref<3x384x128xbf16, #tpu.memory_space<vmem>>, vector<1x384x128xbf16>
    %101 = vector.shape_cast %100 : vector<1x384x128xbf16> to vector<384x128xbf16>
    %cst_27 = arith.constant dense<0.000000e+00> : vector<256x128xf32>
    %102 = tpu.matmul %99, %101, %cst_27 {dimension_numbers = #tpu.dot_dimension_numbers<[1], [0], [0], [1], [0, 0, 1, 1], [], []>} : vector<256x384xbf16>, vector<384x128xbf16>, vector<256x128xf32> -> vector<256x128xf32>
    %103 = vector.extract_strided_slice %90 {offsets = [16, 0], sizes = [16, 128], strides = [1, 1]} : vector<256x128xbf16> to vector<16x128xbf16>
    %104 = vector.extract_strided_slice %90 {offsets = [0, 0], sizes = [240, 128], strides = [1, 1]} : vector<256x128xbf16> to vector<240x128xbf16>
    %105 = tpu.concatenate %103, %104 in 0 : vector<16x128xbf16>, vector<240x128xbf16> -> vector<256x128xbf16>
    %106 = vector.extract_strided_slice %90 {offsets = [16, 0], sizes = [240, 128], strides = [1, 1]} : vector<256x128xbf16> to vector<240x128xbf16>
    %107 = vector.extract_strided_slice %90 {offsets = [224, 0], sizes = [16, 128], strides = [1, 1]} : vector<256x128xbf16> to vector<16x128xbf16>
    %108 = tpu.concatenate %106, %107 in 0 : vector<240x128xbf16>, vector<16x128xbf16> -> vector<256x128xbf16>
    %109 = tpu.concatenate %105, %90, %108 in 1 : vector<256x128xbf16>, vector<256x128xbf16>, vector<256x128xbf16> -> vector<256x384xbf16>
    %c1_28 = arith.constant 1 : index
    %c0_29 = arith.constant 0 : index
    %c0_30 = arith.constant 0 : index
    %110 = vector.load %arg3[%c1_28, %c0_29, %c0_30] : memref<3x384x128xbf16, #tpu.memory_space<vmem>>, vector<1x384x128xbf16>
    %111 = vector.shape_cast %110 : vector<1x384x128xbf16> to vector<384x128xbf16>
    %cst_31 = arith.constant dense<0.000000e+00> : vector<256x128xf32>
    %112 = tpu.matmul %109, %111, %cst_31 {dimension_numbers = #tpu.dot_dimension_numbers<[1], [0], [0], [1], [0, 0, 1, 1], [], []>} : vector<256x384xbf16>, vector<384x128xbf16>, vector<256x128xf32> -> vector<256x128xf32>
    %113 = arith.addf %102, %112 : vector<256x128xf32>
    %114 = vector.extract_strided_slice %92 {offsets = [16, 0], sizes = [16, 128], strides = [1, 1]} : vector<256x128xbf16> to vector<16x128xbf16>
    %115 = vector.extract_strided_slice %92 {offsets = [0, 0], sizes = [240, 128], strides = [1, 1]} : vector<256x128xbf16> to vector<240x128xbf16>
    %116 = tpu.concatenate %114, %115 in 0 : vector<16x128xbf16>, vector<240x128xbf16> -> vector<256x128xbf16>
    %117 = vector.extract_strided_slice %92 {offsets = [16, 0], sizes = [240, 128], strides = [1, 1]} : vector<256x128xbf16> to vector<240x128xbf16>
    %118 = vector.extract_strided_slice %92 {offsets = [224, 0], sizes = [16, 128], strides = [1, 1]} : vector<256x128xbf16> to vector<16x128xbf16>
    %119 = tpu.concatenate %117, %118 in 0 : vector<240x128xbf16>, vector<16x128xbf16> -> vector<256x128xbf16>
    %120 = tpu.concatenate %116, %92, %119 in 1 : vector<256x128xbf16>, vector<256x128xbf16>, vector<256x128xbf16> -> vector<256x384xbf16>
    %c2_32 = arith.constant 2 : index
    %c0_33 = arith.constant 0 : index
    %c0_34 = arith.constant 0 : index
    %121 = vector.load %arg3[%c2_32, %c0_33, %c0_34] : memref<3x384x128xbf16, #tpu.memory_space<vmem>>, vector<1x384x128xbf16>
    %122 = vector.shape_cast %121 : vector<1x384x128xbf16> to vector<384x128xbf16>
    %cst_35 = arith.constant dense<0.000000e+00> : vector<256x128xf32>
    %123 = tpu.matmul %120, %122, %cst_35 {dimension_numbers = #tpu.dot_dimension_numbers<[1], [0], [0], [1], [0, 0, 1, 1], [], []>} : vector<256x384xbf16>, vector<384x128xbf16>, vector<256x128xf32> -> vector<256x128xf32>
    %124 = arith.addf %113, %123 : vector<256x128xf32>
    %cst_36 = arith.constant dense<0.000000e+00> : vector<128xf32>
    %125 = vector.multi_reduction <add>, %124, %cst_36 [0] : vector<256x128xf32> to vector<128xf32>
    %126 = vector.shape_cast %125 : vector<128xf32> to vector<1x128xf32>
    %cst_37 = arith.constant 3.906250e-03 : f32
    %127 = vector.broadcast %cst_37 : f32 to vector<1x128xf32>
    %128 = arith.mulf %126, %127 : vector<1x128xf32>
    %129 = arith.mulf %124, %124 : vector<256x128xf32>
    %cst_38 = arith.constant dense<0.000000e+00> : vector<128xf32>
    %130 = vector.multi_reduction <add>, %129, %cst_38 [0] : vector<256x128xf32> to vector<128xf32>
    %131 = vector.shape_cast %130 : vector<128xf32> to vector<1x128xf32>
    %cst_39 = arith.constant 3.906250e-03 : f32
    %132 = vector.broadcast %cst_39 : f32 to vector<1x128xf32>
    %133 = arith.mulf %131, %132 : vector<1x128xf32>
    %134 = arith.mulf %128, %128 : vector<1x128xf32>
    %135 = arith.subf %133, %134 : vector<1x128xf32>
    %136 = vector.broadcast %128 : vector<1x128xf32> to vector<256x128xf32>
    %137 = arith.subf %124, %136 : vector<256x128xf32>
    %cst_40 = arith.constant 9.99999974E-6 : f32
    %138 = vector.broadcast %cst_40 : f32 to vector<1x128xf32>
    %139 = arith.addf %135, %138 : vector<1x128xf32>
    %140 = math.rsqrt %139 : vector<1x128xf32>
    %141 = vector.broadcast %140 : vector<1x128xf32> to vector<256x128xf32>
    %142 = arith.mulf %137, %141 : vector<256x128xf32>
    %c0_41 = arith.constant 0 : index
    %c0_42 = arith.constant 0 : index
    %c0_43 = arith.constant 0 : index
    %143 = vector.load %arg1[%c0_41, %c0_42, %c0_43] : memref<1x256x128xf32, #tpu.memory_space<vmem>>, vector<1x256x128xf32>
    %144 = vector.shape_cast %143 : vector<1x256x128xf32> to vector<256x128xf32>
    %145 = arith.addf %144, %142 : vector<256x128xf32>
    %c0_44 = arith.constant 0 : index
    %c0_45 = arith.constant 0 : index
    %c0_46 = arith.constant 0 : index
    %146 = vector.load %arg4[%c0_44, %c0_45, %c0_46] : memref<1x256x128xf32, #tpu.memory_space<vmem>>, vector<1x256x128xf32>
    %147 = vector.shape_cast %146 : vector<1x256x128xf32> to vector<256x128xf32>
    %148 = vector.shape_cast %145 : vector<256x128xf32> to vector<1x256x128xf32>
    tpu.vector_store %arg4[%c0_44, %c0_45, %c0_46], %148 {strides = array<i32>} : memref<1x256x128xf32, #tpu.memory_space<vmem>>, vector<1x256x128xf32>,
    return
  }
  func.func @transform_0(%arg0: i32) -> (i32, i32, i32) {
    %c0_i32 = arith.constant 0 : i32
    %c0_i32_0 = arith.constant 0 : i32
    %c0_i32_1 = arith.constant 0 : i32
    return %arg0, %c0_i32, %c0_i32_0 : i32, i32, i32
  }
  func.func @transform_1(%arg0: i32) -> (i32, i32, i32) {
    %c0_i32 = arith.constant 0 : i32
    %c0_i32_0 = arith.constant 0 : i32
    %c0_i32_1 = arith.constant 0 : i32
    %c0_i32_2 = arith.constant 0 : i32
    return %c0_i32, %c0_i32_0, %c0_i32_1 : i32, i32, i32
  }
  func.func @transform_2(%arg0: i32) -> (i32, i32, i32) {
    %c0_i32 = arith.constant 0 : i32
    %c0_i32_0 = arith.constant 0 : i32
    %c0_i32_1 = arith.constant 0 : i32
    %c0_i32_2 = arith.constant 0 : i32
    return %c0_i32, %c0_i32_0, %c0_i32_1 : i32, i32, i32
  }
  func.func @transform_3(%arg0: i32) -> (i32, i32, i32) {
    %c0_i32 = arith.constant 0 : i32
    %c0_i32_0 = arith.constant 0 : i32
    %c0_i32_1 = arith.constant 0 : i32
    return %arg0, %c0_i32, %c0_i32_0 : i32, i32, i32
  }
}

</mosaic_0001>

<bundles_post_ra>
// kernel: tpu_custom_call.1
= control target key start
LH: loop header
LB: loop body
LE: loop exit
PB: predicated region body
PF: predicated region fallthrough
CT: control target
= control target key end

     0   :  { %8 = vsyncpa [#allocation3], 0  ;;  %s9976_s0 = inlined_call_operand.hbm [shape: f32[2,256,128], index: 0, kind: input, shape index: {}]   ;;  %s9977_s1 = inlined_call_operand.hbm [shape: bf16[3,384,128], index: 1, kind: input, shape index: {}]   ;;  %s9978_s2 = inlined_call_operand.hbm [shape: bf16[3,384,128], index: 2, kind: input, shape index: {}]   ;;  %s9979_s3 = inlined_call_operand.hbm [shape: f32[2,256,128], index: 3, kind: output, shape index: {}]  }
   0x1   :  { %10 = vsyncpa [#allocation3 + $0x1], 0 }
   0x2   :  { %11 = vsyncpa [#allocation6], 0 }
   0x3   :  { %12 = vsyncpa [#allocation4], 0 }
   0x4   :  { %14 = vsyncpa [#allocation4 + $0x1], 0  ;;  %s6476_s12 = smov 0   ;;  %s6478_s13 = smov 0  }
   0x5   :  { %s6480_s14 = smov 0   ;;  %s6482_s15 = smov 0  }
   0x6 LB: > { %s6497_s16 = sadd.s32 4294967295, %s6446_s15   ;;  %s5415_s17 = sadd.s32 4294967294, %s6446_s15   ;;  %s6446_s15 = sphi %s6482_s15, %s10792_s15   ;;  %s6442_s14 = sphi %s6480_s14, %s10791_s14   ;;  %s6438_s13 = sphi %s6478_s13, %s10790_s13   ;;  %s6434_s12 = sphi %s6476_s12, %s10789_s12  }
   0x7   : > { %p40_p0 = scmp.ne.s32.totalorder %s6438_s13, %s6434_s12  ;;  %p41_p1 = scmp.eq.s32.totalorder %s6497_s16, 0 }
   0x8   : > { %p106_p2 = scmp.eq.s32.totalorder %s6497_s16, 1  ;;  %p112_p3 = scmp.eq.s32.totalorder %s5415_s17, 1 }
   0x9   : > { %p6506_p4 = por %p41_p1, %p40_p0  ;;  %p5416_p5 = scmp.ge.s32.totalorder %s6446_s15, 1 }
   0xa   : > { %p6511_p6 = por %p112_p3, %p40_p0  ;;  %p119_p7 = scmp.lt.s32.totalorder %s6446_s15, 3 }
   0xb   : > { %s130_s22 = sshll.u32 %s9977_s1, 4  ;;  %s6448_s24 = smov [#allocation5]   ;;  %s131_s22 = int_to_ptr.hbm [resolvable:$true] %s130_s22 }
   0xc   : > { %p6519_p8 = pnand %p5416_p5, %p119_p7  ;;  %s132_s25 = sshll.u32 %s6448_s24, 4  ;;  %s133_s25 = int_to_ptr.vmem [resolvable:$true] %s132_s25 }
   0xd   : > { %s144_s28 = sshll.u32 %s9978_s2, 4  ;;  %s6449_s29 = smov 64   ;;  %s145_s28 = int_to_ptr.hbm [resolvable:$true] %s144_s28 }
   0xe   : > { %p6183_p9 = pneg %p6519_p8  ;;  %s6450_s30 = smov 4  }
   0xf   : > { %s6451_s4 = smov [#allocation7]   ;;  %s6532_s6 = sadd.s32 1, %s6446_s15  }
  0x10   : > { %p6184_p10 = pnand %p6183_p9, %p41_p1  ;;  %s146_s5 = sshll.u32 %s6451_s4, 4  ;;  %s147_s5 = int_to_ptr.vmem [resolvable:$true] %s146_s5 }
  0x11   : > { %s27_s7 = sadd.s32 1, %s6442_s14  ;;  %s24_s8 = ssub.s32 %s6446_s15, %s6532_s6 }
  0x12   : > { %6186 = dma.hbm_to_vmem [thread:$0]  (!%p6184_p10), %s131_s22, 9216, %s133_s25, [#allocation6], %s6449_s29, %s6449_s29, %s6450_s30  }
  0x13   : > { %6189 = dma.hbm_to_vmem [thread:$0]  (!%p6184_p10), %s145_s28, 9216, %s147_s5, [#allocation6], %s6449_s29, %s6449_s29, %s6450_s30  }
  0x14   : > { %p34_p12 = scmp.ne.s32.totalorder %s6442_s14, %s6438_s13  ;;  %p25_p13 = scmp.eq.s32.totalorder %s24_s8, 0 }
  0x15   : > { %p35_p0 = scmp.eq.s32.totalorder %s6446_s15, 0  ;;  %p6200_p5 = scmp.lt.s32.totalorder %s6446_s15, 2 }
  0x16   : > { %p6542_p3 = por %p106_p2, %p34_p12  ;;  %s160_s11 = sand.u32 1, %s6442_s14  }
  0x17   : > { %s6548_s10 = scalar_select %p25_p13, %s6442_s14, %s27_s7  }
  0x18   : > { %p36_p7 = por %p35_p0, %p34_p12  ;;  %s5420_s17 = sshll.u32 %s160_s11, 8 }
  0x19   : > { %s6009_s20 = sshll.u32 %s6446_s15, 8  ;;  %s164_s25 = scalar_lea.vmem [#allocation2], %s5420_s17 }
  0x1a   : > { %s169_s24 = scalar_lea.hbm %s9976_s0, %s6009_s20  ;;  %s172_s26 = sshll.u32 %s164_s25, 4  ;;  %s173_s26 = int_to_ptr.vmem [resolvable:$true] %s172_s26 }
  0x1b   : > { %s170_s27 = sshll.u32 %s169_s24, 4  ;;  %p6555_p2 = pnand %p6200_p5, %p36_p7  ;;  %s171_s27 = int_to_ptr.hbm [resolvable:$true] %s170_s27 }
  0x1c   : > { %s161_s29 = scalar_lea.sflag [#allocation3], %s160_s11  ;;  %s6346_s30 = sshra.s32 %s171_s27, 4  ;;  %s6347_s30 = int_to_ptr.hbm [resolvable:$true] %s6346_s30 }
  0x1d   : > { %s6348_s4 = scalar_lea.hbm %s6347_s30, 256  ;;  %p6350_p10 = pneg %p6555_p2 }
  0x1e   : > { %p6349_p9 = scmp.ne.s32.totalorder %s6347_s30, %s6348_s4  ;;  %s6353_s8 = scalar_lea.hbm %s9976_s0, 512 }
  0x1f   : > { %p6354_p0 = scmp.lt.s32.totalorder %s6347_s30, %s9976_s0  ;;  %p6355_p5 = scmp.lt.s32.totalorder %s6353_s8, %s6348_s4 }
  0x20   : > { %p6351_p12 = pnand %p6350_p10, %p6349_p9 }
  0x21   : > { %p6356_p7 = por %p6355_p5, %p6354_p0 }
  0x22   : > { %p6352_p13 = pneg %p6351_p12 }
  0x24   : > { %p6357_p11 = pnand %p6356_p7, %p6352_p13 }
  0x26   : > { %6360 = shalt.err (!%p6357_p11)
}
  0x27   : > { %s6452_s11 = smov 128   ;;  %s6453_s21 = smov 8  }
  0x28   : > { %6193 = dma.hbm_to_vmem [thread:$0]  (!%p6555_p2), %s171_s27, 4096, %s173_s26, %s161_s29, %s6452_s11, %s6452_s11, %s6453_s21  }
  0x29   : > { %184 = sbr.rel (%p6519_p8) target bundleno = 1882 (0x75a), region = 32 }
  0x2e   : > { %s6572_s22 = sand.u32 1, %s6438_s13  }
  0x2f   : > { %s5424_s24 = sshll.u32 %s6572_s22, 8  ;;  %s187_s25 = scalar_lea.sflag [#allocation3], %s6572_s22 }
  0x30   : > { %s6578_s30 = scalar_lea.vmem [#allocation2], %s5424_s24 }
  0x31   : > { %6421 = dma.done.wait (%p6506_p4), %s187_s25, 4096  }
  0x32   : > { %6423 = vsyncadd (%p6506_p4), %s187_s25, 4294963200 }
  0x33   : > { %6425 = dma.done.wait (%p41_p1), [#allocation6], 18432  }
  0x34   : > { %6427 = vsyncadd (%p41_p1), [#allocation6], 4294948864  ;;  %v6041_v0 = vld [vmem:[#allocation5 + $0xf8] sm:$0xff]  ;;  %v6040_v2 = vld [vmem:[#allocation5 + $0xf0] sm:$0xff]  ;;  %s9823_s18 = scalar_lea.vmem [#allocation8], %s5424_s24  ;;  %s6154_s23 = sshll.u32 %s6497_s16, 8 }
  0x35   : > { %v6049_v1 = vld [vmem:[#allocation5 + $0x138] sm:$0xff]  ;;  %1588 = vmatpush.bf16.msra.mxu0 %v6041_v0  ;;  %6155 = vmatpush.bf16.msra.mxu2 %v6041_v0  ;;  %v6048_v3 = vld [vmem:[#allocation5 + $0x130] sm:$0xff]  ;;  %v6039_v4 = vld [vmem:[#allocation5 + $0xe8] sm:$0xff]  ;;  %s5319_s27 = scalar_lea.hbm %s9979_s3, %s6154_s23  ;;  %s5320_s28 = sshll.u32 %s9823_s18, 4  ;;  %s5321_s28 = int_to_ptr.vmem [resolvable:$true] %s5320_s28 }
  0x36   : > { %1677 = vmatpush.bf16.msra.mxu1 %v6049_v1  ;;  %6163 = vmatpush.bf16.msra.mxu3 %v6049_v1  ;;  %v6047_v5 = vld [vmem:[#allocation5 + $0x128] sm:$0xff]  ;;  %v6038_v6 = vld [vmem:[#allocation5 + $0xe0] sm:$0xff]  ;;  %v6037_v8 = vld [vmem:[#allocation5 + $0xd8] sm:$0xff]  ;;  %s5322_s29 = sshll.u32 %s5319_s27, 4  ;;  %s5308_s4 = scalar_lea.sflag [#allocation4], %s6572_s22  ;;  %s5323_s29 = int_to_ptr.hbm [resolvable:$true] %s5322_s29 }
  0x37   : > { %v6046_v7 = vld [vmem:[#allocation5 + $0x120] sm:$0xff]  ;;  %v6045_v9 = vld [vmem:[#allocation5 + $0x118] sm:$0xff]  ;;  %v6036_v10 = vld [vmem:[#allocation5 + $0xd0] sm:$0xff]  ;;  %s6390_s5 = sshra.s32 %s5323_s29, 4  ;;  %s6396_s20 = scalar_lea.hbm %s9979_s3, 512  ;;  %s6391_s5 = int_to_ptr.hbm [resolvable:$true] %s6390_s5 }
  0x38   : > { %v6044_v11 = vld [vmem:[#allocation5 + $0x110] sm:$0xff]  ;;  %v6592_v13 = vld [vmem:[%s6578_s30 + $0x18] sm:$0xff]  ;;  %v6601_v16 = vld [vmem:[%s6578_s30] sm:$0xff]  ;;  %s6392_s7 = scalar_lea.hbm %s6391_s5, 256  ;;  %p6397_p11 = scmp.lt.s32.totalorder %s6391_s5, %s9979_s3 }
  0x39   : > { %1589 = vmatpush.bf16.msra.mxu0 %v6040_v2  ;;  %6156 = vmatpush.bf16.msra.mxu2 %v6040_v2  ;;  %v6589_v12 = vld [vmem:[%s6578_s30 + $0x10] sm:$0xff]  ;;  %v6598_v15 = vld [vmem:[%s6578_s30 + $0x78] sm:$0xff]  ;;  %10178 = vst [vmem:[#allocation13_spill] sm:$0xff] %v6601_v16  ;;  %v6604_v17 = vld [vmem:[%s6578_s30 + $0x8] sm:$0xff]  ;;  %v1062_v21 = vpack.c.bf16 %v6592_v13, %v6592_v13  ;;  %v1059_v24 = vpack.c.bf16 %v6601_v16, %v6601_v16  ;;  %p6393_p1 = scmp.ne.s32.totalorder %s6391_s5, %s6392_s7  ;;  %p6398_p2 = scmp.lt.s32.totalorder %s6396_s20, %s6392_s7 }
  0x3a   : > { %1678 = vmatpush.bf16.msra.mxu1 %v6048_v3  ;;  %6164 = vmatpush.bf16.msra.mxu3 %v6048_v3  ;;  %v6595_v14 = vld [vmem:[%s6578_s30 + $0x70] sm:$0xff]  ;;  %10177 = vst [vmem:[#allocation12_spill] sm:$0xff] %v6598_v15  ;;  %v6607_v18 = vld [vmem:[%s6578_s30 + $0x80] sm:$0xff]  ;;  %v6610_v19 = vld [vmem:[%s6578_s30 + $0x88] sm:$0xff]  ;;  %v1061_v20 = vpack.c.bf16 %v6589_v12, %v6589_v12  ;;  %v1074_v23 = vpack.c.bf16 %v6598_v15, %v6598_v15 }
  0x3b   : > { %10179 = vst [vmem:[#allocation14_spill] sm:$0xff] %v6610_v19  ;;  %v1073_v22 = vpack.c.bf16 %v6595_v14, %v6595_v14  ;;  %v6035_v25 = vld [vmem:[#allocation5 + $0xc8] sm:$0xff]  ;;  %v1060_v26 = vpack.c.bf16 %v6604_v17, %v6604_v17  ;;  %v1075_v27 = vpack.c.bf16 %v6607_v18, %v6607_v18  ;;  %v1076_v28 = vpack.c.bf16 %v6610_v19, %v6610_v19  ;;  %v6034_v34 = vld [vmem:[#allocation5 + $0xc0] sm:$0xff]  ;;  %v6057_v40 = vld [vmem:[#allocation5 + $0x178] sm:$0xff]  ;;  %p6394_p4 = pnand %p6393_p1, %p6542_p3  ;;  %p6399_p9 = por %p6398_p2, %p6397_p11 }
  0x3c   : > { %v6043_v29 = vld [vmem:[#allocation5 + $0x108] sm:$0xff]  ;;  %v1301_v30 = vunpack.c.l.b16 %v1061_v20  ;;  %v1302_v31 = vunpack.c.l.b16 %v1062_v21  ;;  %v1346_v33 = vunpack.c.l.b16 %v1074_v23  ;;  %v1333_v35 = vunpack.c.l.b16 %v1059_v24  ;;  %v6042_v39 = vld [vmem:[#allocation5 + $0x100] sm:$0xff]  ;;  %v6017_v41 = vld [vmem:[#allocation5 + $0x38] sm:$0xff] }
  0x3d   : > { %1590 = vmatpush.bf16.msra.mxu0 %v6039_v4  ;;  %6157 = vmatpush.bf16.msra.mxu2 %v6039_v4  ;;  %v1345_v32 = vunpack.c.l.b16 %v1073_v22  ;;  %v1334_v36 = vunpack.c.l.b16 %v1060_v26  ;;  %v1347_v37 = vunpack.c.l.b16 %v1075_v27  ;;  %v1348_v38 = vunpack.c.l.b16 %v1076_v28  ;;  %v6025_v46 = vld [vmem:[#allocation5 + $0x78] sm:$0xff]  ;;  %v6056_v47 = vld [vmem:[#allocation5 + $0x170] sm:$0xff]  ;;  %v6055_v52 = vld [vmem:[#allocation5 + $0x168] sm:$0xff]  ;;  %p6395_p8 = pneg %p6394_p4 }
  0x3e   : > { %1679 = vmatpush.bf16.msra.mxu1 %v6047_v5  ;;  %6165 = vmatpush.bf16.msra.mxu3 %v6047_v5  ;;  %v6628_v42 = vpack.c.b16 %v1302_v31, %v1301_v30  ;;  %v6016_v48 = vld [vmem:[#allocation5 + $0x30] sm:$0xff]  ;;  %v6641_v50 = vld [vmem:[%s6578_s30 + $0x98] sm:$0xff]  ;;  %v6015_v53 = vld [vmem:[#allocation5 + $0x28] sm:$0xff] }
  0x3f   : > { %v6630_v43 = vpack.c.b16 %v1346_v33, %v1345_v32  ;;  %v1361_v44 = vpack.c.b16 %v1334_v36, %v1333_v35  ;;  %v6632_v45 = vpack.c.b16 %v1348_v38, %v1347_v37  ;;  %v6638_v49 = vld [vmem:[%s6578_s30 + $0x90] sm:$0xff]  ;;  %10181 = vst [vmem:[#allocation16_spill] sm:$0xff] %v6641_v50  ;;  %v1078_v55 = vpack.c.bf16 %v6641_v50, %v6641_v50  ;;  %v6023_v56 = vld [vmem:[#allocation5 + $0x68] sm:$0xff]  ;;  %v6651_v60 = vld [vmem:[%s6578_s30 + $0x20] sm:$0xff]  ;;  %p6400_p10 = pnand %p6399_p9, %p6395_p8 }
  0x40   : > { %10180 = vst [vmem:[#allocation15_spill] sm:$0xff] %v6638_v49  ;;  %v6024_v51 = vld [vmem:[#allocation5 + $0x70] sm:$0xff]  ;;  %v1077_v54 = vpack.c.bf16 %v6638_v49, %v6638_v49  ;;  %v6054_v61 = vld [vmem:[#allocation5 + $0x160] sm:$0xff]  ;;  %v6656_v0 = vld [vmem:[%s6578_s30 + $0x28] sm:$0xff]  ;;  %v1063_v3 = vpack.c.bf16 %v6651_v60, %v6651_v60 }
  0x41   : > { %1591 = vmatpush.bf16.msra.mxu0 %v6038_v6  ;;  %6158 = vmatpush.bf16.msra.mxu2 %v6038_v6  ;;  %v1350_v58 = vunpack.c.l.b16 %v1078_v55  ;;  %v6014_v62 = vld [vmem:[#allocation5 + $0x20] sm:$0xff]  ;;  %v6662_v2 = vld [vmem:[%s6578_s30 + $0xa8] sm:$0xff]  ;;  %v1064_v4 = vpack.c.bf16 %v6656_v0, %v6656_v0  ;;  %v6679_v21 = vld [vmem:[%s6578_s30 + $0x30] sm:$0xff] }
  0x42   : > { %1680 = vmatpush.bf16.msra.mxu1 %v6046_v7  ;;  %6166 = vmatpush.bf16.msra.mxu3 %v6046_v7  ;;  %v1349_v57 = vunpack.c.l.b16 %v1077_v54  ;;  %v6022_v63 = vld [vmem:[#allocation5 + $0x60] sm:$0xff]  ;;  %10183 = vst [vmem:[#allocation18_spill] sm:$0xff] %v6662_v2  ;;  %v1080_v6 = vpack.c.bf16 %v6662_v2, %v6662_v2  ;;  %v1335_v7 = vunpack.c.l.b16 %v1063_v3  ;;  %v6053_v22 = vld [vmem:[#allocation5 + $0x158] sm:$0xff]  ;;  %v6687_v26 = vld [vmem:[%s6578_s30 + $0xb0] sm:$0xff]  ;;  %v1065_v28 = vpack.c.bf16 %v6679_v21, %v6679_v21 }
  0x43   : > { %v6659_v1 = vld [vmem:[%s6578_s30 + $0xa0] sm:$0xff]  ;;  %v6013_v23 = vld [vmem:[#allocation5 + $0x18] sm:$0xff]  ;;  %v1081_v30 = vpack.c.bf16 %v6687_v26, %v6687_v26  ;;  %v6051_v3 = vld [vmem:[#allocation5 + $0x148] sm:$0xff] }
  0x44   : > { %v6647_v59 = vpack.c.b16 %v1350_v58, %v1349_v57  ;;  %10182 = vst [vmem:[#allocation17_spill] sm:$0xff] %v6659_v1  ;;  %v1079_v5 = vpack.c.bf16 %v6659_v1, %v6659_v1  ;;  %v6021_v24 = vld [vmem:[#allocation5 + $0x58] sm:$0xff]  ;;  %v1337_v32 = vunpack.c.l.b16 %v1065_v28  ;;  %v6707_v38 = vld [vmem:[%s6578_s30 + $0x40] sm:$0xff] }
  0x45   : > { %1592 = vmatpush.bf16.msra.mxu0 %v6037_v8  ;;  %6159 = vmatpush.bf16.msra.mxu2 %v6037_v8  ;;  %v1336_v8 = vunpack.c.l.b16 %v1064_v4  ;;  %v6690_v27 = vld [vmem:[%s6578_s30 + $0xb8] sm:$0xff]  ;;  %v6011_v4 = vld [vmem:[#allocation5 + $0x8] sm:$0xff] }
  0x46   : > { %1681 = vmatpush.bf16.msra.mxu1 %v6045_v9  ;;  %6167 = vmatpush.bf16.msra.mxu3 %v6045_v9  ;;  %v1351_v9 = vunpack.c.l.b16 %v1079_v5  ;;  %v1082_v31 = vpack.c.bf16 %v6690_v27, %v6690_v27  ;;  %v6019_v5 = vld [vmem:[#allocation5 + $0x48] sm:$0xff] }
  0x48   : > { %v1354_v35 = vunpack.c.l.b16 %v1082_v31 }
  0x49   : > { %1593 = vmatpush.bf16.msra.mxu0 %v6036_v10  ;;  %6160 = vmatpush.bf16.msra.mxu2 %v6036_v10  ;;  %v1352_v10 = vunpack.c.l.b16 %v1080_v6  ;;  %v859_v6 = vld [vmem:[%s6578_s30 + $0xd0] sm:$0xff] }
  0x4a   : > { %1682 = vmatpush.bf16.msra.mxu1 %v6044_v11  ;;  %6168 = vmatpush.bf16.msra.mxu3 %v6044_v11  ;;  %v6672_v11 = vpack.c.b16 %v1336_v8, %v1335_v7  ;;  %v860_v7 = vld [vmem:[%s6578_s30 + $0xd8] sm:$0xff] }
  0x4b   : > { %v6674_v20 = vpack.c.b16 %v1352_v10, %v1351_v9  ;;  %v6033_v8 = vld [vmem:[#allocation5 + $0xb8] sm:$0xff] }
  0x4d   : > { %1594 = vmatpush.bf16.msra.mxu0 %v6035_v25  ;;  %6161 = vmatpush.bf16.msra.mxu2 %v6035_v25  ;;  %v6684_v25 = vld [vmem:[%s6578_s30 + $0x38] sm:$0xff] }
  0x4e   : > { %1683 = vmatpush.bf16.msra.mxu1 %v6043_v29  ;;  %6169 = vmatpush.bf16.msra.mxu3 %v6043_v29  ;;  %10184 = vst [vmem:[#allocation19_spill] sm:$0xff] %v6684_v25  ;;  %v1066_v29 = vpack.c.bf16 %v6684_v25, %v6684_v25 }
  0x50   : > { %v1338_v33 = vunpack.c.l.b16 %v1066_v29 }
  0x51   : > { %1595 = vmatpush.bf16.msra.mxu0 %v6034_v34  ;;  %6162 = vmatpush.bf16.msra.mxu2 %v6034_v34  ;;  %v1353_v34 = vunpack.c.l.b16 %v1081_v30 }
  0x52   : > { %1684 = vmatpush.bf16.msra.mxu1 %v6042_v39  ;;  %6170 = vmatpush.bf16.msra.mxu3 %v6042_v39  ;;  %v6700_v36 = vpack.c.b16 %v1338_v33, %v1337_v32  ;;  %v6052_v39 = vld [vmem:[#allocation5 + $0x150] sm:$0xff]  ;;  %v6755_v33 = vld [vmem:[%s6578_s30 + $0x60] sm:$0xff] }
  0x53   : > { %v6702_v37 = vpack.c.b16 %v1354_v35, %v1353_v34  ;;  %v6758_v34 = vld [vmem:[%s6578_s30 + $0x68] sm:$0xff]  ;;  %v6032_v35 = vld [vmem:[#allocation5 + $0xb0] sm:$0xff] }
  0x54   : > { %1596 = vmatmul.bf16.vlgmr.msra.gmra.mxu0 %v6628_v42  ;;  %1636 = vmatmul.bf16.vlgmr.msra.gmra.mxu2 %v6630_v43  ;;  %10187 = vst [vmem:[#allocation22_spill] sm:$0xff] %v6758_v34 }
  0x55   : > { %1766 = vmatpush.bf16.msrb.mxu2 %v6057_v40  ;;  %1685 = vmatmul.bf16.vlgmr.msra.gmra.mxu1 %v1361_v44  ;;  %v6012_v40 = vld [vmem:[#allocation5 + $0x10] sm:$0xff] }
  0x56   : > { %1999 = vmatpush.bf16.msrb.mxu3 %v6017_v41  ;;  %2088 = vmatpush.bf16.msrb.mxu0 %v6025_v46  ;;  %v6020_v41 = vld [vmem:[#allocation5 + $0x50] sm:$0xff]  ;;  %v6715_v46 = vld [vmem:[%s6578_s30 + $0xc0] sm:$0xff] }
  0x57   : > { %1725 = vmatmul.bf16.vlgmr.msra.gmra.mxu3 %v6632_v45  ;;  %2177 = vmatpush.bf16.msrb.mxu1 %v6033_v8  ;;  %v6029_v8 = vld [vmem:[#allocation5 + $0x98] sm:$0xff] }
  0x59   : > { %1767 = vmatpush.bf16.msrb.mxu2 %v6056_v47  ;;  %v6718_v47 = vld [vmem:[%s6578_s30 + $0xc8] sm:$0xff] }
  0x5a   : > { %2000 = vmatpush.bf16.msrb.mxu3 %v6016_v48  ;;  %2089 = vmatpush.bf16.msrb.mxu0 %v6024_v51  ;;  %v1067_v48 = vpack.c.bf16 %v6707_v38, %v6707_v38 }
  0x5b   : > { %2178 = vmatpush.bf16.msrb.mxu1 %v6032_v35 }
  0x5c   : > { %v1339_v54 = vunpack.c.l.b16 %v1067_v48  ;;  %v862_v48 = vld [vmem:[%s6578_s30 + $0xe8] sm:$0xff] }
  0x5d   : > { %1768 = vmatpush.bf16.msrb.mxu2 %v6055_v52  ;;  %v1083_v52 = vpack.c.bf16 %v6715_v46, %v6715_v46 }
  0x5e   : > { %2001 = vmatpush.bf16.msrb.mxu3 %v6015_v53  ;;  %2090 = vmatpush.bf16.msrb.mxu0 %v6023_v56  ;;  %v1084_v53 = vpack.c.bf16 %v6718_v47, %v6718_v47 }
  0x5f   : > { %v1355_v56 = vunpack.c.l.b16 %v1083_v52  ;;  %v6018_v52 = vld [vmem:[#allocation5 + $0x40] sm:$0xff] }
  0x60   : > { %v1356_v57 = vunpack.c.l.b16 %v1084_v53  ;;  %v1071_v53 = vpack.c.bf16 %v6755_v33, %v6755_v33 }
  0x61   : > { %1769 = vmatpush.bf16.msrb.mxu2 %v6054_v61 }
  0x62   : > { %2002 = vmatpush.bf16.msrb.mxu3 %v6014_v62  ;;  %2091 = vmatpush.bf16.msrb.mxu0 %v6022_v63  ;;  %v6730_v61 = vpack.c.b16 %v1356_v57, %v1355_v56  ;;  %v6735_v62 = vld [vmem:[%s6578_s30 + $0x50] sm:$0xff]  ;;  %v6738_v63 = vld [vmem:[%s6578_s30 + $0x58] sm:$0xff]  ;;  %v1088_v56 = vpack.c.bf16 %v862_v48, %v862_v48  ;;  %v6030_v57 = vld [vmem:[#allocation5 + $0xa0] sm:$0xff] }
  0x63   : > { %10186 = vst [vmem:[#allocation21_spill] sm:$0xff] %v6738_v63  ;;  %v1069_v9 = vpack.c.bf16 %v6735_v62, %v6735_v62  ;;  %v1070_v10 = vpack.c.bf16 %v6738_v63, %v6738_v63  ;;  %v863_v48 = vld [vmem:[%s6578_s30 + $0xf0] sm:$0xff] }
  0x64   : > { %1601 = vmatmul.bf16.gmra.mxu0 %v1361_v44  ;;  %1641 = vmatmul.bf16.gmra.mxu2 %v6632_v45  ;;  %v6712_v44 = vld [vmem:[%s6578_s30 + $0x48] sm:$0xff] }
  0x65   : > { %1690 = vmatmul.bf16.gmra.mxu1 %v6628_v42  ;;  %1770 = vmatpush.bf16.msrb.mxu2 %v6053_v22  ;;  %10185 = vst [vmem:[#allocation20_spill] sm:$0xff] %v6712_v44  ;;  %v1068_v51 = vpack.c.bf16 %v6712_v44, %v6712_v44  ;;  %v1085_v22 = vpack.c.bf16 %v859_v6, %v859_v6  ;;  %v1342_v28 = vunpack.c.l.b16 %v1070_v10  ;;  %v1360_v6 = vunpack.c.l.b16 %v1088_v56 }
  0x66   : > { %2003 = vmatpush.bf16.msrb.mxu3 %v6013_v23  ;;  %2092 = vmatpush.bf16.msrb.mxu0 %v6021_v24  ;;  %v1086_v23 = vpack.c.bf16 %v860_v7, %v860_v7  ;;  %v1341_v24 = vunpack.c.l.b16 %v1069_v9  ;;  %v224_v7 = vlaneseq }
  0x67   : > { %1730 = vmatmul.bf16.gmra.mxu3 %v6647_v59  ;;  %v1340_v55 = vunpack.c.l.b16 %v1068_v51  ;;  %v1357_v29 = vunpack.c.l.b16 %v1085_v22  ;;  %v6031_v51 = vld [vmem:[#allocation5 + $0xa8] sm:$0xff] }
  0x68   : > { %v1358_v30 = vunpack.c.l.b16 %v1086_v23  ;;  %v6748_v31 = vpack.c.b16 %v1342_v28, %v1341_v24  ;;  %2179 = vmatpush.bf16.msrb.mxu1 %v6031_v51  ;;  %v6772_v22 = vshrl.u32 %v224_v7, 7  ;;  %v9980_v23 = vrot.slane %v6651_v60, 1 }
  0x69   : > { %1771 = vmatpush.bf16.msrb.mxu2 %v6052_v39  ;;  %v6728_v58 = vpack.c.b16 %v1340_v55, %v1339_v54  ;;  %v861_v39 = vld [vmem:[%s6578_s30 + $0xe0] sm:$0xff]  ;;  %v1072_v54 = vpack.c.bf16 %v6758_v34, %v6758_v34  ;;  %v933_v24 = vrot.slane %v6592_v13, 1  ;;  %v866_v28 = vrot.slane %v6604_v17, 7 }
  0x6a   : > { %2004 = vmatpush.bf16.msrb.mxu3 %v6012_v40  ;;  %2093 = vmatpush.bf16.msrb.mxu0 %v6020_v41  ;;  %v6750_v32 = vpack.c.b16 %v1358_v30, %v1357_v29  ;;  %v6050_v40 = vld [vmem:[#allocation5 + $0x140] sm:$0xff]  ;;  %v1087_v55 = vpack.c.bf16 %v861_v39, %v861_v39  ;;  %10188 = vst [vmem:[#allocation23_spill] sm:$0xff] %v6772_v22  ;;  %v931_v29 = vrot.slane %v6604_v17, 1  ;;  %v932_v30 = vrot.slane %v6589_v12, 1 }
  0x6b   : > { %v6010_v41 = vld [vmem:[#allocation5] sm:$0xff]  ;;  %vm10046_vm0 = vcmp.lt.s32.totalorder %v6772_v22, 7  ;;  %v228_v35 = vadd.s32 24, %v6772_v22  ;;  %v867_v39 = vrot.slane %v6589_v12, 7  ;;  %vm10070_vm1 = vcmp.lt.s32.totalorder %v6772_v22, 1 }
  0x6c   : > { %2180 = vmatpush.bf16.msrb.mxu1 %v6030_v57  ;;  %v990_v17 = vsel %vm10046_vm0, %v933_v24, %v9980_v23  ;;  %v226_v51 = vadd.s32 8, %v6772_v22  ;;  %v992_v12 = vsel %vm10046_vm0, %v931_v29, %v932_v30 }
  0x6d   : > { %1772 = vmatpush.bf16.msrb.mxu2 %v6051_v3  ;;  %v1343_v3 = vunpack.c.l.b16 %v1071_v53  ;;  %v6065_v53 = vld [vmem:[#allocation5 + $0x1b8] sm:$0xff]  ;;  %v282_v56 = vand.u32 15, %v228_v35  ;;  %v10193_v35 = vmov 0 }
  0x6e   : > { %2005 = vmatpush.bf16.msrb.mxu3 %v6011_v4  ;;  %2094 = vmatpush.bf16.msrb.mxu0 %v6019_v5  ;;  %v1344_v4 = vunpack.c.l.b16 %v1072_v54  ;;  %v1359_v5 = vunpack.c.l.b16 %v1087_v55  ;;  %v6073_v54 = vld [vmem:[#allocation5 + $0x1f8] sm:$0xff]  ;;  %v268_v57 = vand.u32 15, %v226_v51  ;;  %v227_v51 = vadd.s32 16, %v6772_v22 }
  0x6f   : > { %v6798_v55 = vld [vmem:[%s6578_s30 + $0xf8] sm:$0xff]  ;;  %vm6800_vm2 = vcmp.eq.s32.totalorder %v282_v56, 15 }
  0x70   : > { %v6768_v9 = vpack.c.b16 %v1344_v4, %v1343_v3  ;;  %v6770_v10 = vpack.c.b16 %v1360_v6, %v1359_v5  ;;  %2181 = vmatpush.bf16.msrb.mxu1 %v6029_v8  ;;  %v1089_v3 = vpack.c.bf16 %v863_v48, %v863_v48  ;;  %v10189_v4 = vmov 0  ;;  %v6027_v6 = vld [vmem:[#allocation5 + $0x88] sm:$0xff] }
  0x71   : > { %1773 = vmatpush.bf16.msrb.mxu2 %v6050_v40  ;;  %v9981_v40 = vrot.slane %v6592_v13, 7  ;;  %v10190_v4 = vsel %vm6800_vm2, 4294967295, %v10189_v4  ;;  %v1090_v7 = vpack.c.bf16 %v6798_v55, %v6798_v55  ;;  %vm6814_vm3 = vcmp.eq.s32.totalorder %v268_v57, 15 }
  0x72   : > { %2006 = vmatpush.bf16.msrb.mxu3 %v6010_v41  ;;  %2095 = vmatpush.bf16.msrb.mxu0 %v6018_v52  ;;  %v6028_v41 = vld [vmem:[#allocation5 + $0x90] sm:$0xff]  ;;  %v865_v52 = vrot.slane %v6601_v16, 7  ;;  %10191 = vst [vmem:[#allocation24_spill] sm:$0xff] %v10190_v4  ;;  %v10194_v35 = vsel %vm6814_vm3, 4294967295, %v10193_v35  ;;  %v1391_v56 = vunpack.c.l.b16 %v1089_v3  ;;  %v9984_v57 = vrot.slane %v6798_v55, 7 }
  0x73   : > { %v926_v5 = vsel %vm10070_vm1, %v867_v39, %v9981_v40  ;;  %10195 = vst [vmem:[#allocation26_spill] sm:$0xff] %v10194_v35  ;;  %v1392_v23 = vunpack.c.l.b16 %v1090_v7  ;;  %v261_v40 = vand.u32 15, %v6772_v22  ;;  %v275_v4 = vand.u32 15, %v227_v51 }
  0x74   : > { %1606 = vmatmul.bf16.gmra.mxu0 %v6628_v42  ;;  %1646 = vmatmul.bf16.gmra.mxu2 %v6647_v59  ;;  %v6812_v8 = vsel %vm6800_vm2, %v926_v5, %v990_v17  ;;  %v9983_v17 = vrot.slane %v6601_v16, 1  ;;  %v929_v3 = vsel %vm10070_vm1, %v9984_v57, %v865_v52  ;;  %v10199_v7 = vmov 0 }
  0x75   : > { %1695 = vmatmul.bf16.gmra.mxu1 %v6672_v11  ;;  %2555 = vmatpush.bf16.msra.mxu2 %v6065_v53  ;;  %10192 = vst [vmem:[#allocation25_spill] sm:$0xff] %v6812_v8  ;;  %v6081_v53 = vld [vmem:[#allocation5 + $0x238] sm:$0xff]  ;;  %v6828_v8 = vpack.c.b16 %v1392_v23, %v1391_v56  ;;  %vm6830_vm4 = vcmp.eq.s32.totalorder %v261_v40, 0  ;;  %vm6844_vm5 = vcmp.eq.s32.totalorder %v275_v4, 0  ;;  %v927_v23 = vsel %vm10070_vm1, %v866_v28, %v867_v39 }
  0x76   : > { %2182 = vmatpush.bf16.msrb.mxu1 %v6028_v41  ;;  %2644 = vmatpush.bf16.msra.mxu3 %v6073_v54  ;;  %v928_v41 = vsel %vm10070_vm1, %v865_v52, %v866_v28  ;;  %v6026_v54 = vld [vmem:[#allocation5 + $0x80] sm:$0xff]  ;;  %v10200_v7 = vsel %vm6844_vm5, 4294967295, %v10199_v7  ;;  %v6852_v40 = vsel %vm10046_vm0, %v932_v30, %v933_v24  ;;  %v1030_v30 = vpack.c.bf16 %v926_v5, %v926_v5 }
  0x77   : > { %1735 = vmatmul.bf16.gmra.mxu3 %v6674_v20  ;;  %v6822_v48 = vsel %vm6814_vm3, %v928_v41, %v992_v12  ;;  %2733 = vmatpush.bf16.msra.mxu0 %v6081_v53  ;;  %v10196_v12 = vmov 0  ;;  %10201 = vst [vmem:[#allocation28_spill] sm:$0xff] %v10200_v7  ;;  %v997_v28 = vsel %vm6844_vm5, %v6852_v40, %v927_v23  ;;  %v229_v4 = vadd.s32 32, %v6772_v22 }
  0x78   : > { %v10197_v12 = vsel %vm6830_vm4, 4294967295, %v10196_v12  ;;  %v1028_v52 = vpack.c.bf16 %v928_v41, %v928_v41  ;;  %v1029_v24 = vpack.c.bf16 %v997_v28, %v997_v28  ;;  %v1158_v56 = vunpack.c.l.b16 %v1030_v30 }
  0x79   : > { %10198 = vst [vmem:[#allocation27_spill] sm:$0xff] %v10197_v12  ;;  %v869_v57 = vrot.slane %v6651_v60, 7  ;;  %v9988_v12 = vrot.slane %v6656_v0, 1  ;;  %v870_v41 = vrot.slane %v6656_v0, 7  ;;  %v10202_v5 = vmov 0 }
  0x7a   : > { %2183 = vmatpush.bf16.msrb.mxu1 %v6027_v6  ;;  %v6842_v6 = vsel %vm10046_vm0, %v9983_v17, %v931_v29  ;;  %v1190_v53 = vunpack.c.l.b16 %v1028_v52  ;;  %v289_v17 = vand.u32 15, %v229_v4  ;;  %v10205_v28 = vrot.slane %v6592_v13, 7  ;;  %v6072_v13 = vld [vmem:[#allocation5 + $0x1f0] sm:$0xff] }
  0x7b   : > { %v995_v29 = vsel %vm6830_vm4, %v6842_v6, %v929_v3  ;;  %v10206_v52 = vrot.slane %v6651_v60, 1  ;;  %2645 = vmatpush.bf16.msra.mxu3 %v6072_v13  ;;  %v871_v13 = vrot.slane %v6679_v21, 7  ;;  %vm10270_vm2 = vcmp.lt.s32.totalorder %v6772_v22, 7 }
  0x7c   : > { %v1027_v39 = vpack.c.bf16 %v995_v29, %v995_v29  ;;  %vm6872_vm6 = vcmp.eq.s32.totalorder %v289_v17, 0  ;;  %v6893_v17 = vsel %vm10070_vm1, %v869_v57, %v870_v41 }
  0x7d   : > { %v10203_v5 = vsel %vm6872_vm6, 4294967295, %v10202_v5 }
  0x7e   : > { %2184 = vmatpush.bf16.msrb.mxu1 %v6026_v54  ;;  %v1189_v51 = vunpack.c.l.b16 %v1027_v39  ;;  %v1157_v54 = vunpack.c.l.b16 %v1029_v24  ;;  %10204 = vst [vmem:[#allocation29_spill] sm:$0xff] %v10203_v5  ;;  %v925_v39 = vsel %vm10070_vm1, %v10205_v28, %v869_v57  ;;  %v6886_v24 = vsel %vm10046_vm0, %v10206_v52, %v9988_v12  ;;  %v6080_v57 = vld [vmem:[#allocation5 + $0x230] sm:$0xff] }
  0x7f   : > { %10207 = vst [vmem:[#allocation30_spill] sm:$0xff] %v6886_v24  ;;  %v999_v60 = vsel %vm6872_vm6, %v6886_v24, %v925_v39  ;;  %v231_v28 = vadd.s32 48, %v6772_v22  ;;  %2734 = vmatpush.bf16.msra.mxu0 %v6080_v57  ;;  %v872_v24 = vrot.slane %v6684_v25, 7  ;;  %v923_v57 = vsel %vm10070_vm1, %v870_v41, %v871_v13 }
  0x80   : > { %v1217_v3 = vpack.c.b16 %v1190_v53, %v1189_v51  ;;  %v6867_v16 = vpack.c.b16 %v1158_v56, %v1157_v54  ;;  %v1031_v53 = vpack.c.bf16 %v999_v60, %v999_v60  ;;  %v1032_v54 = vpack.c.bf16 %v6893_v17, %v6893_v17 }
  0x81   : > { %v9992_v60 = vrot.slane %v6684_v25, 1 }
  0x82   : > { %v1191_v52 = vunpack.c.l.b16 %v1031_v53  ;;  %v1192_v12 = vunpack.c.l.b16 %v1032_v54  ;;  %v10209_v54 = vmov 0 }
  0x84   : > { %1611 = vmatmul.bf16.gmra.mxu0 %v6672_v11  ;;  %1651 = vmatmul.bf16.gmra.mxu2 %v6674_v20 }
  0x85   : > { %1700 = vmatmul.bf16.gmra.mxu1 %v6700_v36 }
  0x87   : > { %1740 = vmatmul.bf16.gmra.mxu3 %v6702_v37 }
  0x94   : > { %1616 = vmatmul.bf16.gmra.mxu0 %v6700_v36  ;;  %1656 = vmatmul.bf16.gmra.mxu2 %v6702_v37 }
  0x95   : > { %1705 = vmatmul.bf16.gmra.mxu1 %v6728_v58 }
  0x97   : > { %1745 = vmatmul.bf16.gmra.mxu3 %v6730_v61 }
  0xa4   : > { %1621 = vmatmul.bf16.gmra.mxu0 %v6728_v58  ;;  %1661 = vmatmul.bf16.gmra.mxu2 %v6730_v61 }
  0xa5   : > { %1710 = vmatmul.bf16.gmra.mxu1 %v6748_v31 }
  0xa7   : > { %1750 = vmatmul.bf16.gmra.mxu3 %v6750_v32 }
  0xb4   : > { %1626 = vmatmul.bf16.gmra.mxu0 %v6748_v31  ;;  %1666 = vmatmul.bf16.gmra.mxu2 %v6750_v32 }
  0xb5   : > { %1715 = vmatmul.bf16.gmra.mxu1 %v6768_v9 }
  0xb7   : > { %1755 = vmatmul.bf16.gmra.mxu3 %v6770_v10 }
  0xc4   : > { %1631 = vmatmul.bf16.gmra.mxu0 %v6768_v9  ;;  %1671 = vmatmul.bf16.gmra.mxu2 %v6770_v10 }
  0xc5   : > { %1720 = vmatmul.bf16.gmra.mxu1 %v6630_v43 }
  0xc7   : > { %1760 = vmatmul.bf16.gmra.mxu3 %v6828_v8 }
  0xd1   : > { %v1597_v35 = vpop.f32.mrf.mxu0 }
  0xd2   : > { %v1686_v23 = vpop.f32.mrf.mxu1 }
  0xd3   : > { %v6870_v29 = vadd.f32 %v1686_v23, %v1597_v35  ;;  %v6064_v35 = vld [vmem:[#allocation5 + $0x1b0] sm:$0xff] }
  0xd4   : > { %1774 = vmatmul.bf16.vlgmr.msrb.gmra.mxu2 %v6628_v42  ;;  %2096 = vmatmul.bf16.vlgmr.msrb.gmra.mxu0 %v1217_v3 }
  0xd5   : > { %2185 = vmatmul.bf16.vlgmr.msrb.gmra.mxu1 %v6867_v16  ;;  %2556 = vmatpush.bf16.msra.mxu2 %v6064_v35  ;;  %v303_v35 = vand.u32 15, %v231_v28 }
  0xd7   : > { %2007 = vmatmul.bf16.vlgmr.msrb.gmra.mxu3 %v6867_v16  ;;  %v1637_v30 = vpop.f32.mrf.mxu2  ;;  %vm6915_vm7 = vcmp.eq.s32.totalorder %v303_v35, 0 }
  0xd8   : > { %v10210_v54 = vsel %vm6915_vm7, 4294967295, %v10209_v54 }
  0xd9   : > { %v1599_v51 = vpop.f32.mrf.mxu0  ;;  %10211 = vst [vmem:[#allocation32_spill] sm:$0xff] %v10210_v54  ;;  %v9999_v54 = vrot.slane %v6707_v38, 1 }
  0xda   : > { %v1726_v4 = vpop.f32.mrf.mxu3  ;;  %v1688_v56 = vpop.f32.mrf.mxu1 }
  0xdb   : > { %v6898_v42 = vadd.f32 %v1726_v4, %v1637_v30  ;;  %v6902_v23 = vadd.f32 %v1688_v56, %v1599_v51  ;;  %v9993_v30 = vrot.slane %v6679_v21, 1  ;;  %v6910_v51 = vpack.c.b16 %v1192_v12, %v1191_v52 }
  0xdd   : > { %v6927_v12 = vsel %vm10046_vm0, %v9993_v30, %v9992_v60  ;;  %v233_v60 = vadd.s32 64, %v6772_v22 }
  0xde   : > { %10212 = vst [vmem:[#allocation33_spill] sm:$0xff] %v6927_v12  ;;  %v1001_v41 = vsel %vm6915_vm7, %v6927_v12, %v923_v57  ;;  %v873_v57 = vrot.slane %v6707_v38, 7 }
  0xdf   : > { %v1639_v39 = vpop.f32.mrf.mxu2 }
  0xe1   : > { %v1602_v7 = vpop.f32.mrf.mxu0 }
  0xe2   : > { %v1728_v4 = vpop.f32.mrf.mxu3  ;;  %v1691_v56 = vpop.f32.mrf.mxu1 }
  0xe3   : > { %v6908_v5 = vadd.f32 %v1728_v4, %v1639_v39  ;;  %v6913_v53 = vadd.f32 %v1691_v56, %v1602_v7  ;;  %v6934_v7 = vsel %vm10070_vm1, %v871_v13, %v872_v24  ;;  %v1033_v4 = vpack.c.bf16 %v1001_v41, %v1001_v41 }
  0xe4   : > { %1779 = vmatmul.bf16.gmra.mxu2 %v6672_v11  ;;  %2101 = vmatmul.bf16.gmra.mxu0 %v6867_v16  ;;  %10213 = vst [vmem:[#allocation34_spill] sm:$0xff] %v6934_v7  ;;  %v1034_v11 = vpack.c.bf16 %v6934_v7, %v6934_v7 }
  0xe5   : > { %10208 = vst [vmem:[#allocation31_spill] sm:$0xff] %v6908_v5  ;;  %2190 = vmatmul.bf16.gmra.mxu1 %v6910_v51  ;;  %v1193_v13 = vunpack.c.l.b16 %v1033_v4  ;;  %v317_v5 = vand.u32 15, %v233_v60  ;;  %v10216_v4 = vmov 0  ;;  %v921_v60 = vsel %vm10070_vm1, %v872_v24, %v873_v57 }
  0xe6   : > { %v1194_v30 = vunpack.c.l.b16 %v1034_v11 }
  0xe7   : > { %2012 = vmatmul.bf16.gmra.mxu3 %v1217_v3  ;;  %v1642_v28 = vpop.f32.mrf.mxu2  ;;  %vm6956_vm8 = vcmp.eq.s32.totalorder %v317_v5, 0  ;;  %v6063_v5 = vld [vmem:[#allocation5 + $0x1a8] sm:$0xff] }
  0xe8   : > { %v10217_v4 = vsel %vm6956_vm8, 4294967295, %v10216_v4  ;;  %2557 = vmatpush.bf16.msra.mxu2 %v6063_v5 }
  0xe9   : > { %v1604_v35 = vpop.f32.mrf.mxu0  ;;  %10218 = vst [vmem:[#allocation37_spill] sm:$0xff] %v10217_v4 }
  0xea   : > { %v1731_v52 = vpop.f32.mrf.mxu3  ;;  %v1693_v3 = vpop.f32.mrf.mxu1 }
  0xeb   : > { %v6939_v39 = vadd.f32 %v1731_v52, %v1642_v28  ;;  %v6943_v56 = vadd.f32 %v1693_v3, %v1604_v35  ;;  %v9998_v28 = vrot.slane %v6712_v44, 1  ;;  %v874_v3 = vrot.slane %v6712_v44, 7 }
  0xec   : > { %v235_v44 = vadd.s32 80, %v6772_v22 }
  0xed   : > { %10214 = vst [vmem:[#allocation35_spill] sm:$0xff] %v6939_v39  ;;  %v6951_v39 = vpack.c.b16 %v1194_v30, %v1193_v13  ;;  %v6071_v30 = vld [vmem:[#allocation5 + $0x1e8] sm:$0xff]  ;;  %v6976_v24 = vsel %vm10070_vm1, %v873_v57, %v874_v3 }
  0xee   : > { %10220 = vst [vmem:[#allocation39_spill] sm:$0xff] %v6976_v24  ;;  %2646 = vmatpush.bf16.msra.mxu3 %v6071_v30  ;;  %v6079_v57 = vld [vmem:[#allocation5 + $0x228] sm:$0xff]  ;;  %v331_v5 = vand.u32 15, %v235_v44  ;;  %v875_v30 = vrot.slane %v6735_v62, 7 }
  0xef   : > { %v1644_v25 = vpop.f32.mrf.mxu2  ;;  %2735 = vmatpush.bf16.msra.mxu0 %v6079_v57 }
  0xf0   : > { %vm6998_vm9 = vcmp.eq.s32.totalorder %v331_v5, 0  ;;  %v919_v44 = vsel %vm10070_vm1, %v874_v3, %v875_v30 }
  0xf1   : > { %v1607_v12 = vpop.f32.mrf.mxu0 }
  0xf2   : > { %v1733_v52 = vpop.f32.mrf.mxu3  ;;  %v1696_v35 = vpop.f32.mrf.mxu1 }
  0xf3   : > { %v6949_v41 = vadd.f32 %v1733_v52, %v1644_v25  ;;  %v6954_v7 = vadd.f32 %v1696_v35, %v1607_v12  ;;  %v6968_v25 = vsel %vm10046_vm0, %v9999_v54, %v9998_v28  ;;  %v1036_v35 = vpack.c.bf16 %v6976_v24, %v6976_v24 }
  0xf4   : > { %10219 = vst [vmem:[#allocation38_spill] sm:$0xff] %v6968_v25  ;;  %1784 = vmatmul.bf16.gmra.mxu2 %v6700_v36  ;;  %2106 = vmatmul.bf16.gmra.mxu0 %v6910_v51  ;;  %v1003_v12 = vsel %vm6956_vm8, %v6968_v25, %v921_v60  ;;  %v876_v24 = vrot.slane %v6738_v63, 7 }
  0xf5   : > { %10215 = vst [vmem:[#allocation36_spill] sm:$0xff] %v6949_v41  ;;  %2195 = vmatmul.bf16.gmra.mxu1 %v6951_v39  ;;  %v1196_v4 = vunpack.c.l.b16 %v1036_v35  ;;  %v10223_v35 = vmov 0 }
  0xf6   : > { %v10224_v35 = vsel %vm6998_vm9, 4294967295, %v10223_v35 }
  0xf7   : > { %2017 = vmatmul.bf16.gmra.mxu3 %v6867_v16  ;;  %v1647_v11 = vpop.f32.mrf.mxu2  ;;  %v1035_v16 = vpack.c.bf16 %v1003_v12, %v1003_v12  ;;  %v10004_v12 = vrot.slane %v6738_v63, 1  ;;  %10225 = vst [vmem:[#allocation42_spill] sm:$0xff] %v10224_v35  ;;  %v10011_v35 = vrot.slane %v6755_v33, 1 }
  0xf9   : > { %v1609_v52 = vpop.f32.mrf.mxu0  ;;  %v1195_v41 = vunpack.c.l.b16 %v1035_v16 }
  0xfa   : > { %v1736_v36 = vpop.f32.mrf.mxu3  ;;  %v1698_v28 = vpop.f32.mrf.mxu1 }
  0xfb   : > { %v6981_v13 = vadd.f32 %v1736_v36, %v1647_v11  ;;  %v6985_v54 = vadd.f32 %v1698_v28, %v1609_v52  ;;  %v10005_v11 = vrot.slane %v6735_v62, 1  ;;  %v6993_v28 = vpack.c.b16 %v1196_v4, %v1195_v41 }
  0xfc   : > { %v7018_v4 = vsel %vm10070_vm1, %v875_v30, %v876_v24 }
  0xfd   : > { %10221 = vst [vmem:[#allocation40_spill] sm:$0xff] %v6981_v13  ;;  %v7010_v41 = vsel %vm10046_vm0, %v10005_v11, %v10004_v12  ;;  %v237_v12 = vadd.s32 96, %v6772_v22 }
  0xfe   : > { %10226 = vst [vmem:[#allocation43_spill] sm:$0xff] %v7010_v41  ;;  %v1005_v3 = vsel %vm6998_vm9, %v7010_v41, %v919_v44  ;;  %v877_v44 = vrot.slane %v6755_v33, 7 }
  0xff   : > { %v1649_v60 = vpop.f32.mrf.mxu2  ;;  %10227 = vst [vmem:[#allocation44_spill] sm:$0xff] %v7018_v4 }
 0x101   : > { %v1612_v13 = vpop.f32.mrf.mxu0 }
 0x102   : > { %v1738_v36 = vpop.f32.mrf.mxu3  ;;  %v1701_v52 = vpop.f32.mrf.mxu1 }
 0x103   : > { %v6991_v25 = vadd.f32 %v1738_v36, %v1649_v60  ;;  %v6996_v16 = vadd.f32 %v1701_v52, %v1612_v13  ;;  %v1038_v36 = vpack.c.bf16 %v7018_v4, %v7018_v4 }
 0x104   : > { %1789 = vmatmul.bf16.gmra.mxu2 %v6728_v58  ;;  %2111 = vmatmul.bf16.gmra.mxu0 %v6951_v39  ;;  %v1037_v58 = vpack.c.bf16 %v1005_v3, %v1005_v3 }
 0x105   : > { %10222 = vst [vmem:[#allocation41_spill] sm:$0xff] %v6991_v25  ;;  %2200 = vmatmul.bf16.gmra.mxu1 %v6993_v28  ;;  %v1198_v11 = vunpack.c.l.b16 %v1038_v36  ;;  %v345_v25 = vand.u32 15, %v237_v12  ;;  %v917_v12 = vsel %vm10070_vm1, %v876_v24, %v877_v44 }
 0x106   : > { %v1197_v30 = vunpack.c.l.b16 %v1037_v58  ;;  %v10230_v58 = vmov 0 }
 0x107   : > { %2022 = vmatmul.bf16.gmra.mxu3 %v6910_v51  ;;  %v1652_v13 = vpop.f32.mrf.mxu2  ;;  %vm7040_vm10 = vcmp.eq.s32.totalorder %v345_v25, 0  ;;  %v6062_v25 = vld [vmem:[#allocation5 + $0x1a0] sm:$0xff] }
 0x108   : > { %v10231_v58 = vsel %vm7040_vm10, 4294967295, %v10230_v58  ;;  %2558 = vmatpush.bf16.msra.mxu2 %v6062_v25 }
 0x109   : > { %v1614_v5 = vpop.f32.mrf.mxu0  ;;  %10232 = vst [vmem:[#allocation47_spill] sm:$0xff] %v10231_v58 }
 0x10a   : > { %v1741_v57 = vpop.f32.mrf.mxu3  ;;  %v1703_v51 = vpop.f32.mrf.mxu1 }
 0x10b   : > { %v7023_v60 = vadd.f32 %v1741_v57, %v1652_v13  ;;  %v7027_v52 = vadd.f32 %v1703_v51, %v1614_v5  ;;  %v10010_v13 = vrot.slane %v6758_v34, 1  ;;  %v878_v51 = vrot.slane %v6758_v34, 7 }
 0x10c   : > { %v239_v34 = vadd.s32 112, %v6772_v22 }
 0x10d   : > { %10228 = vst [vmem:[#allocation45_spill] sm:$0xff] %v7023_v60  ;;  %v7035_v60 = vpack.c.b16 %v1198_v11, %v1197_v30  ;;  %v6070_v11 = vld [vmem:[#allocation5 + $0x1e0] sm:$0xff]  ;;  %v7060_v24 = vsel %vm10070_vm1, %v877_v44, %v878_v51 }
 0x10e   : > { %10234 = vst [vmem:[#allocation49_spill] sm:$0xff] %v7060_v24  ;;  %2647 = vmatpush.bf16.msra.mxu3 %v6070_v11  ;;  %v6078_v44 = vld [vmem:[#allocation5 + $0x220] sm:$0xff]  ;;  %v359_v25 = vand.u32 15, %v239_v34  ;;  %v879_v11 = vrot.slane %v6595_v14, 7 }
 0x10f   : > { %v1654_v63 = vpop.f32.mrf.mxu2  ;;  %2736 = vmatpush.bf16.msra.mxu0 %v6078_v44 }
 0x110   : > { %vm7082_vm11 = vcmp.eq.s32.totalorder %v359_v25, 0  ;;  %v915_v34 = vsel %vm10070_vm1, %v878_v51, %v879_v11 }
 0x111   : > { %v1617_v41 = vpop.f32.mrf.mxu0 }
 0x112   : > { %v1743_v57 = vpop.f32.mrf.mxu3  ;;  %v1706_v5 = vpop.f32.mrf.mxu1 }
 0x113   : > { %v7033_v3 = vadd.f32 %v1743_v57, %v1654_v63  ;;  %v7038_v4 = vadd.f32 %v1706_v5, %v1617_v41  ;;  %v7052_v63 = vsel %vm10046_vm0, %v10011_v35, %v10010_v13  ;;  %v1040_v5 = vpack.c.bf16 %v7060_v24, %v7060_v24 }
 0x114   : > { %10233 = vst [vmem:[#allocation48_spill] sm:$0xff] %v7052_v63  ;;  %1794 = vmatmul.bf16.gmra.mxu2 %v6748_v31  ;;  %2116 = vmatmul.bf16.gmra.mxu0 %v6993_v28  ;;  %v1007_v41 = vsel %vm7040_vm10, %v7052_v63, %v917_v12  ;;  %v880_v24 = vrot.slane %v6598_v15, 7  ;;  %vm10344_vm10 = vcmp.lt.s32.totalorder %v6772_v22, 7 }
 0x115   : > { %10229 = vst [vmem:[#allocation46_spill] sm:$0xff] %v7033_v3  ;;  %2205 = vmatmul.bf16.gmra.mxu1 %v7035_v60  ;;  %v1200_v58 = vunpack.c.l.b16 %v1040_v5  ;;  %v10237_v5 = vmov 0 }
 0x116   : > { %v10238_v5 = vsel %vm7082_vm11, 4294967295, %v10237_v5 }
 0x117   : > { %2027 = vmatmul.bf16.gmra.mxu3 %v6951_v39  ;;  %v1657_v36 = vpop.f32.mrf.mxu2  ;;  %v1039_v39 = vpack.c.bf16 %v1007_v41, %v1007_v41  ;;  %v10016_v41 = vrot.slane %v6598_v15, 1  ;;  %10239 = vst [vmem:[#allocation52_spill] sm:$0xff] %v10238_v5  ;;  %v10023_v5 = vrot.slane %v6607_v18, 1 }
 0x119   : > { %v1619_v57 = vpop.f32.mrf.mxu0  ;;  %v1199_v3 = vunpack.c.l.b16 %v1039_v39 }
 0x11a   : > { %v1746_v31 = vpop.f32.mrf.mxu3  ;;  %v1708_v13 = vpop.f32.mrf.mxu1 }
 0x11b   : > { %v7065_v30 = vadd.f32 %v1746_v31, %v1657_v36  ;;  %v7069_v35 = vadd.f32 %v1708_v13, %v1619_v57  ;;  %v10017_v36 = vrot.slane %v6595_v14, 1  ;;  %v7077_v13 = vpack.c.b16 %v1200_v58, %v1199_v3 }
 0x11c   : > { %v7102_v58 = vsel %vm10070_vm1, %v879_v11, %v880_v24 }
 0x11d   : > { %10235 = vst [vmem:[#allocation50_spill] sm:$0xff] %v7065_v30  ;;  %v7094_v3 = vsel %vm10046_vm0, %v10017_v36, %v10016_v41  ;;  %v241_v41 = vadd.s32 128, %v6772_v22 }
 0x11e   : > { %10240 = vst [vmem:[#allocation53_spill] sm:$0xff] %v7094_v3  ;;  %v1009_v51 = vsel %vm7082_vm11, %v7094_v3, %v915_v34  ;;  %v881_v34 = vrot.slane %v6607_v18, 7  ;;  %vm10333_vm11 = vcmp.lt.s32.totalorder %v6772_v22, 7 }
 0x11f   : > { %v1659_v12 = vpop.f32.mrf.mxu2  ;;  %10241 = vst [vmem:[#allocation54_spill] sm:$0xff] %v7102_v58 }
 0x121   : > { %v1622_v30 = vpop.f32.mrf.mxu0 }
 0x122   : > { %v1748_v31 = vpop.f32.mrf.mxu3  ;;  %v1711_v57 = vpop.f32.mrf.mxu1 }
 0x123   : > { %v7075_v63 = vadd.f32 %v1748_v31, %v1659_v12  ;;  %v7080_v39 = vadd.f32 %v1711_v57, %v1622_v30  ;;  %v1042_v31 = vpack.c.bf16 %v7102_v58, %v7102_v58 }
 0x124   : > { %1799 = vmatmul.bf16.gmra.mxu2 %v6768_v9  ;;  %2121 = vmatmul.bf16.gmra.mxu0 %v7035_v60  ;;  %v1041_v9 = vpack.c.bf16 %v1009_v51, %v1009_v51 }
 0x125   : > { %10236 = vst [vmem:[#allocation51_spill] sm:$0xff] %v7075_v63  ;;  %2210 = vmatmul.bf16.gmra.mxu1 %v7077_v13  ;;  %v1202_v36 = vunpack.c.l.b16 %v1042_v31  ;;  %v373_v63 = vand.u32 15, %v241_v41  ;;  %v913_v41 = vsel %vm10070_vm1, %v880_v24, %v881_v34 }
 0x126   : > { %v1201_v11 = vunpack.c.l.b16 %v1041_v9  ;;  %v10244_v9 = vmov 0 }
 0x127   : > { %2032 = vmatmul.bf16.gmra.mxu3 %v6993_v28  ;;  %v1662_v30 = vpop.f32.mrf.mxu2  ;;  %vm7124_vm12 = vcmp.eq.s32.totalorder %v373_v63, 0  ;;  %v6061_v63 = vld [vmem:[#allocation5 + $0x198] sm:$0xff] }
 0x128   : > { %v10245_v9 = vsel %vm7124_vm12, 4294967295, %v10244_v9  ;;  %2559 = vmatpush.bf16.msra.mxu2 %v6061_v63 }
 0x129   : > { %v1624_v25 = vpop.f32.mrf.mxu0  ;;  %10246 = vst [vmem:[#allocation57_spill] sm:$0xff] %v10245_v9 }
 0x12a   : > { %v1751_v44 = vpop.f32.mrf.mxu3  ;;  %v1713_v28 = vpop.f32.mrf.mxu1 }
 0x12b   : > { %v7107_v12 = vadd.f32 %v1751_v44, %v1662_v30  ;;  %v7111_v57 = vadd.f32 %v1713_v28, %v1624_v25  ;;  %v10022_v30 = vrot.slane %v6610_v19, 1  ;;  %v882_v28 = vrot.slane %v6610_v19, 7 }
 0x12d   : > { %10242 = vst [vmem:[#allocation55_spill] sm:$0xff] %v7107_v12  ;;  %v7119_v12 = vpack.c.b16 %v1202_v36, %v1201_v11  ;;  %v6069_v36 = vld [vmem:[#allocation5 + $0x1d8] sm:$0xff]  ;;  %v7144_v24 = vsel %vm10070_vm1, %v881_v34, %v882_v28  ;;  %v243_v34 = vadd.s32 144, %v6772_v22 }
 0x12e   : > { %10248 = vst [vmem:[#allocation59_spill] sm:$0xff] %v7144_v24  ;;  %2648 = vmatpush.bf16.msra.mxu3 %v6069_v36  ;;  %v883_v36 = vrot.slane %v6638_v49, 7 }
 0x12f   : > { %v1664_v15 = vpop.f32.mrf.mxu2  ;;  %v387_v63 = vand.u32 15, %v243_v34 }
 0x131   : > { %v1627_v3 = vpop.f32.mrf.mxu0  ;;  %vm7166_vm13 = vcmp.eq.s32.totalorder %v387_v63, 0 }
 0x132   : > { %v1753_v44 = vpop.f32.mrf.mxu3  ;;  %v1716_v25 = vpop.f32.mrf.mxu1 }
 0x133   : > { %v7117_v51 = vadd.f32 %v1753_v44, %v1664_v15  ;;  %v7122_v58 = vadd.f32 %v1716_v25, %v1627_v3  ;;  %v7136_v15 = vsel %vm10046_vm0, %v10023_v5, %v10022_v30  ;;  %v1044_v25 = vpack.c.bf16 %v7144_v24, %v7144_v24  ;;  %v6077_v5 = vld [vmem:[#allocation5 + $0x218] sm:$0xff] }
 0x134   : > { %10247 = vst [vmem:[#allocation58_spill] sm:$0xff] %v7136_v15  ;;  %1804 = vmatmul.bf16.gmra.mxu2 %v6630_v43  ;;  %2126 = vmatmul.bf16.gmra.mxu0 %v7077_v13  ;;  %v1011_v3 = vsel %vm7124_vm12, %v7136_v15, %v913_v41  ;;  %vm10322_vm12 = vcmp.lt.s32.totalorder %v6772_v22, 7 }
 0x135   : > { %10243 = vst [vmem:[#allocation56_spill] sm:$0xff] %v7117_v51  ;;  %2215 = vmatmul.bf16.gmra.mxu1 %v7119_v12  ;;  %2737 = vmatpush.bf16.msra.mxu0 %v6077_v5  ;;  %v1204_v41 = vunpack.c.l.b16 %v1044_v25  ;;  %v911_v25 = vsel %vm10070_vm1, %v882_v28, %v883_v36 }
 0x137   : > { %2037 = vmatmul.bf16.gmra.mxu3 %v7035_v60  ;;  %v1667_v31 = vpop.f32.mrf.mxu2  ;;  %v1043_v60 = vpack.c.bf16 %v1011_v3, %v1011_v3  ;;  %v10028_v3 = vrot.slane %v6641_v50, 1 }
 0x139   : > { %v1629_v44 = vpop.f32.mrf.mxu0  ;;  %v1203_v9 = vunpack.c.l.b16 %v1043_v60  ;;  %v10251_v60 = vmov 0 }
 0x13a   : > { %v1756_v43 = vpop.f32.mrf.mxu3  ;;  %v1718_v30 = vpop.f32.mrf.mxu1  ;;  %v10252_v60 = vsel %vm7166_vm13, 4294967295, %v10251_v60 }
 0x13b   : > { %v7149_v11 = vadd.f32 %v1756_v43, %v1667_v31  ;;  %v7153_v19 = vadd.f32 %v1718_v30, %v1629_v44  ;;  %v10029_v31 = vrot.slane %v6638_v49, 1  ;;  %v7161_v51 = vpack.c.b16 %v1204_v41, %v1203_v9  ;;  %10253 = vst [vmem:[#allocation62_spill] sm:$0xff] %v10252_v60 }
 0x13c   : > { %v884_v44 = vrot.slane %v6641_v50, 7  ;;  %v10034_v60 = vrot.slane %v6659_v1, 1 }
 0x13d   : > { %10249 = vst [vmem:[#allocation60_spill] sm:$0xff] %v7149_v11  ;;  %v7178_v9 = vsel %vm10046_vm0, %v10029_v31, %v10028_v3  ;;  %v245_v3 = vadd.s32 160, %v6772_v22 }
 0x13e   : > { %10254 = vst [vmem:[#allocation63_spill] sm:$0xff] %v7178_v9  ;;  %v1013_v28 = vsel %vm7166_vm13, %v7178_v9, %v911_v25  ;;  %v885_v25 = vrot.slane %v6659_v1, 7  ;;  %vm10311_vm13 = vcmp.lt.s32.totalorder %v6772_v22, 7 }
 0x13f   : > { %v1669_v15 = vpop.f32.mrf.mxu2 }
 0x141   : > { %v1632_v24 = vpop.f32.mrf.mxu0 }
 0x142   : > { %v1758_v43 = vpop.f32.mrf.mxu3  ;;  %v1721_v30 = vpop.f32.mrf.mxu1 }
 0x143   : > { %v7159_v11 = vadd.f32 %v1758_v43, %v1669_v15  ;;  %v7164_v5 = vadd.f32 %v1721_v30, %v1632_v24  ;;  %v7186_v15 = vsel %vm10070_vm1, %v883_v36, %v884_v44 }
 0x144   : > { %1809 = vmatmul.bf16.gmra.mxu2 %v6632_v45  ;;  %2131 = vmatmul.bf16.gmra.mxu0 %v7119_v12  ;;  %10255 = vst [vmem:[#allocation64_spill] sm:$0xff] %v7186_v15  ;;  %v1045_v45 = vpack.c.bf16 %v1013_v28, %v1013_v28  ;;  %v1046_v43 = vpack.c.bf16 %v7186_v15, %v7186_v15  ;;  %v6076_v15 = vld [vmem:[#allocation5 + $0x210] sm:$0xff] }
 0x145   : > { %10250 = vst [vmem:[#allocation61_spill] sm:$0xff] %v7159_v11  ;;  %2220 = vmatmul.bf16.gmra.mxu1 %v7161_v51  ;;  %v401_v11 = vand.u32 15, %v245_v3  ;;  %v909_v3 = vsel %vm10070_vm1, %v884_v44, %v885_v25  ;;  %2738 = vmatpush.bf16.msra.mxu0 %v6076_v15 }
 0x146   : > { %v1205_v36 = vunpack.c.l.b16 %v1045_v45  ;;  %v1206_v31 = vunpack.c.l.b16 %v1046_v43  ;;  %v10258_v45 = vmov 0 }
 0x147   : > { %2042 = vmatmul.bf16.gmra.mxu3 %v7077_v13  ;;  %v1672_v24 = vpop.f32.mrf.mxu2  ;;  %vm7206_vm14 = vcmp.eq.s32.totalorder %v401_v11, 0  ;;  %v6060_v11 = vld [vmem:[#allocation5 + $0x190] sm:$0xff] }
 0x148   : > { %v10259_v45 = vsel %vm7206_vm14, 4294967295, %v10258_v45  ;;  %2560 = vmatpush.bf16.msra.mxu2 %v6060_v11 }
 0x149   : > { %v1634_v63 = vpop.f32.mrf.mxu0  ;;  %10260 = vst [vmem:[#allocation67_spill] sm:$0xff] %v10259_v45 }
 0x14a   : > { %v1761_v34 = vpop.f32.mrf.mxu3  ;;  %v1723_v13 = vpop.f32.mrf.mxu1 }
 0x14b   : > { %v7191_v41 = vadd.f32 %v1761_v34, %v1672_v24  ;;  %v7195_v30 = vadd.f32 %v1723_v13, %v1634_v63  ;;  %v10033_v24 = vrot.slane %v6662_v2, 1  ;;  %v886_v13 = vrot.slane %v6662_v2, 7 }
 0x14d   : > { %10256 = vst [vmem:[#allocation65_spill] sm:$0xff] %v7191_v41  ;;  %v7203_v41 = vpack.c.b16 %v1206_v31, %v1205_v36  ;;  %v6068_v31 = vld [vmem:[#allocation5 + $0x1d0] sm:$0xff]  ;;  %v7226_v44 = vsel %vm10070_vm1, %v885_v25, %v886_v13  ;;  %v247_v25 = vadd.s32 176, %v6772_v22 }
 0x14e   : > { %10262 = vst [vmem:[#allocation69_spill] sm:$0xff] %v7226_v44  ;;  %2649 = vmatpush.bf16.msra.mxu3 %v6068_v31 }
 0x14f   : > { %v1674_v50 = vpop.f32.mrf.mxu2  ;;  %v415_v31 = vand.u32 15, %v247_v25 }
 0x151   : > { %v2097_v9 = vpop.f32.mrf.mxu0  ;;  %vm7244_vm15 = vcmp.eq.s32.totalorder %v415_v31, 0 }
 0x152   : > { %v1763_v34 = vpop.f32.mrf.mxu3  ;;  %v2186_v63 = vpop.f32.mrf.mxu1 }
 0x153   : > { %v7201_v28 = vadd.f32 %v1763_v34, %v1674_v50  ;;  %v7218_v50 = vsel %vm10046_vm0, %v10034_v60, %v10033_v24  ;;  %v1048_v60 = vpack.c.bf16 %v7226_v44, %v7226_v44 }
 0x154   : > { %10261 = vst [vmem:[#allocation68_spill] sm:$0xff] %v7218_v50  ;;  %1814 = vmatmul.bf16.gmra.mxu2 %v6647_v59  ;;  %2136 = vmatmul.bf16.gmra.mxu0 %v7161_v51  ;;  %v1015_v43 = vsel %vm7206_vm14, %v7218_v50, %v909_v3  ;;  %vm10290_vm14 = vcmp.lt.s32.totalorder %v6772_v22, 7 }
 0x155   : > { %10257 = vst [vmem:[#allocation66_spill] sm:$0xff] %v7201_v28  ;;  %2225 = vmatmul.bf16.gmra.mxu1 %v7203_v41  ;;  %v1208_v3 = vunpack.c.l.b16 %v1048_v60  ;;  %v888_v60 = vrot.slane %v6690_v27, 7 }
 0x157   : > { %2047 = vmatmul.bf16.gmra.mxu3 %v7119_v12  ;;  %v1775_v36 = vpop.f32.mrf.mxu2  ;;  %v1047_v12 = vpack.c.bf16 %v1015_v43, %v1015_v43  ;;  %v10043_v43 = vrot.slane %v6687_v26, 1 }
 0x158   : > { %v1776_v59 = vadd.f32 %v1775_v36, %v6870_v29  ;;  %v887_v29 = vrot.slane %v6687_v26, 7  ;;  %v10042_v36 = vrot.slane %v6690_v27, 1 }
 0x159   : > { %v2099_v24 = vpop.f32.mrf.mxu0  ;;  %v1207_v45 = vunpack.c.l.b16 %v1047_v12 }
 0x15a   : > { %v2008_v34 = vpop.f32.mrf.mxu3  ;;  %v2188_v28 = vpop.f32.mrf.mxu1  ;;  %v907_v15 = vsel %vm10070_vm1, %v886_v13, %v887_v29  ;;  %v7266_v13 = vsel %vm10070_vm1, %v887_v29, %v888_v60 }
 0x15b   : > { %v2009_v2 = vadd.f32 %v2008_v34, %v1776_v59  ;;  %v7241_v49 = vpack.c.b16 %v1208_v3, %v1207_v45 }
 0x15d   : > { %v2098_v1 = vadd.f32 %v2097_v9, %v2009_v2 }
 0x15f   : > { %v7235_v50 = vadd.f32 %v2186_v63, %v2098_v1  ;;  %v1777_v11 = vpop.f32.mrf.mxu2  ;;  %v10263_v1 = vmov 0 }
 0x160   : > { %v1778_v59 = vadd.f32 %v1777_v11, %v6902_v23  ;;  %v10264_v1 = vsel %vm7244_vm15, 4294967295, %v10263_v1  ;;  %v7256_v23 = vsel %vm10046_vm0, %v10043_v43, %v10042_v36  ;;  %v889_v43 = vrot.slane %v6715_v46, 7 }
 0x161   : > { %v2102_v44 = vpop.f32.mrf.mxu0  ;;  %10265 = vst [vmem:[#allocation70_spill] sm:$0xff] %v10264_v1  ;;  %v1017_v12 = vsel %vm7244_vm15, %v7256_v23, %v907_v15  ;;  %vm10281_vm15 = vcmp.lt.s32.totalorder %v6772_v22, 7 }
 0x162   : > { %v2010_v34 = vpop.f32.mrf.mxu3  ;;  %v2191_v9 = vpop.f32.mrf.mxu1  ;;  %10266 = vst [vmem:[#allocation71_spill] sm:$0xff] %v7256_v23 }
 0x163   : > { %v2011_v2 = vadd.f32 %v2010_v34, %v1778_v59  ;;  %v249_v59 = vadd.s32 192, %v6772_v22 }
 0x164   : > { %1819 = vmatmul.bf16.gmra.mxu2 %v6674_v20  ;;  %2141 = vmatmul.bf16.gmra.mxu0 %v7203_v41 }
 0x165   : > { %v2100_v63 = vadd.f32 %v2099_v24, %v2011_v2  ;;  %2230 = vmatmul.bf16.gmra.mxu1 %v7241_v49  ;;  %v1049_v24 = vpack.c.bf16 %v1017_v12, %v1017_v12  ;;  %v429_v15 = vand.u32 15, %v249_v59  ;;  %v10048_v12 = vrot.slane %v6718_v47, 1 }
 0x167   : > { %2052 = vmatmul.bf16.gmra.mxu3 %v7161_v51  ;;  %v7262_v45 = vadd.f32 %v2188_v28, %v2100_v63  ;;  %v1780_v25 = vpop.f32.mrf.mxu2  ;;  %v1050_v51 = vpack.c.bf16 %v7266_v13, %v7266_v13  ;;  %v1209_v29 = vunpack.c.l.b16 %v1049_v24  ;;  %v890_v24 = vrot.slane %v6718_v47, 7 }
 0x168   : > { %v1781_v20 = vadd.f32 %v1780_v25, %v6913_v53  ;;  %v10049_v53 = vrot.slane %v6715_v46, 1  ;;  %vm7284_vm0 = vcmp.eq.s32.totalorder %v429_v15, 0  ;;  %v6075_v15 = vld [vmem:[#allocation5 + $0x208] sm:$0xff] }
 0x169   : > { %v2104_v11 = vpop.f32.mrf.mxu0  ;;  %v1210_v2 = vunpack.c.l.b16 %v1050_v51  ;;  %v905_v51 = vsel %vm10070_vm1, %v888_v60, %v889_v43  ;;  %v7306_v59 = vsel %vm10070_vm1, %v889_v43, %v890_v24  ;;  %2739 = vmatpush.bf16.msra.mxu0 %v6075_v15 }
 0x16a   : > { %v2013_v3 = vpop.f32.mrf.mxu3  ;;  %v2193_v28 = vpop.f32.mrf.mxu1 }
 0x16b   : > { %v2014_v31 = vadd.f32 %v2013_v3, %v1781_v20  ;;  %v7281_v3 = vpack.c.b16 %v1210_v2, %v1209_v29 }
 0x16d   : > { %v2103_v34 = vadd.f32 %v2102_v44, %v2014_v31  ;;  %v6067_v31 = vld [vmem:[#allocation5 + $0x1c8] sm:$0xff] }
 0x16e   : > { %2650 = vmatpush.bf16.msra.mxu3 %v6067_v31 }
 0x16f   : > { %v7275_v63 = vadd.f32 %v2191_v9, %v2103_v34  ;;  %v1782_v36 = vpop.f32.mrf.mxu2  ;;  %v10267_v9 = vmov 0 }
 0x170   : > { %v1783_v25 = vadd.f32 %v1782_v36, %v6943_v56  ;;  %v10268_v9 = vsel %vm7284_vm0, 4294967295, %v10267_v9  ;;  %v7296_v56 = vsel %vm10270_vm2, %v10049_v53, %v10048_v12  ;;  %v7318_v12 = vld [vmem:[%s6578_s30 + $0xd0] sm:$0xff] }
 0x171   : > { %v2107_v20 = vpop.f32.mrf.mxu0  ;;  %10269 = vst [vmem:[#allocation72_spill] sm:$0xff] %v10268_v9  ;;  %v1019_v34 = vsel %vm7284_vm0, %v7296_v56, %v905_v51  ;;  %v10053_v53 = vrot.slane %v7318_v12, 1  ;;  %v7323_v9 = vld [vmem:[%s6578_s30 + $0xd8] sm:$0xff]  ;;  %vm10274_vm0 = vcmp.lt.s32.totalorder %v6772_v22, 7 }
 0x172   : > { %v2015_v1 = vpop.f32.mrf.mxu3  ;;  %v2196_v44 = vpop.f32.mrf.mxu1  ;;  %v1051_v29 = vpack.c.bf16 %v1019_v34, %v1019_v34  ;;  %v891_v34 = vrot.slane %v7318_v12, 7  ;;  %v892_v15 = vrot.slane %v7323_v9, 7 }
 0x173   : > { %v2016_v23 = vadd.f32 %v2015_v1, %v1783_v25  ;;  %v6059_v1 = vld [vmem:[#allocation5 + $0x188] sm:$0xff]  ;;  %v251_v25 = vadd.s32 208, %v6772_v22 }
 0x174   : > { %1824 = vmatmul.bf16.gmra.mxu2 %v6702_v37  ;;  %2146 = vmatmul.bf16.gmra.mxu0 %v7241_v49  ;;  %v1211_v51 = vunpack.c.l.b16 %v1051_v29 }
 0x175   : > { %v2105_v36 = vadd.f32 %v2104_v11, %v2016_v23  ;;  %2235 = vmatmul.bf16.gmra.mxu1 %v7281_v3  ;;  %2561 = vmatpush.bf16.msra.mxu2 %v6059_v1 }
 0x177   : > { %2057 = vmatmul.bf16.gmra.mxu3 %v7203_v41  ;;  %v7302_v60 = vadd.f32 %v2193_v28, %v2105_v36  ;;  %v1785_v37 = vpop.f32.mrf.mxu2  ;;  %v1052_v28 = vpack.c.bf16 %v7306_v59, %v7306_v59 }
 0x178   : > { %v1786_v23 = vadd.f32 %v1785_v37, %v6954_v7  ;;  %v443_v37 = vand.u32 15, %v251_v25  ;;  %v10271_v25 = vmov 0 }
 0x179   : > { %v2109_v11 = vpop.f32.mrf.mxu0  ;;  %v1212_v1 = vunpack.c.l.b16 %v1052_v28 }
 0x17a   : > { %v2018_v41 = vpop.f32.mrf.mxu3  ;;  %v2198_v43 = vpop.f32.mrf.mxu1  ;;  %vm7330_vm2 = vcmp.eq.s32.totalorder %v443_v37, 0 }
 0x17b   : > { %v2019_v2 = vadd.f32 %v2018_v41, %v1786_v23  ;;  %v10052_v23 = vrot.slane %v7323_v9, 1  ;;  %v7327_v29 = vpack.c.b16 %v1212_v1, %v1211_v51  ;;  %v10272_v25 = vsel %vm7330_vm2, 4294967295, %v10271_v25 }
 0x17c   : > { %10273 = vst [vmem:[#allocation73_spill] sm:$0xff] %v10272_v25 }
 0x17d   : > { %v2108_v36 = vadd.f32 %v2107_v20, %v2019_v2 }
 0x17f   : > { %v7315_v31 = vadd.f32 %v2196_v44, %v2108_v36  ;;  %v1787_v7 = vpop.f32.mrf.mxu2  ;;  %v903_v36 = vsel %vm10070_vm1, %v890_v24, %v891_v34  ;;  %v7352_v24 = vsel %vm10070_vm1, %v891_v34, %v892_v15  ;;  %v253_v34 = vadd.s32 224, %v6772_v22 }
 0x180   : > { %v1788_v41 = vadd.f32 %v1787_v7, %v6985_v54  ;;  %v7342_v54 = vsel %vm10274_vm0, %v10053_v53, %v10052_v23  ;;  %10277 = vst [vmem:[#allocation76_spill] sm:$0xff] %v7352_v24 }
 0x181   : > { %v2112_v2 = vpop.f32.mrf.mxu0  ;;  %10275 = vst [vmem:[#allocation74_spill] sm:$0xff] %v7342_v54  ;;  %v1021_v7 = vsel %vm7330_vm2, %v7342_v54, %v903_v36  ;;  %v457_v54 = vand.u32 15, %v253_v34  ;;  %v10278_v34 = vmov 0 }
 0x182   : > { %v2020_v20 = vpop.f32.mrf.mxu3  ;;  %v2201_v28 = vpop.f32.mrf.mxu1 }
 0x183   : > { %v2021_v44 = vadd.f32 %v2020_v20, %v1788_v41  ;;  %vm7376_vm0 = vcmp.eq.s32.totalorder %v457_v54, 0  ;;  %v6066_v54 = vld [vmem:[#allocation5 + $0x1c0] sm:$0xff] }
 0x184   : > { %1829 = vmatmul.bf16.gmra.mxu2 %v6730_v61  ;;  %2151 = vmatmul.bf16.gmra.mxu0 %v7281_v3  ;;  %v10279_v34 = vsel %vm7376_vm0, 4294967295, %v10278_v34 }
 0x185   : > { %v2110_v51 = vadd.f32 %v2109_v11, %v2021_v44  ;;  %2240 = vmatmul.bf16.gmra.mxu1 %v7327_v29  ;;  %10280 = vst [vmem:[#allocation77_spill] sm:$0xff] %v10279_v34  ;;  %2651 = vmatpush.bf16.msra.mxu3 %v6066_v54 }
 0x187   : > { %2062 = vmatmul.bf16.gmra.mxu3 %v7241_v49  ;;  %v7348_v1 = vadd.f32 %v2198_v43, %v2110_v51  ;;  %v1790_v37 = vpop.f32.mrf.mxu2  ;;  %v1053_v49 = vpack.c.bf16 %v1021_v7, %v1021_v7  ;;  %v1054_v43 = vpack.c.bf16 %v7352_v24, %v7352_v24 }
 0x188   : > { %v1791_v61 = vadd.f32 %v1790_v37, %v6996_v16  ;;  %v7369_v37 = vld [vmem:[%s6578_s30 + $0xe8] sm:$0xff] }
 0x189   : > { %10276 = vst [vmem:[#allocation75_spill] sm:$0xff] %v7348_v1  ;;  %v2114_v11 = vpop.f32.mrf.mxu0  ;;  %v1213_v23 = vunpack.c.l.b16 %v1053_v49  ;;  %v1214_v53 = vunpack.c.l.b16 %v1054_v43  ;;  %v7364_v1 = vld [vmem:[%s6578_s30 + $0xe0] sm:$0xff] }
 0x18a   : > { %v2023_v41 = vpop.f32.mrf.mxu3  ;;  %v2203_v44 = vpop.f32.mrf.mxu1  ;;  %v893_v16 = vrot.slane %v7364_v1, 7  ;;  %v10059_v7 = vrot.slane %v7364_v1, 1 }
 0x18b   : > { %v2024_v20 = vadd.f32 %v2023_v41, %v1791_v61  ;;  %v10058_v61 = vrot.slane %v7369_v37, 1  ;;  %v7373_v49 = vpack.c.b16 %v1214_v53, %v1213_v23  ;;  %v6058_v23 = vld [vmem:[#allocation5 + $0x180] sm:$0xff] }
 0x18c   : > { %2562 = vmatpush.bf16.msra.mxu2 %v6058_v23 }
 0x18d   : > { %v2113_v51 = vadd.f32 %v2112_v2, %v2024_v20  ;;  %v894_v20 = vrot.slane %v7369_v37, 7 }
 0x18f   : > { %v7361_v25 = vadd.f32 %v2201_v28, %v2113_v51  ;;  %v1792_v36 = vpop.f32.mrf.mxu2  ;;  %v901_v51 = vsel %vm10070_vm1, %v892_v15, %v893_v16 }
 0x190   : > { %v1793_v41 = vadd.f32 %v1792_v36, %v7027_v52  ;;  %v7388_v52 = vsel %vm10281_vm15, %v10059_v7, %v10058_v61  ;;  %v6074_v61 = vld [vmem:[#allocation5 + $0x200] sm:$0xff]  ;;  %v255_v7 = vadd.s32 240, %v6772_v22 }
 0x191   : > { %v2117_v2 = vpop.f32.mrf.mxu0  ;;  %10282 = vst [vmem:[#allocation78_spill] sm:$0xff] %v7388_v52  ;;  %v1023_v36 = vsel %vm7376_vm0, %v7388_v52, %v901_v51  ;;  %2740 = vmatpush.bf16.msra.mxu0 %v6074_v61 }
 0x192   : > { %v2025_v24 = vpop.f32.mrf.mxu3  ;;  %v2206_v43 = vpop.f32.mrf.mxu1 }
 0x193   : > { %v2026_v28 = vadd.f32 %v2025_v24, %v1793_v41  ;;  %v7398_v24 = vsel %vm10070_vm1, %v893_v16, %v894_v20 }
 0x194   : > { %1834 = vmatmul.bf16.gmra.mxu2 %v6750_v32  ;;  %2156 = vmatmul.bf16.gmra.mxu0 %v7327_v29  ;;  %10283 = vst [vmem:[#allocation79_spill] sm:$0xff] %v7398_v24 }
 0x195   : > { %v2115_v53 = vadd.f32 %v2114_v11, %v2026_v28  ;;  %2245 = vmatmul.bf16.gmra.mxu1 %v7373_v49  ;;  %v1055_v28 = vpack.c.bf16 %v1023_v36, %v1023_v36  ;;  %v7416_v36 = vld [vmem:[%s6578_s30 + $0xf8] sm:$0xff] }
 0x196   : > { %10286 = vst [vmem:[#allocation82_spill] sm:$0xff] %v7416_v36  ;;  %v10064_v52 = vrot.slane %v7416_v36, 1 }
 0x197   : > { %2067 = vmatmul.bf16.gmra.mxu3 %v7281_v3  ;;  %v7394_v15 = vadd.f32 %v2203_v44, %v2115_v53  ;;  %v1795_v32 = vpop.f32.mrf.mxu2  ;;  %v1056_v44 = vpack.c.bf16 %v7398_v24, %v7398_v24  ;;  %v1215_v23 = vunpack.c.l.b16 %v1055_v28 }
 0x198   : > { %v1796_v3 = vadd.f32 %v1795_v32, %v7038_v4  ;;  %v7412_v4 = vld [vmem:[%s6578_s30 + $0xf0] sm:$0xff] }
 0x199   : > { %v2119_v41 = vpop.f32.mrf.mxu0  ;;  %v1216_v34 = vunpack.c.l.b16 %v1056_v44  ;;  %v10065_v32 = vrot.slane %v7412_v4, 1 }
 0x19a   : > { %v2028_v11 = vpop.f32.mrf.mxu3  ;;  %v7406_v16 = vpop.f32.mrf.mxu1 }
 0x19b   : > { %v2029_v53 = vadd.f32 %v2028_v11, %v1796_v3  ;;  %10284 = vst [vmem:[#allocation80_spill] sm:$0xff] %v7406_v16  ;;  %v471_v11 = vand.u32 15, %v255_v7  ;;  %v895_v16 = vrot.slane %v7412_v4, 7  ;;  %v7421_v28 = vpack.c.b16 %v1216_v34, %v1215_v23 }
 0x19d   : > { %v2118_v51 = vadd.f32 %v2117_v2, %v2029_v53  ;;  %vm7423_vm15 = vcmp.eq.s32.totalorder %v471_v11, 0  ;;  %v10287_v53 = vmov 0 }
 0x19e   : > { %v10288_v53 = vsel %vm7423_vm15, 4294967295, %v10287_v53 }
 0x19f   : > { %v7409_v54 = vadd.f32 %v2206_v43, %v2118_v51  ;;  %v1797_v3 = vpop.f32.mrf.mxu2  ;;  %10289 = vst [vmem:[#allocation83_spill] sm:$0xff] %v10288_v53  ;;  %v899_v51 = vsel %vm10070_vm1, %v894_v20, %v895_v16  ;;  %v10293_v20 = vrot.slane %v6798_v55, 7  ;;  %v1123_v55 = vpack.c.bf16 %v6842_v6, %v6842_v6 }
 0x1a0   : > { %v1798_v24 = vadd.f32 %v1797_v3, %v7069_v35  ;;  %v7435_v35 = vsel %vm10290_vm14, %v10065_v32, %v10064_v52 }
 0x1a1   : > { %10285 = vst [vmem:[#allocation81_spill] sm:$0xff] %v7409_v54  ;;  %v2122_v61 = vpop.f32.mrf.mxu0  ;;  %v7447_v34 = vsel %vm10070_vm1, %v895_v16, %v10293_v20  ;;  %v1124_v16 = vpack.c.bf16 %v6822_v48, %v6822_v48  ;;  %vm10302_vm1 = vcmp.lt.s32.totalorder %v6772_v22, 7 }
 0x1a2   : > { %v2030_v2 = vpop.f32.mrf.mxu3  ;;  %v2211_v44 = vpop.f32.mrf.mxu1  ;;  %10291 = vst [vmem:[#allocation84_spill] sm:$0xff] %v7435_v35 }
 0x1a3   : > { %v2031_v43 = vadd.f32 %v2030_v2, %v1798_v24  ;;  %10294 = vst [vmem:[#allocation86_spill] sm:$0xff] %v7447_v34  ;;  %v1025_v24 = vsel %vm7423_vm15, %v7435_v35, %v899_v51  ;;  %v1125_v51 = vpack.c.bf16 %v6852_v40, %v6852_v40  ;;  %vm10356_vm15 = vcmp.lt.s32.totalorder %v6772_v22, 7 }
 0x1a4   : > { %1839 = vmatmul.bf16.gmra.mxu2 %v6770_v10  ;;  %2161 = vmatmul.bf16.gmra.mxu0 %v7373_v49  ;;  %v1057_v2 = vpack.c.bf16 %v1025_v24, %v1025_v24 }
 0x1a5   : > { %v7439_v7 = vadd.f32 %v2119_v41, %v2031_v43  ;;  %2250 = vmatmul.bf16.gmra.mxu1 %v7421_v28  ;;  %v2268_v48 = vunpack.c.l.b16 %v1125_v51 }
 0x1a6   : > { %v1247_v24 = vunpack.c.l.b16 %v1057_v2 }
 0x1a7   : > { %10292 = vst [vmem:[#allocation85_spill] sm:$0xff] %v7439_v7  ;;  %2072 = vmatmul.bf16.gmra.mxu3 %v7327_v29  ;;  %v1800_v23 = vpop.f32.mrf.mxu2  ;;  %v1058_v29 = vpack.c.bf16 %v7447_v34, %v7447_v34 }
 0x1a8   : > { %v1801_v3 = vadd.f32 %v1800_v23, %v7080_v39  ;;  %v10296_v39 = vld [vmem:[#allocation25_spill] sm:$0xff] }
 0x1a9   : > { %v2124_v41 = vpop.f32.mrf.mxu0  ;;  %v1126_v23 = vpack.c.bf16 %v10296_v39, %v10296_v39  ;;  %v1248_v32 = vunpack.c.l.b16 %v1058_v29 }
 0x1aa   : > { %v2033_v11 = vpop.f32.mrf.mxu3  ;;  %v7455_v52 = vpop.f32.mrf.mxu1 }
 0x1ab   : > { %v2034_v43 = vadd.f32 %v2033_v11, %v1801_v3  ;;  %10295 = vst [vmem:[#allocation87_spill] sm:$0xff] %v7455_v52  ;;  %v2300_v3 = vunpack.c.l.b16 %v1123_v55  ;;  %v2301_v11 = vunpack.c.l.b16 %v1124_v16  ;;  %v1249_v34 = vpack.c.b16 %v1248_v32, %v1247_v24 }
 0x1ad   : > { %v2123_v20 = vadd.f32 %v2122_v61, %v2034_v43  ;;  %v2269_v61 = vunpack.c.l.b16 %v1126_v23  ;;  %v7470_v54 = vpack.c.b16 %v2301_v11, %v2300_v3  ;;  %v230_v11 = vadd.s32 40, %v6772_v22 }
 0x1af   : > { %v7465_v53 = vadd.f32 %v2211_v44, %v2123_v20  ;;  %v1802_v52 = vpop.f32.mrf.mxu2  ;;  %v7468_v40 = vpack.c.b16 %v2269_v61, %v2268_v48 }
 0x1b0   : > { %v1803_v7 = vadd.f32 %v1802_v52, %v7111_v57 }
 0x1b1   : > { %v2127_v35 = vpop.f32.mrf.mxu0 }
 0x1b2   : > { %v2035_v6 = vpop.f32.mrf.mxu3  ;;  %v2216_v36 = vpop.f32.mrf.mxu1 }
 0x1b3   : > { %v2036_v43 = vadd.f32 %v2035_v6, %v1803_v7 }
 0x1b4   : > { %1844 = vmatmul.bf16.gmra.mxu2 %v6828_v8  ;;  %2166 = vmatmul.bf16.gmra.mxu0 %v7421_v28 }
 0x1b5   : > { %v7474_v44 = vadd.f32 %v2124_v41, %v2036_v43  ;;  %2255 = vmatmul.bf16.gmra.mxu1 %v1249_v34 }
 0x1b7   : > { %2077 = vmatmul.bf16.gmra.mxu3 %v7373_v49  ;;  %v1805_v57 = vpop.f32.mrf.mxu2 }
 0x1b8   : > { %v1806_v52 = vadd.f32 %v1805_v57, %v7122_v58 }
 0x1b9   : > { %v2129_v2 = vpop.f32.mrf.mxu0 }
 0x1ba   : > { %v2038_v32 = vpop.f32.mrf.mxu3  ;;  %v7478_v29 = vpop.f32.mrf.mxu1 }
 0x1bb   : > { %v2039_v7 = vadd.f32 %v2038_v32, %v1806_v52  ;;  %v10297_v52 = vmov 0  ;;  %v10301_v32 = vrot.slane %v6656_v0, 1 }
 0x1bd   : > { %v2128_v55 = vadd.f32 %v2127_v35, %v2039_v7 }
 0x1bf   : > { %v7480_v16 = vadd.f32 %v2216_v36, %v2128_v55  ;;  %v1807_v20 = vpop.f32.mrf.mxu2 }
 0x1c0   : > { %v1808_v8 = vadd.f32 %v1807_v20, %v7153_v19 }
 0x1c1   : > { %v2132_v41 = vpop.f32.mrf.mxu0 }
 0x1c2   : > { %v2040_v51 = vpop.f32.mrf.mxu3  ;;  %v2221_v23 = vpop.f32.mrf.mxu1 }
 0x1c3   : > { %v2041_v39 = vadd.f32 %v2040_v51, %v1808_v8  ;;  %v10303_v8 = vld [vmem:[#allocation30_spill] sm:$0xff] }
 0x1c4   : > { %1849 = vmatmul.bf16.gmra.mxu2 %v6770_v10  ;;  %2171 = vmatmul.bf16.gmra.mxu0 %v1249_v34  ;;  %v296_v10 = vand.u32 15, %v230_v11  ;;  %v1127_v51 = vpack.c.bf16 %v10303_v8, %v10303_v8 }
 0x1c5   : > { %v7484_v49 = vadd.f32 %v2129_v2, %v2041_v39  ;;  %2260 = vmatmul.bf16.gmra.mxu1 %v7421_v28 }
 0x1c6   : > { %vm7495_vm14 = vcmp.eq.s32.totalorder %v296_v10, 15  ;;  %v10304_v10 = vld [vmem:[#allocation31_spill] sm:$0xff] }
 0x1c7   : > { %2082 = vmatmul.bf16.gmra.mxu3 %v7421_v28  ;;  %v1810_v58 = vpop.f32.mrf.mxu2  ;;  %v10298_v52 = vsel %vm7495_vm14, 4294967295, %v10297_v52 }
 0x1c8   : > { %v1811_v36 = vadd.f32 %v1810_v58, %v7164_v5  ;;  %10299 = vst [vmem:[#allocation25_spill] sm:$0xff] %v10298_v52  ;;  %v10300_v5 = vrot.slane %v6679_v21, 1  ;;  %v232_v58 = vadd.s32 56, %v6772_v22  ;;  %v10363_v52 = vmov 0 }
 0x1c9   : > { %v2134_v24 = vpop.f32.mrf.mxu0 }
 0x1ca   : > { %v2043_v35 = vpop.f32.mrf.mxu3  ;;  %v7489_v19 = vpop.f32.mrf.mxu1  ;;  %v988_v2 = vsel %vm10302_vm1, %v10301_v32, %v10300_v5  ;;  %v10305_v5 = vmov 0  ;;  %v10309_v32 = vld [vmem:[#allocation19_spill] sm:$0xff] }
 0x1cb   : > { %v2044_v3 = vadd.f32 %v2043_v35, %v1811_v36  ;;  %v1096_v55 = vsel %vm7495_vm14, %v6893_v17, %v988_v2  ;;  %v2302_v35 = vunpack.c.l.b16 %v1127_v51  ;;  %v310_v17 = vand.u32 15, %v232_v58  ;;  %v10313_v51 = vld [vmem:[#allocation35_spill] sm:$0xff] }
 0x1cc   : > { %v10310_v2 = vrot.slane %v10309_v32, 1 }
 0x1cd   : > { %v2133_v6 = vadd.f32 %v2132_v41, %v2044_v3  ;;  %v1128_v41 = vpack.c.bf16 %v1096_v55, %v1096_v55  ;;  %vm7522_vm1 = vcmp.eq.s32.totalorder %v310_v17, 15 }
 0x1ce   : > { %v10306_v5 = vsel %vm7522_vm1, 4294967295, %v10305_v5 }
 0x1cf   : > { %v7492_v48 = vadd.f32 %v2221_v23, %v2133_v6  ;;  %v1812_v34 = vpop.f32.mrf.mxu2  ;;  %10307 = vst [vmem:[#allocation30_spill] sm:$0xff] %v10306_v5  ;;  %v10350_v5 = vmov 0 }
 0x1d0   : > { %v1813_v61 = vadd.f32 %v1812_v34, %v7195_v30 }
 0x1d1   : > { %v2137_v57 = vpop.f32.mrf.mxu0 }
 0x1d2   : > { %v2045_v43 = vpop.f32.mrf.mxu3  ;;  %v2226_v7 = vpop.f32.mrf.mxu1 }
 0x1d3   : > { %v2046_v28 = vadd.f32 %v2045_v43, %v1813_v61 }
 0x1d4   : > { %2563 = vmatmul.bf16.vlgmr.msra.gmra.mxu2 %v7468_v40  ;;  %2741 = vmatmul.bf16.vlgmr.msra.gmra.mxu0 %v7468_v40 }
 0x1d5   : > { %v7507_v30 = vadd.f32 %v2134_v24, %v2046_v28  ;;  %v2303_v24 = vunpack.c.l.b16 %v1128_v41 }
 0x1d7   : > { %2652 = vmatmul.bf16.vlgmr.msra.gmra.mxu3 %v7470_v54  ;;  %v1815_v20 = vpop.f32.mrf.mxu2  ;;  %v2329_v61 = vpack.c.b16 %v2303_v24, %v2302_v35 }
 0x1d8   : > { %v1816_v21 = vadd.f32 %v1815_v20, %v6898_v42  ;;  %v10312_v20 = vld [vmem:[#allocation34_spill] sm:$0xff] }
 0x1d9   : > { %v2139_v39 = vpop.f32.mrf.mxu0 }
 0x1da   : > { %v2048_v0 = vpop.f32.mrf.mxu3  ;;  %v7517_v3 = vpop.f32.mrf.mxu1 }
 0x1db   : > { %v2049_v23 = vadd.f32 %v2048_v0, %v1816_v21 }
 0x1dd   : > { %v2138_v36 = vadd.f32 %v2137_v57, %v2049_v23  ;;  %v10308_v57 = vrot.slane %v6707_v38, 1  ;;  %v10314_v23 = vld [vmem:[#allocation33_spill] sm:$0xff] }
 0x1de   : > { %v1129_v58 = vpack.c.bf16 %v10314_v23, %v10314_v23  ;;  %v10323_v23 = vld [vmem:[#allocation39_spill] sm:$0xff] }
 0x1df   : > { %v7519_v11 = vadd.f32 %v2226_v7, %v2138_v36  ;;  %v1817_v6 = vpop.f32.mrf.mxu2  ;;  %v986_v7 = vsel %vm10311_vm13, %v10310_v2, %v10308_v57 }
 0x1e0   : > { %v1818_v42 = vadd.f32 %v1817_v6, %v10304_v10  ;;  %v1098_v21 = vsel %vm7522_vm1, %v10312_v20, %v986_v7  ;;  %v2304_v17 = vunpack.c.l.b16 %v1129_v58 }
 0x1e1   : > { %v2142_v43 = vpop.f32.mrf.mxu0  ;;  %v1130_v36 = vpack.c.bf16 %v1098_v21, %v1098_v21  ;;  %v10316_v21 = vmov 0 }
 0x1e2   : > { %v2050_v34 = vpop.f32.mrf.mxu3  ;;  %v2231_v8 = vpop.f32.mrf.mxu1 }
 0x1e3   : > { %v2051_v28 = vadd.f32 %v2050_v34, %v1818_v42  ;;  %v2305_v6 = vunpack.c.l.b16 %v1130_v36 }
 0x1e4   : > { %2568 = vmatmul.bf16.gmra.mxu2 %v7470_v54  ;;  %2746 = vmatmul.bf16.gmra.mxu0 %v2329_v61 }
 0x1e5   : > { %v7533_v55 = vadd.f32 %v2139_v39, %v2051_v28  ;;  %v234_v39 = vadd.s32 72, %v6772_v22  ;;  %v10315_v28 = vld [vmem:[#allocation36_spill] sm:$0xff]  ;;  %v2330_v2 = vpack.c.b16 %v2305_v6, %v2304_v17 }
 0x1e7   : > { %2657 = vmatmul.bf16.gmra.mxu3 %v7468_v40  ;;  %v1820_v0 = vpop.f32.mrf.mxu2  ;;  %v324_v42 = vand.u32 15, %v234_v39 }
 0x1e8   : > { %v1821_v38 = vadd.f32 %v1820_v0, %v10313_v51  ;;  %v10320_v51 = vld [vmem:[#allocation20_spill] sm:$0xff] }
 0x1e9   : > { %v2144_v35 = vpop.f32.mrf.mxu0  ;;  %vm7548_vm13 = vcmp.eq.s32.totalorder %v324_v42, 15 }
 0x1ea   : > { %v2053_v41 = vpop.f32.mrf.mxu3  ;;  %v7546_v20 = vpop.f32.mrf.mxu1  ;;  %v10317_v21 = vsel %vm7548_vm13, 4294967295, %v10316_v21 }
 0x1eb   : > { %v2054_v54 = vadd.f32 %v2053_v41, %v1821_v38  ;;  %10318 = vst [vmem:[#allocation31_spill] sm:$0xff] %v10317_v21  ;;  %v10321_v38 = vrot.slane %v10320_v51, 1 }
 0x1ed   : > { %v2143_v24 = vadd.f32 %v2142_v43, %v2054_v54  ;;  %v10319_v43 = vrot.slane %v6735_v62, 1  ;;  %v10324_v54 = vld [vmem:[#allocation40_spill] sm:$0xff]  ;;  %v10325_v62 = vld [vmem:[#allocation38_spill] sm:$0xff] }
 0x1ee   : > { %v1131_v17 = vpack.c.bf16 %v10325_v62, %v10325_v62 }
 0x1ef   : > { %v7543_v10 = vadd.f32 %v2231_v8, %v2143_v24  ;;  %v1822_v34 = vpop.f32.mrf.mxu2  ;;  %v984_v8 = vsel %vm10322_vm12, %v10321_v38, %v10319_v43  ;;  %v10326_v38 = vld [vmem:[#allocation41_spill] sm:$0xff] }
 0x1f0   : > { %v1823_v57 = vadd.f32 %v1822_v34, %v10315_v28  ;;  %v1100_v58 = vsel %vm7548_vm13, %v10323_v23, %v984_v8 }
 0x1f1   : > { %v2147_v7 = vpop.f32.mrf.mxu0  ;;  %v1132_v6 = vpack.c.bf16 %v1100_v58, %v1100_v58  ;;  %v10327_v58 = vmov 0 }
 0x1f2   : > { %v2055_v32 = vpop.f32.mrf.mxu3  ;;  %v2236_v28 = vpop.f32.mrf.mxu1 }
 0x1f3   : > { %v2056_v0 = vadd.f32 %v2055_v32, %v1823_v57  ;;  %v2306_v57 = vunpack.c.l.b16 %v1131_v17  ;;  %v2307_v32 = vunpack.c.l.b16 %v1132_v6  ;;  %v10334_v6 = vld [vmem:[#allocation44_spill] sm:$0xff] }
 0x1f4   : > { %2573 = vmatmul.bf16.gmra.mxu2 %v7468_v40  ;;  %2751 = vmatmul.bf16.gmra.mxu0 %v2330_v2  ;;  %v236_v40 = vadd.s32 88, %v6772_v22 }
 0x1f5   : > { %v7559_v41 = vadd.f32 %v2144_v35, %v2056_v0 }
 0x1f6   : > { %v338_v43 = vand.u32 15, %v236_v40 }
 0x1f7   : > { %2662 = vmatmul.bf16.gmra.mxu3 %v2329_v61  ;;  %v1825_v36 = vpop.f32.mrf.mxu2 }
 0x1f8   : > { %v1826_v39 = vadd.f32 %v1825_v36, %v10324_v54  ;;  %v2331_v36 = vpack.c.b16 %v2307_v32, %v2306_v57  ;;  %vm7571_vm12 = vcmp.eq.s32.totalorder %v338_v43, 15  ;;  %v10336_v32 = vld [vmem:[#allocation43_spill] sm:$0xff] }
 0x1f9   : > { %v2149_v42 = vpop.f32.mrf.mxu0  ;;  %v10328_v58 = vsel %vm7571_vm12, 4294967295, %v10327_v58 }
 0x1fa   : > { %v2058_v24 = vpop.f32.mrf.mxu3  ;;  %10329 = vst [vmem:[#allocation19_spill] sm:$0xff] %v10328_v58  ;;  %v10338_v58 = vmov 0 }
 0x1fb   : > { %v2059_v34 = vadd.f32 %v2058_v24, %v1826_v39  ;;  %v10330_v39 = vrot.slane %v6755_v33, 1  ;;  %v10331_v24 = vld [vmem:[#allocation21_spill] sm:$0xff]  ;;  %v1133_v33 = vpack.c.bf16 %v10336_v32, %v10336_v32 }
 0x1fd   : > { %v2148_v35 = vadd.f32 %v2147_v7, %v2059_v34  ;;  %v10332_v7 = vrot.slane %v10331_v24, 1  ;;  %v10337_v24 = vld [vmem:[#allocation46_spill] sm:$0xff] }
 0x1ff   : > { %v7568_v0 = vadd.f32 %v2236_v28, %v2148_v35  ;;  %v1827_v51 = vpop.f32.mrf.mxu2  ;;  %v982_v62 = vsel %vm10333_vm11, %v10332_v7, %v10330_v39  ;;  %v10335_v28 = vld [vmem:[#allocation45_spill] sm:$0xff] }
 0x200   : > { %v1828_v8 = vadd.f32 %v1827_v51, %v10326_v38  ;;  %v1102_v34 = vsel %vm7571_vm12, %v10334_v6, %v982_v62 }
 0x201   : > { %v2152_v54 = vpop.f32.mrf.mxu0  ;;  %v1134_v43 = vpack.c.bf16 %v1102_v34, %v1102_v34  ;;  %v10341_v34 = vrot.slane %v6595_v14, 1 }
 0x202   : > { %v2060_v23 = vpop.f32.mrf.mxu3 }
 0x203   : > { %v2061_v21 = vadd.f32 %v2060_v23, %v1828_v8 }
 0x204   : > { %2578 = vmatmul.bf16.gmra.mxu2 %v2329_v61  ;;  %2756 = vmatmul.bf16.gmra.mxu0 %v2331_v36  ;;  %v238_v61 = vadd.s32 104, %v6772_v22 }
 0x205   : > { %v7581_v17 = vadd.f32 %v2149_v42, %v2061_v21  ;;  %v2308_v21 = vunpack.c.l.b16 %v1133_v33  ;;  %v2309_v42 = vunpack.c.l.b16 %v1134_v43  ;;  %v10345_v33 = vld [vmem:[#allocation49_spill] sm:$0xff] }
 0x206   : > { %v352_v23 = vand.u32 15, %v238_v61  ;;  %v10346_v61 = vld [vmem:[#allocation50_spill] sm:$0xff] }
 0x207   : > { %2667 = vmatmul.bf16.gmra.mxu3 %v2330_v2  ;;  %v1830_v40 = vpop.f32.mrf.mxu2  ;;  %v2332_v6 = vpack.c.b16 %v2309_v42, %v2308_v21 }
 0x208   : > { %v1831_v35 = vadd.f32 %v1830_v40, %v10335_v28  ;;  %vm7593_vm11 = vcmp.eq.s32.totalorder %v352_v23, 15  ;;  %v10347_v23 = vld [vmem:[#allocation48_spill] sm:$0xff] }
 0x209   : > { %v2154_v51 = vpop.f32.mrf.mxu0  ;;  %v10339_v58 = vsel %vm7593_vm11, 4294967295, %v10338_v58  ;;  %v1135_v14 = vpack.c.bf16 %v10347_v23, %v10347_v23 }
 0x20a   : > { %v2063_v57 = vpop.f32.mrf.mxu3  ;;  %10340 = vst [vmem:[#allocation34_spill] sm:$0xff] %v10339_v58 }
 0x20b   : > { %v2064_v38 = vadd.f32 %v2063_v57, %v1831_v35  ;;  %v10342_v35 = vld [vmem:[#allocation22_spill] sm:$0xff] }
 0x20c   : > { %v10343_v57 = vrot.slane %v10342_v35, 1 }
 0x20d   : > { %v7590_v8 = vadd.f32 %v2152_v54, %v2064_v38 }
 0x20e   : > { %v980_v54 = vsel %vm10344_vm10, %v10343_v57, %v10341_v34  ;;  %v10349_v57 = vld [vmem:[#allocation51_spill] sm:$0xff] }
 0x20f   : > { %v1832_v39 = vpop.f32.mrf.mxu2  ;;  %v1104_v43 = vsel %vm7593_vm11, %v10345_v33, %v980_v54 }
 0x210   : > { %v1833_v7 = vadd.f32 %v1832_v39, %v10337_v24  ;;  %v1136_v39 = vpack.c.bf16 %v1104_v43, %v1104_v43  ;;  %v10353_v43 = vrot.slane %v6607_v18, 1 }
 0x211   : > { %v2157_v40 = vpop.f32.mrf.mxu0 }
 0x212   : > { %v2065_v62 = vpop.f32.mrf.mxu3 }
 0x213   : > { %v2066_v28 = vadd.f32 %v2065_v62, %v1833_v7 }
 0x214   : > { %2583 = vmatmul.bf16.gmra.mxu2 %v2330_v2  ;;  %2761 = vmatmul.bf16.gmra.mxu0 %v2332_v6  ;;  %v240_v2 = vadd.s32 120, %v6772_v22 }
 0x215   : > { %v7603_v32 = vadd.f32 %v2154_v51, %v2066_v28  ;;  %v2310_v51 = vunpack.c.l.b16 %v1135_v14  ;;  %v2311_v28 = vunpack.c.l.b16 %v1136_v39  ;;  %v10358_v14 = vld [vmem:[#allocation54_spill] sm:$0xff] }
 0x216   : > { %v366_v34 = vand.u32 15, %v240_v2  ;;  %v10359_v2 = vld [vmem:[#allocation55_spill] sm:$0xff] }
 0x217   : > { %2672 = vmatmul.bf16.gmra.mxu3 %v2331_v36  ;;  %v1835_v38 = vpop.f32.mrf.mxu2  ;;  %v2333_v58 = vpack.c.b16 %v2311_v28, %v2310_v51 }
 0x218   : > { %v1836_v21 = vadd.f32 %v1835_v38, %v10346_v61  ;;  %vm7615_vm10 = vcmp.eq.s32.totalorder %v366_v34, 15  ;;  %v10360_v34 = vld [vmem:[#allocation53_spill] sm:$0xff] }
 0x219   : > { %v2159_v24 = vpop.f32.mrf.mxu0  ;;  %v10351_v5 = vsel %vm7615_vm10, 4294967295, %v10350_v5  ;;  %v1137_v18 = vpack.c.bf16 %v10360_v34, %v10360_v34 }
 0x21a   : > { %v2068_v42 = vpop.f32.mrf.mxu3  ;;  %10352 = vst [vmem:[#allocation33_spill] sm:$0xff] %v10351_v5 }
 0x21b   : > { %v2069_v7 = vadd.f32 %v2068_v42, %v1836_v21  ;;  %v10354_v21 = vld [vmem:[#allocation12_spill] sm:$0xff] }
 0x21c   : > { %v10355_v42 = vrot.slane %v10354_v21, 1 }
 0x21d   : > { %v7612_v62 = vadd.f32 %v2157_v40, %v2069_v7 }
 0x21e   : > { %v978_v40 = vsel %vm10356_vm15, %v10355_v42, %v10353_v43  ;;  %v10362_v42 = vld [vmem:[#allocation56_spill] sm:$0xff] }
 0x21f   : > { %10348 = vst [vmem:[#allocation35_spill] sm:$0xff] %v7612_v62  ;;  %v1837_v35 = vpop.f32.mrf.mxu2  ;;  %v1106_v39 = vsel %vm7615_vm10, %v10358_v14, %v978_v40  ;;  %vm10370_vm10 = vcmp.lt.s32.totalorder %v6772_v22, 7 }
 0x220   : > { %v1838_v54 = vadd.f32 %v1837_v35, %v10349_v57  ;;  %v1138_v35 = vpack.c.bf16 %v1106_v39, %v1106_v39  ;;  %v10366_v39 = vld [vmem:[#allocation15_spill] sm:$0xff] }
 0x221   : > { %v2162_v38 = vpop.f32.mrf.mxu0 }
 0x222   : > { %v2070_v33 = vpop.f32.mrf.mxu3 }
 0x223   : > { %v2071_v61 = vadd.f32 %v2070_v33, %v1838_v54 }
 0x224   : > { %2588 = vmatmul.bf16.gmra.mxu2 %v2331_v36  ;;  %2766 = vmatmul.bf16.gmra.mxu0 %v2333_v58  ;;  %v242_v36 = vadd.s32 136, %v6772_v22 }
 0x225   : > { %v7625_v23 = vadd.f32 %v2159_v24, %v2071_v61  ;;  %v2312_v24 = vunpack.c.l.b16 %v1137_v18  ;;  %v2313_v61 = vunpack.c.l.b16 %v1138_v35  ;;  %v10372_v35 = vld [vmem:[#allocation59_spill] sm:$0xff] }
 0x226   : > { %v380_v43 = vand.u32 15, %v242_v36 }
 0x227   : > { %10357 = vst [vmem:[#allocation36_spill] sm:$0xff] %v7625_v23  ;;  %2677 = vmatmul.bf16.gmra.mxu3 %v2332_v6  ;;  %v1840_v7 = vpop.f32.mrf.mxu2  ;;  %v2334_v5 = vpack.c.b16 %v2313_v61, %v2312_v24  ;;  %v10373_v24 = vld [vmem:[#allocation60_spill] sm:$0xff] }
 0x228   : > { %v1841_v51 = vadd.f32 %v1840_v7, %v10359_v2  ;;  %vm7637_vm15 = vcmp.eq.s32.totalorder %v380_v43, 15 }
 0x229   : > { %v2164_v57 = vpop.f32.mrf.mxu0  ;;  %v10364_v52 = vsel %vm7637_vm15, 4294967295, %v10363_v52 }
 0x22a   : > { %v2073_v28 = vpop.f32.mrf.mxu3  ;;  %10365 = vst [vmem:[#allocation39_spill] sm:$0xff] %v10364_v52  ;;  %v10376_v52 = vld [vmem:[#allocation61_spill] sm:$0xff] }
 0x22b   : > { %v2074_v54 = vadd.f32 %v2073_v28, %v1841_v51  ;;  %v10367_v51 = vrot.slane %v10366_v39, 1  ;;  %v10368_v28 = vld [vmem:[#allocation14_spill] sm:$0xff] }
 0x22c   : > { %v10369_v34 = vrot.slane %v10368_v28, 1 }
 0x22d   : > { %v7634_v33 = vadd.f32 %v2162_v38, %v2074_v54 }
 0x22e   : > { %v976_v38 = vsel %vm10370_vm10, %v10369_v34, %v10367_v51 }
 0x22f   : > { %10361 = vst [vmem:[#allocation20_spill] sm:$0xff] %v7634_v33  ;;  %v1842_v21 = vpop.f32.mrf.mxu2  ;;  %v1108_v54 = vsel %vm7637_vm15, %v10372_v35, %v976_v38  ;;  %v10377_v33 = vmov 0  ;;  %vm10384_vm15 = vcmp.lt.s32.totalorder %v6772_v22, 7 }
 0x230   : > { %v1843_v40 = vadd.f32 %v1842_v21, %v10362_v42  ;;  %v10374_v21 = vld [vmem:[#allocation58_spill] sm:$0xff] }
 0x231   : > { %v2167_v7 = vpop.f32.mrf.mxu0  ;;  %v1139_v42 = vpack.c.bf16 %v10374_v21, %v10374_v21 }
 0x232   : > { %v2075_v14 = vpop.f32.mrf.mxu3 }
 0x233   : > { %v2076_v2 = vadd.f32 %v2075_v14, %v1843_v40  ;;  %v1140_v40 = vpack.c.bf16 %v1108_v54, %v1108_v54  ;;  %v10380_v54 = vld [vmem:[#allocation17_spill] sm:$0xff] }
 0x234   : > { %2593 = vmatmul.bf16.gmra.mxu2 %v2332_v6  ;;  %2771 = vmatmul.bf16.gmra.mxu0 %v2334_v5  ;;  %v244_v6 = vadd.s32 152, %v6772_v22 }
 0x235   : > { %v7647_v18 = vadd.f32 %v2164_v57, %v2076_v2  ;;  %v2314_v57 = vunpack.c.l.b16 %v1139_v42  ;;  %v2315_v2 = vunpack.c.l.b16 %v1140_v40 }
 0x236   : > { %v394_v28 = vand.u32 15, %v244_v6  ;;  %v10387_v6 = vld [vmem:[#allocation65_spill] sm:$0xff] }
 0x237   : > { %10371 = vst [vmem:[#allocation40_spill] sm:$0xff] %v7647_v18  ;;  %2682 = vmatmul.bf16.gmra.mxu3 %v2333_v58  ;;  %v1845_v36 = vpop.f32.mrf.mxu2  ;;  %v2335_v18 = vpack.c.b16 %v2315_v2, %v2314_v57 }
 0x238   : > { %v1846_v61 = vadd.f32 %v1845_v36, %v10373_v24  ;;  %vm7659_vm10 = vcmp.eq.s32.totalorder %v394_v28, 15  ;;  %v10388_v28 = vld [vmem:[#allocation63_spill] sm:$0xff] }
 0x239   : > { %v2169_v14 = vpop.f32.mrf.mxu0  ;;  %v10378_v33 = vsel %vm7659_vm10, 4294967295, %v10377_v33 }
 0x23a   : > { %v2078_v43 = vpop.f32.mrf.mxu3  ;;  %10379 = vst [vmem:[#allocation41_spill] sm:$0xff] %v10378_v33  ;;  %v10390_v33 = vld [vmem:[#allocation66_spill] sm:$0xff] }
 0x23b   : > { %v2079_v39 = vadd.f32 %v2078_v43, %v1846_v61  ;;  %v10381_v61 = vrot.slane %v10380_v54, 1  ;;  %v10382_v43 = vld [vmem:[#allocation16_spill] sm:$0xff] }
 0x23c   : > { %v10383_v21 = vrot.slane %v10382_v43, 1 }
 0x23d   : > { %v7656_v51 = vadd.f32 %v2167_v7, %v2079_v39 }
 0x23e   : > { %v974_v7 = vsel %vm10384_vm15, %v10383_v21, %v10381_v61 }
 0x23f   : > { %10375 = vst [vmem:[#allocation38_spill] sm:$0xff] %v7656_v51  ;;  %v1847_v34 = vpop.f32.mrf.mxu2  ;;  %v10391_v51 = vmov 0 }
 0x240   : > { %v1848_v38 = vadd.f32 %v1847_v34, %v10376_v52  ;;  %v10386_v52 = vld [vmem:[#allocation64_spill] sm:$0xff]  ;;  %v1141_v34 = vpack.c.bf16 %v10388_v28, %v10388_v28 }
 0x241   : > { %v2172_v36 = vpop.f32.mrf.mxu0  ;;  %v1110_v40 = vsel %vm7659_vm10, %v10386_v52, %v974_v7  ;;  %vm10397_vm10 = vcmp.lt.s32.totalorder %v6772_v22, 7 }
 0x242   : > { %v2080_v35 = vpop.f32.mrf.mxu3 }
 0x243   : > { %v2081_v24 = vadd.f32 %v2080_v35, %v1848_v38  ;;  %v1142_v38 = vpack.c.bf16 %v1110_v40, %v1110_v40  ;;  %v10394_v40 = vrot.slane %v6687_v26, 1 }
 0x244   : > { %2598 = vmatmul.bf16.gmra.mxu2 %v2333_v58  ;;  %2776 = vmatmul.bf16.gmra.mxu0 %v2335_v18  ;;  %v246_v58 = vadd.s32 168, %v6772_v22 }
 0x245   : > { %v7669_v42 = vadd.f32 %v2169_v14, %v2081_v24  ;;  %v2316_v14 = vunpack.c.l.b16 %v1141_v34  ;;  %v2317_v24 = vunpack.c.l.b16 %v1142_v38 }
 0x246   : > { %v408_v43 = vand.u32 15, %v246_v58  ;;  %v10400_v58 = vld [vmem:[#allocation68_spill] sm:$0xff] }
 0x247   : > { %10385 = vst [vmem:[#allocation21_spill] sm:$0xff] %v7669_v42  ;;  %2687 = vmatmul.bf16.gmra.mxu3 %v2334_v5  ;;  %v1850_v39 = vpop.f32.mrf.mxu2  ;;  %v2336_v42 = vpack.c.b16 %v2317_v24, %v2316_v14  ;;  %v1143_v14 = vpack.c.bf16 %v10400_v58, %v10400_v58 }
 0x248   : > { %v1851_v57 = vadd.f32 %v1850_v39, %v10387_v6  ;;  %vm7681_vm15 = vcmp.eq.s32.totalorder %v408_v43, 15 }
 0x249   : > { %v2174_v35 = vpop.f32.mrf.mxu0  ;;  %v10392_v51 = vsel %vm7681_vm15, 4294967295, %v10391_v51 }
 0x24a   : > { %v2083_v2 = vpop.f32.mrf.mxu3  ;;  %10393 = vst [vmem:[#allocation45_spill] sm:$0xff] %v10392_v51  ;;  %v10401_v51 = vmov 0 }
 0x24b   : > { %v2084_v54 = vadd.f32 %v2083_v2, %v1851_v57  ;;  %v10395_v57 = vld [vmem:[#allocation18_spill] sm:$0xff] }
 0x24c   : > { %v10396_v2 = vrot.slane %v10395_v57, 1 }
 0x24d   : > { %v7678_v61 = vadd.f32 %v2172_v36, %v2084_v54 }
 0x24e   : > { %v972_v36 = vsel %vm10397_vm10, %v10396_v2, %v10394_v40 }
 0x24f   : > { %10389 = vst [vmem:[#allocation44_spill] sm:$0xff] %v7678_v61  ;;  %v1852_v21 = vpop.f32.mrf.mxu2 }
 0x250   : > { %v1853_v7 = vadd.f32 %v1852_v21, %v10390_v33  ;;  %v10399_v33 = vld [vmem:[#allocation69_spill] sm:$0xff]  ;;  %v248_v21 = vadd.s32 184, %v6772_v22 }
 0x251   : > { %v2742_v39 = vpop.f32.mrf.mxu0  ;;  %v1112_v34 = vsel %vm7681_vm15, %v10399_v33, %v972_v36  ;;  %vm10406_vm15 = vcmp.lt.s32.totalorder %v6772_v22, 7 }
 0x252   : > { %v2085_v52 = vpop.f32.mrf.mxu3  ;;  %v1144_v26 = vpack.c.bf16 %v1112_v34, %v1112_v34  ;;  %v10404_v34 = vrot.slane %v6715_v46, 1 }
 0x253   : > { %v2086_v6 = vadd.f32 %v2085_v52, %v1853_v7 }
 0x254   : > { %2603 = vmatmul.bf16.gmra.mxu2 %v2334_v5  ;;  %2781 = vmatmul.bf16.gmra.mxu0 %v2336_v42  ;;  %v2318_v5 = vunpack.c.l.b16 %v1143_v14  ;;  %v2319_v52 = vunpack.c.l.b16 %v1144_v26 }
 0x255   : > { %v7691_v28 = vadd.f32 %v2174_v35, %v2086_v6  ;;  %v422_v6 = vand.u32 15, %v248_v21 }
 0x256   : > { %v2337_v2 = vpack.c.b16 %v2319_v52, %v2318_v5 }
 0x257   : > { %10398 = vst [vmem:[#allocation43_spill] sm:$0xff] %v7691_v28  ;;  %2692 = vmatmul.bf16.gmra.mxu3 %v2335_v18  ;;  %v2564_v38 = vpop.f32.mrf.mxu2  ;;  %vm7702_vm10 = vcmp.eq.s32.totalorder %v422_v6, 15 }
 0x258   : > { %v10402_v51 = vsel %vm7702_vm10, 4294967295, %v10401_v51 }
 0x259   : > { %v2744_v43 = vpop.f32.mrf.mxu0  ;;  %10403 = vst [vmem:[#allocation46_spill] sm:$0xff] %v10402_v51 }
 0x25a   : > { %v2653_v54 = vpop.f32.mrf.mxu3 }
 0x25b   : > { %v2654_v24 = vadd.f32 %v2653_v54, %v2564_v38  ;;  %v10405_v38 = vrot.slane %v6690_v27, 1 }
 0x25d   : > { %v2743_v7 = vadd.f32 %v2742_v39, %v2654_v24  ;;  %v970_v39 = vsel %vm10406_vm15, %v10405_v38, %v10404_v34  ;;  %v10408_v24 = vld [vmem:[#allocation71_spill] sm:$0xff] }
 0x25e   : > { %v1114_v58 = vsel %vm7702_vm10, %v7266_v13, %v970_v39  ;;  %v1145_v46 = vpack.c.bf16 %v10408_v24, %v10408_v24  ;;  %v6113_v38 = vld [vmem:[#allocation7 + $0xf8] sm:$0xff]  ;;  %v10410_v39 = vmov 0  ;;  %vm10415_vm10 = vcmp.lt.s32.totalorder %v6772_v22, 7 }
 0x25f   : > { %v7700_v35 = vadd.f32 %v2743_v7, %v7235_v50  ;;  %v2566_v40 = vpop.f32.mrf.mxu2  ;;  %v1146_v27 = vpack.c.bf16 %v1114_v58, %v1114_v58  ;;  %3792 = vmatpush.bf16.msra.mxu1 %v6113_v38  ;;  %v10421_v38 = vrot.slane %v7323_v9, 1 }
 0x260   : > { %v2320_v5 = vunpack.c.l.b16 %v1145_v46 }
 0x261   : > { %v2747_v33 = vpop.f32.mrf.mxu0  ;;  %v2321_v52 = vunpack.c.l.b16 %v1146_v27 }
 0x262   : > { %v2655_v57 = vpop.f32.mrf.mxu3 }
 0x263   : > { %v2656_v36 = vadd.f32 %v2655_v57, %v2566_v40  ;;  %v2338_v13 = vpack.c.b16 %v2321_v52, %v2320_v5 }
 0x264   : > { %2608 = vmatmul.bf16.gmra.mxu2 %v2335_v18  ;;  %2786 = vmatmul.bf16.gmra.mxu0 %v2337_v2 }
 0x265   : > { %v2745_v54 = vadd.f32 %v2744_v43, %v2656_v36  ;;  %v250_v43 = vadd.s32 200, %v6772_v22 }
 0x267   : > { %v7713_v50 = vadd.f32 %v2745_v54, %v7262_v45  ;;  %2697 = vmatmul.bf16.gmra.mxu3 %v2336_v42  ;;  %v2569_v14 = vpop.f32.mrf.mxu2  ;;  %v436_v6 = vand.u32 15, %v250_v43  ;;  %v10413_v54 = vrot.slane %v7318_v12, 1 }
 0x269   : > { %10407 = vst [vmem:[#allocation22_spill] sm:$0xff] %v7713_v50  ;;  %v2749_v7 = vpop.f32.mrf.mxu0  ;;  %vm7724_vm15 = vcmp.eq.s32.totalorder %v436_v6, 15 }
 0x26a   : > { %v2658_v26 = vpop.f32.mrf.mxu3  ;;  %v10411_v39 = vsel %vm7724_vm15, 4294967295, %v10410_v39 }
 0x26b   : > { %v2659_v21 = vadd.f32 %v2658_v26, %v2569_v14  ;;  %10412 = vst [vmem:[#allocation50_spill] sm:$0xff] %v10411_v39 }
 0x26d   : > { %v2748_v18 = vadd.f32 %v2747_v33, %v2659_v21  ;;  %v10414_v33 = vrot.slane %v6718_v47, 1  ;;  %v1147_v47 = vpack.c.bf16 %v7296_v56, %v7296_v56  ;;  %v10420_v56 = vrot.slane %v7364_v1, 1 }
 0x26f   : > { %v7722_v45 = vadd.f32 %v2748_v18, %v7275_v63  ;;  %v2571_v40 = vpop.f32.mrf.mxu2  ;;  %v968_v58 = vsel %vm10415_vm10, %v10414_v33, %v10413_v54  ;;  %v2322_v43 = vunpack.c.l.b16 %v1147_v47 }
 0x270   : > { %v1116_v26 = vsel %vm7724_vm15, %v7306_v59, %v968_v58  ;;  %vm10422_vm15 = vcmp.lt.s32.totalorder %v6772_v22, 7  ;;  %v10424_v58 = vld [vmem:[#allocation76_spill] sm:$0xff] }
 0x271   : > { %10409 = vst [vmem:[#allocation49_spill] sm:$0xff] %v7722_v45  ;;  %v2752_v34 = vpop.f32.mrf.mxu0  ;;  %v1148_v12 = vpack.c.bf16 %v1116_v26, %v1116_v26  ;;  %v2894_v51 = vmul.f32 %v7722_v45, %v7722_v45 }
 0x272   : > { %v2660_v57 = vpop.f32.mrf.mxu3 }
 0x273   : > { %v2661_v36 = vadd.f32 %v2660_v57, %v2571_v40  ;;  %v2323_v18 = vunpack.c.l.b16 %v1148_v12 }
 0x274   : > { %2613 = vmatmul.bf16.gmra.mxu2 %v2336_v42  ;;  %2791 = vmatmul.bf16.gmra.mxu0 %v2338_v13 }
 0x275   : > { %v2750_v63 = vadd.f32 %v2749_v7, %v2661_v36  ;;  %v252_v7 = vadd.s32 216, %v6772_v22  ;;  %v2339_v59 = vpack.c.b16 %v2323_v18, %v2322_v43  ;;  %v10417_v36 = vmov 0 }
 0x277   : > { %v7735_v14 = vadd.f32 %v2750_v63, %v7302_v60  ;;  %2702 = vmatmul.bf16.gmra.mxu3 %v2337_v2  ;;  %v2574_v24 = vpop.f32.mrf.mxu2  ;;  %v450_v5 = vand.u32 15, %v252_v7 }
 0x279   : > { %v2754_v21 = vpop.f32.mrf.mxu0  ;;  %vm7746_vm10 = vcmp.eq.s32.totalorder %v450_v5, 15 }
 0x27a   : > { %v2663_v46 = vpop.f32.mrf.mxu3  ;;  %v10418_v36 = vsel %vm7746_vm10, 4294967295, %v10417_v36 }
 0x27b   : > { %v2664_v27 = vadd.f32 %v2663_v46, %v2574_v24  ;;  %10419 = vst [vmem:[#allocation51_spill] sm:$0xff] %v10418_v36  ;;  %v10425_v46 = vld [vmem:[#allocation74_spill] sm:$0xff] }
 0x27c   : > { %v1149_v1 = vpack.c.bf16 %v10425_v46, %v10425_v46 }
 0x27d   : > { %v2753_v42 = vadd.f32 %v2752_v34, %v2664_v27  ;;  %v966_v34 = vsel %vm10422_vm15, %v10421_v38, %v10420_v56  ;;  %v254_v27 = vadd.s32 232, %v6772_v22  ;;  %v6112_v56 = vld [vmem:[#allocation7 + $0xf0] sm:$0xff]  ;;  %v10426_v38 = vmov 0 }
 0x27e   : > { %v1118_v63 = vsel %vm7746_vm10, %v10424_v58, %v966_v34  ;;  %v10429_v34 = vrot.slane %v7412_v4, 1  ;;  %vm10431_vm10 = vcmp.lt.s32.totalorder %v6772_v22, 7  ;;  %3793 = vmatpush.bf16.msra.mxu1 %v6112_v56  ;;  %v10432_v58 = vld [vmem:[#allocation79_spill] sm:$0xff]  ;;  %v10433_v4 = vld [vmem:[#allocation78_spill] sm:$0xff]  ;;  %v10438_v56 = vld [vmem:[#allocation13_spill] sm:$0xff] }
 0x27f   : > { %v7744_v60 = vadd.f32 %v2753_v42, %v7315_v31  ;;  %v2576_v52 = vpop.f32.mrf.mxu2  ;;  %v10423_v31 = vld [vmem:[#allocation75_spill] sm:$0xff]  ;;  %v1150_v9 = vpack.c.bf16 %v1118_v63, %v1118_v63  ;;  %v464_v43 = vand.u32 15, %v254_v27  ;;  %v10434_v27 = vld [vmem:[#allocation81_spill] sm:$0xff] }
 0x281   : > { %10416 = vst [vmem:[#allocation48_spill] sm:$0xff] %v7744_v60  ;;  %v2757_v57 = vpop.f32.mrf.mxu0  ;;  %v2325_v7 = vunpack.c.l.b16 %v1150_v9  ;;  %vm7768_vm15 = vcmp.eq.s32.totalorder %v464_v43, 15  ;;  %v2896_v61 = vmul.f32 %v7744_v60, %v7744_v60 }
 0x282   : > { %v2665_v6 = vpop.f32.mrf.mxu3  ;;  %v10427_v38 = vsel %vm7768_vm15, 4294967295, %v10426_v38 }
 0x283   : > { %v2666_v40 = vadd.f32 %v2665_v6, %v2576_v52  ;;  %10428 = vst [vmem:[#allocation12_spill] sm:$0xff] %v10427_v38 }
 0x284   : > { %2618 = vmatmul.bf16.gmra.mxu2 %v2337_v2  ;;  %2796 = vmatmul.bf16.gmra.mxu0 %v2339_v59 }
 0x285   : > { %v2755_v54 = vadd.f32 %v2754_v21, %v2666_v40  ;;  %v2324_v21 = vunpack.c.l.b16 %v1149_v1 }
 0x287   : > { %v7757_v33 = vadd.f32 %v2755_v54, %v10423_v31  ;;  %2707 = vmatmul.bf16.gmra.mxu3 %v2338_v13  ;;  %v2579_v26 = vpop.f32.mrf.mxu2  ;;  %v2340_v52 = vpack.c.b16 %v2325_v7, %v2324_v21 }
 0x289   : > { %v2759_v12 = vpop.f32.mrf.mxu0 }
 0x28a   : > { %v2668_v24 = vpop.f32.mrf.mxu3 }
 0x28b   : > { %v2669_v47 = vadd.f32 %v2668_v24, %v2579_v26 }
 0x28d   : > { %v2758_v2 = vadd.f32 %v2757_v57, %v2669_v47  ;;  %v10430_v57 = vrot.slane %v7369_v37, 1  ;;  %v1151_v37 = vpack.c.bf16 %v10433_v4, %v10433_v4 }
 0x28f   : > { %v7766_v42 = vadd.f32 %v2758_v2, %v7361_v25  ;;  %v2581_v18 = vpop.f32.mrf.mxu2  ;;  %v964_v54 = vsel %vm10431_vm10, %v10430_v57, %v10429_v34  ;;  %v10439_v34 = vrot.slane %v10438_v56, 1  ;;  %v10440_v57 = vld [vmem:[#allocation82_spill] sm:$0xff] }
 0x290   : > { %v1120_v63 = vsel %vm7768_vm15, %v10432_v58, %v964_v54  ;;  %vm10442_vm15 = vcmp.lt.s32.totalorder %v6772_v22, 7 }
 0x291   : > { %v2762_v40 = vpop.f32.mrf.mxu0  ;;  %v1152_v46 = vpack.c.bf16 %v1120_v63, %v1120_v63 }
 0x292   : > { %v2670_v5 = vpop.f32.mrf.mxu3 }
 0x293   : > { %v2671_v6 = vadd.f32 %v2670_v5, %v2581_v18 }
 0x294   : > { %2623 = vmatmul.bf16.gmra.mxu2 %v2338_v13  ;;  %2801 = vmatmul.bf16.gmra.mxu0 %v2340_v52  ;;  %v256_v13 = vadd.s32 248, %v6772_v22 }
 0x295   : > { %v2760_v25 = vadd.f32 %v2759_v12, %v2671_v6  ;;  %v2326_v12 = vunpack.c.l.b16 %v1151_v37  ;;  %v10435_v6 = vmov 0 }
 0x296   : > { %v478_v21 = vand.u32 15, %v256_v13 }
 0x297   : > { %v7779_v31 = vadd.f32 %v2760_v25, %v7394_v15  ;;  %2712 = vmatmul.bf16.gmra.mxu3 %v2339_v59  ;;  %v2584_v26 = vpop.f32.mrf.mxu2  ;;  %v2327_v15 = vunpack.c.l.b16 %v1152_v46  ;;  %v10443_v25 = vld [vmem:[#allocation86_spill] sm:$0xff] }
 0x298   : > { %vm7796_vm10 = vcmp.eq.s32.totalorder %v478_v21, 15 }
 0x299   : > { %v7786_v9 = vpop.f32.mrf.mxu0  ;;  %v2341_v18 = vpack.c.b16 %v2327_v15, %v2326_v12  ;;  %v10436_v6 = vsel %vm7796_vm10, 4294967295, %v10435_v6 }
 0x29a   : > { %v2673_v24 = vpop.f32.mrf.mxu3  ;;  %10437 = vst [vmem:[#allocation54_spill] sm:$0xff] %v10436_v6  ;;  %v7849_v6 = vpop.f32.mrf.mxu1 }
 0x29b   : > { %v2674_v1 = vadd.f32 %v2673_v24, %v2584_v26  ;;  %v10444_v24 = vld [vmem:[#allocation84_spill] sm:$0xff] }
 0x29c   : > { %v1153_v4 = vpack.c.bf16 %v10444_v24, %v10444_v24 }
 0x29d   : > { %v2763_v47 = vadd.f32 %v2762_v40, %v2674_v1  ;;  %v10441_v40 = vrot.slane %v10440_v57, 1 }
 0x29f   : > { %v7790_v2 = vadd.f32 %v2763_v47, %v10434_v27  ;;  %v7792_v7 = vpop.f32.mrf.mxu2  ;;  %v994_v54 = vsel %vm10442_vm15, %v10441_v40, %v10439_v34  ;;  %v2358_v47 = vunpack.c.l.b16 %v1153_v4  ;;  %v6111_v34 = vld [vmem:[#allocation7 + $0xe8] sm:$0xff] }
 0x2a0   : > { %v1122_v58 = vsel %vm7796_vm10, %v10443_v25, %v994_v54  ;;  %3794 = vmatpush.bf16.msra.mxu1 %v6111_v34 }
 0x2a1   : > { %v2767_v5 = vpop.f32.mrf.mxu0  ;;  %v1154_v37 = vpack.c.bf16 %v1122_v58, %v1122_v58 }
 0x2a2   : > { %v7794_v43 = vpop.f32.mrf.mxu3 }
 0x2a3   : > { %v2359_v12 = vunpack.c.l.b16 %v1154_v37 }
 0x2a4   : > { %2628 = vmatmul.bf16.gmra.mxu2 %v2339_v59  ;;  %2806 = vmatmul.bf16.gmra.mxu0 %v2341_v18 }
 0x2a5   : > { %v2360_v21 = vpack.c.b16 %v2359_v12, %v2358_v47 }
 0x2a7   : > { %2717 = vmatmul.bf16.gmra.mxu3 %v2340_v52  ;;  %v2589_v63 = vpop.f32.mrf.mxu2 }
 0x2a9   : > { %v7811_v1 = vpop.f32.mrf.mxu0 }
 0x2aa   : > { %v2678_v26 = vpop.f32.mrf.mxu3 }
 0x2ab   : > { %v2679_v46 = vadd.f32 %v2678_v26, %v2589_v63 }
 0x2ad   : > { %v2768_v13 = vadd.f32 %v2767_v5, %v2679_v46 }
 0x2af   : > { %v7814_v59 = vadd.f32 %v2768_v13, %v7465_v53  ;;  %v7816_v15 = vpop.f32.mrf.mxu2 }
 0x2b1   : > { %v2772_v56 = vpop.f32.mrf.mxu0 }
 0x2b2   : > { %v7818_v27 = vpop.f32.mrf.mxu3 }
 0x2b4   : > { %2633 = vmatmul.bf16.gmra.mxu2 %v2340_v52  ;;  %2811 = vmatmul.bf16.gmra.mxu0 %v2360_v21 }
 0x2b7   : > { %2722 = vmatmul.bf16.gmra.mxu3 %v2341_v18  ;;  %v2594_v57 = vpop.f32.mrf.mxu2 }
 0x2b9   : > { %v7820_v5 = vpop.f32.mrf.mxu0 }
 0x2ba   : > { %v2683_v40 = vpop.f32.mrf.mxu3 }
 0x2bb   : > { %v2684_v54 = vadd.f32 %v2683_v40, %v2594_v57 }
 0x2bd   : > { %v2773_v25 = vadd.f32 %v2772_v56, %v2684_v54  ;;  %v6110_v56 = vld [vmem:[#allocation7 + $0xe0] sm:$0xff] }
 0x2be   : > { %3795 = vmatpush.bf16.msra.mxu1 %v6110_v56 }
 0x2bf   : > { %v7823_v53 = vadd.f32 %v2773_v25, %v7480_v16  ;;  %v7825_v58 = vpop.f32.mrf.mxu2 }
 0x2c1   : > { %v2777_v26 = vpop.f32.mrf.mxu0 }
 0x2c2   : > { %v7827_v63 = vpop.f32.mrf.mxu3 }
 0x2c4   : > { %2638 = vmatmul.bf16.gmra.mxu2 %v2341_v18  ;;  %2816 = vmatmul.bf16.gmra.mxu0 %v2341_v18 }
 0x2c7   : > { %2727 = vmatmul.bf16.gmra.mxu3 %v2360_v21  ;;  %v2599_v52 = vpop.f32.mrf.mxu2 }
 0x2c9   : > { %v7829_v37 = vpop.f32.mrf.mxu0 }
 0x2ca   : > { %v2688_v24 = vpop.f32.mrf.mxu3 }
 0x2cb   : > { %v2689_v4 = vadd.f32 %v2688_v24, %v2599_v52 }
 0x2cd   : > { %v2778_v46 = vadd.f32 %v2777_v26, %v2689_v4 }
 0x2cf   : > { %v7832_v13 = vadd.f32 %v2778_v46, %v7492_v48  ;;  %v7834_v47 = vpop.f32.mrf.mxu2 }
 0x2d1   : > { %v2782_v12 = vpop.f32.mrf.mxu0 }
 0x2d2   : > { %v7836_v16 = vpop.f32.mrf.mxu3 }
 0x2d7   : > { %v2604_v34 = vpop.f32.mrf.mxu2 }
 0x2d9   : > { %v7838_v21 = vpop.f32.mrf.mxu0 }
 0x2da   : > { %v2693_v57 = vpop.f32.mrf.mxu3 }
 0x2db   : > { %v2694_v18 = vadd.f32 %v2693_v57, %v2604_v34 }
 0x2dd   : > { %v2783_v40 = vadd.f32 %v2782_v12, %v2694_v18  ;;  %v6109_v18 = vld [vmem:[#allocation7 + $0xd8] sm:$0xff] }
 0x2de   : > { %3796 = vmatpush.bf16.msra.mxu1 %v6109_v18  ;;  %v2892_v18 = vmul.f32 %v7700_v35, %v7700_v35 }
 0x2df   : > { %v7841_v54 = vadd.f32 %v2783_v40, %v7519_v11  ;;  %v7843_v25 = vpop.f32.mrf.mxu2  ;;  %v7858_v40 = vpop.f32.mrf.mxu1 }
 0x2e1   : > { %v2787_v26 = vpop.f32.mrf.mxu0 }
 0x2e2   : > { %v7845_v48 = vpop.f32.mrf.mxu3 }
 0x2e7   : > { %v2609_v52 = vpop.f32.mrf.mxu2  ;;  %v7869_v39 = vpop.f32.mrf.mxu1 }
 0x2e8   : > { %10445 = vst [vmem:[#allocation55_spill] sm:$0xff] %v7869_v39  ;;  %v2897_v39 = vmul.f32 %v7757_v33, %v7757_v33 }
 0x2e9   : > { %v7847_v46 = vpop.f32.mrf.mxu0 }
 0x2ea   : > { %v2698_v24 = vpop.f32.mrf.mxu3 }
 0x2eb   : > { %v2699_v4 = vadd.f32 %v2698_v24, %v2609_v52 }
 0x2ed   : > { %v2788_v56 = vadd.f32 %v2787_v26, %v2699_v4 }
 0x2ef   : > { %v7852_v34 = vadd.f32 %v2788_v56, %v7543_v10  ;;  %v7854_v12 = vpop.f32.mrf.mxu2  ;;  %v2893_v10 = vmul.f32 %v7713_v50, %v7713_v50 }
 0x2f1   : > { %v2792_v57 = vpop.f32.mrf.mxu0 }
 0x2f2   : > { %v7856_v11 = vpop.f32.mrf.mxu3 }
 0x2f7   : > { %v2614_v38 = vpop.f32.mrf.mxu2 }
 0x2f9   : > { %v7860_v24 = vpop.f32.mrf.mxu0 }
 0x2fa   : > { %v2703_v36 = vpop.f32.mrf.mxu3 }
 0x2fb   : > { %v2704_v52 = vadd.f32 %v2703_v36, %v2614_v38 }
 0x2fd   : > { %v2793_v26 = vadd.f32 %v2792_v57, %v2704_v52  ;;  %v2924_v57 = vadd.f32 %v2893_v10, %v2892_v18  ;;  %v2895_v52 = vmul.f32 %v7735_v14, %v7735_v14  ;;  %v2681_v18 = vadd.f32 %v7818_v27, %v7816_v15 }
 0x2fe   : > { %v2899_v27 = vmul.f32 %v7779_v31, %v7779_v31 }
 0x2ff   : > { %v7863_v4 = vadd.f32 %v2793_v26, %v7568_v0  ;;  %v7867_v56 = vpop.f32.mrf.mxu2  ;;  %v2854_v0 = vadd.f32 %v7713_v50, %v7700_v35  ;;  %v2676_v26 = vadd.f32 %v7794_v43, %v7792_v7  ;;  %v2925_v28 = vadd.f32 %v2924_v57, %v2894_v51  ;;  %v10447_v57 = vld [vmem:[#allocation80_spill] sm:$0xff] }
 0x301   : > { %v7877_v38 = vpop.f32.mrf.mxu0  ;;  %v2855_v22 = vadd.f32 %v2854_v0, %v7722_v45  ;;  %v2926_v62 = vadd.f32 %v2925_v28, %v2895_v52  ;;  %v2765_v10 = vadd.f32 %v7786_v9, %v2676_v26  ;;  %v10446_v0 = vld [vmem:[#allocation85_spill] sm:$0xff]  ;;  %v7905_v52 = vpop.f32.mrf.mxu1 }
 0x302   : > { %v7875_v36 = vpop.f32.mrf.mxu3  ;;  %v2209_v45 = vadd.f32 %v10447_v57, %v10446_v0  ;;  %v10448_v0 = vld [vmem:[#allocation87_spill] sm:$0xff] }
 0x303   : > { %v2856_v23 = vadd.f32 %v2855_v22, %v7735_v14  ;;  %v2927_v43 = vadd.f32 %v2926_v62, %v2896_v61  ;;  %v2898_v22 = vmul.f32 %v7766_v42, %v7766_v42  ;;  %v2770_v62 = vadd.f32 %v7811_v1, %v2681_v18 }
 0x304   : > { %v2686_v61 = vadd.f32 %v7827_v63, %v7825_v58  ;;  %v2214_v57 = vadd.f32 %v10448_v0, %v7474_v44  ;;  %v2691_v44 = vadd.f32 %v7836_v16, %v7834_v47  ;;  %v2696_v16 = vadd.f32 %v7845_v48, %v7843_v25 }
 0x305   : > { %v2857_v7 = vadd.f32 %v2856_v23, %v7744_v60  ;;  %v2928_v15 = vadd.f32 %v2927_v43, %v2897_v39  ;;  %v7910_v23 = vadd.f32 %v2765_v10, %v2209_v45  ;;  %v2701_v48 = vadd.f32 %v7856_v11, %v7854_v12 }
 0x306   : > { %v7923_v10 = vadd.f32 %v2770_v62, %v2214_v57  ;;  %v2775_v1 = vadd.f32 %v7820_v5, %v2686_v61  ;;  %v2904_v57 = vmul.f32 %v7823_v53, %v7823_v53  ;;  %v2785_v25 = vadd.f32 %v7838_v21, %v2696_v16 }
 0x307   : > { %v7894_v50 = vpop.f32.mrf.mxu2  ;;  %v2858_v9 = vadd.f32 %v2857_v7, %v7757_v33  ;;  %v2929_v60 = vadd.f32 %v2928_v15, %v2898_v22  ;;  %v2900_v7 = vmul.f32 %v7790_v2, %v7790_v2  ;;  %v2901_v45 = vmul.f32 %v7910_v23, %v7910_v23 }
 0x308   : > { %v2219_v22 = vadd.f32 %v7478_v29, %v7484_v49  ;;  %v2903_v61 = vmul.f32 %v7923_v10, %v7923_v10  ;;  %v2780_v49 = vadd.f32 %v7829_v37, %v2691_v44  ;;  %v2790_v12 = vadd.f32 %v7847_v46, %v2701_v48 }
 0x309   : > { %v7903_v28 = vpop.f32.mrf.mxu0  ;;  %v2859_v26 = vadd.f32 %v2858_v9, %v7766_v42  ;;  %v2930_v43 = vadd.f32 %v2929_v60, %v2899_v27  ;;  %v2902_v60 = vmul.f32 %v7814_v59, %v7814_v59  ;;  %v6108_v27 = vld [vmem:[#allocation7 + $0xd0] sm:$0xff]  ;;  %v7940_v47 = vpop.f32.mrf.mxu1  ;;  %v2706_v11 = vadd.f32 %v7875_v36, %v7867_v56 }
 0x30a   : > { %v7897_v51 = vpop.f32.mrf.mxu3  ;;  %3797 = vmatpush.bf16.msra.mxu1 %v6108_v27 }
 0x30b   : > { %v2860_v39 = vadd.f32 %v2859_v26, %v7779_v31  ;;  %v2931_v9 = vadd.f32 %v2930_v43, %v2900_v7  ;;  %v7938_v26 = vadd.f32 %v2775_v1, %v2219_v22  ;;  %v2224_v7 = vadd.f32 %v7489_v19, %v7507_v30 }
 0x30c   : > { %v2229_v19 = vadd.f32 %v7517_v3, %v7533_v55  ;;  %v2234_v3 = vadd.f32 %v7546_v20, %v7559_v41  ;;  %v2709_v16 = vadd.f32 %v7897_v51, %v7894_v50  ;;  %v2795_v41 = vadd.f32 %v7860_v24, %v2706_v11 }
 0x30d   : > { %v2861_v63 = vadd.f32 %v2860_v39, %v7790_v2  ;;  %v2932_v5 = vadd.f32 %v2931_v9, %v2901_v45  ;;  %v2905_v45 = vmul.f32 %v7938_v26, %v7938_v26  ;;  %v7954_v37 = vadd.f32 %v2780_v49, %v2224_v7 }
 0x30e   : > { %v2908_v49 = vmul.f32 %v7841_v54, %v7841_v54  ;;  %v7982_v36 = vadd.f32 %v2790_v12, %v2234_v3  ;;  %v2910_v50 = vmul.f32 %v7852_v34, %v7852_v34  ;;  %v2239_v51 = vadd.f32 %v7849_v6, %v7581_v17 }
 0x30f   : > { %v2621_v58 = vpop.f32.mrf.mxu2  ;;  %v2862_v62 = vadd.f32 %v2861_v63, %v7910_v23  ;;  %v2933_v0 = vadd.f32 %v2932_v5, %v2902_v60  ;;  %v2906_v60 = vmul.f32 %v7832_v13, %v7832_v13  ;;  %v2907_v21 = vmul.f32 %v7954_v37, %v7954_v37 }
 0x310   : > { %v7967_v5 = vadd.f32 %v2785_v25, %v2229_v19  ;;  %v2911_v24 = vmul.f32 %v7982_v36, %v7982_v36  ;;  %v2912_v6 = vmul.f32 %v7863_v4, %v7863_v4 }
 0x311   : > { %v7933_v15 = vpop.f32.mrf.mxu0  ;;  %v2863_v29 = vadd.f32 %v2862_v62, %v7814_v59  ;;  %v2934_v43 = vadd.f32 %v2933_v0, %v2903_v61  ;;  %v2251_v55 = vpop.f32.mrf.mxu1 }
 0x312   : > { %v2710_v18 = vpop.f32.mrf.mxu3  ;;  %v2909_v56 = vmul.f32 %v7967_v5, %v7967_v5 }
 0x313   : > { %v2864_v39 = vadd.f32 %v2863_v29, %v7923_v10  ;;  %v2935_v22 = vadd.f32 %v2934_v43, %v2904_v57  ;;  %v2711_v7 = vadd.f32 %v2710_v18, %v2621_v58  ;;  %v2242_v58 = vadd.f32 %v7858_v40, %v7590_v8  ;;  %v10450_v8 = vld [vmem:[#allocation35_spill] sm:$0xff] }
 0x314   : > { %v7996_v18 = vadd.f32 %v2795_v41, %v2239_v51  ;;  %v2247_v40 = vadd.f32 %v7905_v52, %v10450_v8 }
 0x315   : > { %v2865_v63 = vadd.f32 %v2864_v39, %v7823_v53  ;;  %v2936_v27 = vadd.f32 %v2935_v22, %v2905_v45  ;;  %v2800_v19 = vadd.f32 %v7903_v28, %v2711_v7 }
 0x316   : > { %v2913_v3 = vmul.f32 %v7996_v18, %v7996_v18 }
 0x317   : > { %v2624_v1 = vpop.f32.mrf.mxu2  ;;  %v2866_v30 = vadd.f32 %v2865_v63, %v7938_v26  ;;  %v2937_v61 = vadd.f32 %v2936_v27, %v2906_v60  ;;  %v2798_v63 = vadd.f32 %v7877_v38, %v2709_v16  ;;  %v10449_v38 = vld [vmem:[#allocation55_spill] sm:$0xff] }
 0x319   : > { %v2804_v9 = vpop.f32.mrf.mxu0  ;;  %v2867_v62 = vadd.f32 %v2866_v30, %v7832_v13  ;;  %v2938_v57 = vadd.f32 %v2937_v61, %v2907_v21  ;;  %v2253_v21 = vpop.f32.mrf.mxu1 }
 0x31a   : > { %v2713_v44 = vpop.f32.mrf.mxu3 }
 0x31b   : > { %v2868_v29 = vadd.f32 %v2867_v62, %v7954_v37  ;;  %v2939_v43 = vadd.f32 %v2938_v57, %v2908_v49  ;;  %v2714_v25 = vadd.f32 %v2713_v44, %v2624_v1  ;;  %v2244_v1 = vadd.f32 %v10449_v38, %v7603_v32  ;;  %v10451_v49 = vld [vmem:[#allocation36_spill] sm:$0xff] }
 0x31c   : > { %v8004_v44 = vadd.f32 %v2798_v63, %v2242_v58  ;;  %v2249_v16 = vadd.f32 %v7940_v47, %v10451_v49  ;;  %v6107_v58 = vld [vmem:[#allocation7 + $0xc8] sm:$0xff]  ;;  %v10454_v49 = vld [vmem:[#allocation38_spill] sm:$0xff] }
 0x31d   : > { %v2869_v46 = vadd.f32 %v2868_v29, %v7841_v54  ;;  %v2940_v48 = vadd.f32 %v2939_v43, %v2909_v56  ;;  %v2803_v27 = vadd.f32 %v7933_v15, %v2714_v25  ;;  %v8012_v61 = vadd.f32 %v2800_v19, %v2244_v1  ;;  %v10453_v19 = vld [vmem:[#allocation40_spill] sm:$0xff]  ;;  %3798 = vmatpush.bf16.msra.mxu1 %v6107_v58 }
 0x31e   : > { %v2914_v52 = vmul.f32 %v8004_v44, %v8004_v44 }
 0x31f   : > { %v2626_v0 = vpop.f32.mrf.mxu2  ;;  %v2870_v45 = vadd.f32 %v2869_v46, %v7967_v5  ;;  %v2941_v60 = vadd.f32 %v2940_v48, %v2910_v50  ;;  %v8019_v46 = vadd.f32 %v2803_v27, %v2247_v40 }
 0x321   : > { %v2807_v39 = vpop.f32.mrf.mxu0  ;;  %v2871_v22 = vadd.f32 %v2870_v45, %v7852_v34  ;;  %v2942_v28 = vadd.f32 %v2941_v60, %v2911_v24  ;;  %v2916_v51 = vmul.f32 %v8019_v46, %v8019_v46  ;;  %v2256_v60 = vpop.f32.mrf.mxu1 }
 0x322   : > { %v2715_v20 = vpop.f32.mrf.mxu3 }
 0x323   : > { %v2716_v30 = vadd.f32 %v2715_v20, %v2626_v0  ;;  %v2872_v17 = vadd.f32 %v2871_v22, %v7982_v36  ;;  %v2943_v15 = vadd.f32 %v2942_v28, %v2912_v6  ;;  %v10452_v20 = vld [vmem:[#allocation20_spill] sm:$0xff] }
 0x324   : > { %v2252_v41 = vadd.f32 %v2251_v55, %v10452_v20 }
 0x325   : > { %v2873_v12 = vadd.f32 %v2872_v17, %v7863_v4  ;;  %v2805_v29 = vadd.f32 %v2804_v9, %v2716_v30  ;;  %v2944_v7 = vadd.f32 %v2943_v15, %v2913_v3  ;;  %v2915_v9 = vmul.f32 %v8012_v61, %v8012_v61 }
 0x326   : > { %v2254_v30 = vadd.f32 %v2253_v21, %v10453_v19 }
 0x327   : > { %v2629_v62 = vpop.f32.mrf.mxu2  ;;  %v2874_v57 = vadd.f32 %v2873_v12, %v7996_v18  ;;  %v8025_v45 = vadd.f32 %v2805_v29, %v2249_v16  ;;  %v2945_v47 = vadd.f32 %v2944_v7, %v2914_v52  ;;  %v2257_v16 = vadd.f32 %v2256_v60, %v10454_v49  ;;  %v10456_v60 = vld [vmem:[#allocation44_spill] sm:$0xff] }
 0x329   : > { %v2809_v0 = vpop.f32.mrf.mxu0  ;;  %v2875_v43 = vadd.f32 %v2874_v57, %v8004_v44  ;;  %v2946_v48 = vadd.f32 %v2945_v47, %v2915_v9  ;;  %v2917_v22 = vmul.f32 %v8025_v45, %v8025_v45  ;;  %v10455_v47 = vld [vmem:[#allocation21_spill] sm:$0xff] }
 0x32a   : > { %v2718_v11 = vpop.f32.mrf.mxu3 }
 0x32b   : > { %v2719_v32 = vadd.f32 %v2718_v11, %v2629_v62  ;;  %v2876_v50 = vadd.f32 %v2875_v43, %v8012_v61  ;;  %v2947_v17 = vadd.f32 %v2946_v48, %v2916_v51 }
 0x32d   : > { %v2808_v56 = vadd.f32 %v2807_v39, %v2719_v32  ;;  %v2877_v55 = vadd.f32 %v2876_v50, %v8019_v46  ;;  %v2948_v62 = vadd.f32 %v2947_v17, %v2917_v22 }
 0x32f   : > { %v8030_v63 = vadd.f32 %v2808_v56, %v2252_v41  ;;  %v2631_v25 = vpop.f32.mrf.mxu2  ;;  %v2878_v6 = vadd.f32 %v2877_v55, %v8025_v45 }
 0x331   : > { %v2918_v38 = vmul.f32 %v8030_v63, %v8030_v63  ;;  %v2812_v27 = vpop.f32.mrf.mxu0  ;;  %v2879_v8 = vadd.f32 %v2878_v6, %v8030_v63 }
 0x332   : > { %v2720_v39 = vpop.f32.mrf.mxu3 }
 0x333   : > { %v2721_v24 = vadd.f32 %v2720_v39, %v2631_v25  ;;  %v2949_v28 = vadd.f32 %v2948_v62, %v2918_v38 }
 0x335   : > { %v2810_v1 = vadd.f32 %v2809_v0, %v2721_v24  ;;  %v2258_v0 = vpop.f32.mrf.mxu1 }
 0x336   : > { %v2259_v50 = vadd.f32 %v2258_v0, %v10455_v47  ;;  %v6120_v0 = vld [vmem:[#allocation7 + $0x130] sm:$0xff]  ;;  %v6127_v47 = vld [vmem:[#allocation7 + $0x168] sm:$0xff] }
 0x337   : > { %v8040_v40 = vadd.f32 %v2810_v1, %v2254_v30  ;;  %v2634_v11 = vpop.f32.mrf.mxu2 }
 0x339   : > { %v2880_v12 = vadd.f32 %v2879_v8, %v8040_v40  ;;  %v2919_v21 = vmul.f32 %v8040_v40, %v8040_v40  ;;  %v2814_v52 = vpop.f32.mrf.mxu0 }
 0x33a   : > { %v2723_v3 = vpop.f32.mrf.mxu3 }
 0x33b   : > { %v2950_v29 = vadd.f32 %v2949_v28, %v2919_v21  ;;  %v2724_v32 = vadd.f32 %v2723_v3, %v2634_v11  ;;  %v6121_v11 = vld [vmem:[#allocation7 + $0x138] sm:$0xff] }
 0x33c   : > { %v6129_v3 = vld [vmem:[#allocation7 + $0x178] sm:$0xff]  ;;  %3881 = vmatpush.bf16.msrb.mxu2 %v6121_v11  ;;  %v6124_v11 = vld [vmem:[#allocation7 + $0x150] sm:$0xff] }
 0x33d   : > { %v2813_v15 = vadd.f32 %v2812_v27, %v2724_v32  ;;  %v2261_v39 = vpop.f32.mrf.mxu1  ;;  %v10457_v32 = vld [vmem:[#allocation43_spill] sm:$0xff]  ;;  %3970 = vmatpush.bf16.msrb.mxu3 %v6129_v3 }
 0x33e   : > { %v2262_v17 = vadd.f32 %v2261_v39, %v10456_v60  ;;  %v6085_v3 = vld [vmem:[#allocation7 + $0x18] sm:$0xff] }
 0x33f   : > { %v8046_v57 = vadd.f32 %v2813_v15, %v2257_v16  ;;  %v2636_v41 = vpop.f32.mrf.mxu2 }
 0x340   : > { %3882 = vmatpush.bf16.msrb.mxu2 %v6120_v0  ;;  %v6115_v0 = vld [vmem:[#allocation7 + $0x108] sm:$0xff] }
 0x341   : > { %v2881_v56 = vadd.f32 %v2880_v12, %v8046_v57  ;;  %v2920_v20 = vmul.f32 %v8046_v57, %v8046_v57  ;;  %v2817_v24 = vpop.f32.mrf.mxu0 }
 0x342   : > { %v2725_v7 = vpop.f32.mrf.mxu3 }
 0x343   : > { %v2951_v43 = vadd.f32 %v2950_v29, %v2920_v20  ;;  %v2726_v9 = vadd.f32 %v2725_v7, %v2636_v41 }
 0x345   : > { %v2815_v51 = vadd.f32 %v2814_v52, %v2726_v9  ;;  %v2263_v8 = vpop.f32.mrf.mxu1  ;;  %v6128_v52 = vld [vmem:[#allocation7 + $0x170] sm:$0xff]  ;;  %v6119_v9 = vld [vmem:[#allocation7 + $0x128] sm:$0xff] }
 0x346   : > { %v2264_v49 = vadd.f32 %v2263_v8, %v10457_v32  ;;  %3971 = vmatpush.bf16.msrb.mxu3 %v6128_v52  ;;  %3883 = vmatpush.bf16.msrb.mxu2 %v6119_v9  ;;  %v6123_v52 = vld [vmem:[#allocation7 + $0x148] sm:$0xff] }
 0x347   : > { %v8052_v25 = vadd.f32 %v2815_v51, %v2259_v50  ;;  %v2639_v22 = vpop.f32.mrf.mxu2  ;;  %v6088_v50 = vld [vmem:[#allocation7 + $0x30] sm:$0xff]  ;;  %v6083_v9 = vld [vmem:[#allocation7 + $0x8] sm:$0xff] }
 0x349   : > { %v2882_v48 = vadd.f32 %v2881_v56, %v8052_v25  ;;  %v2921_v55 = vmul.f32 %v8052_v25, %v8052_v25  ;;  %v2819_v29 = vpop.f32.mrf.mxu0  ;;  %v6089_v56 = vld [vmem:[#allocation7 + $0x38] sm:$0xff] }
 0x34a   : > { %v2728_v58 = vpop.f32.mrf.mxu3  ;;  %4203 = vmatpush.bf16.msrb.mxu0 %v6089_v56  ;;  %3972 = vmatpush.bf16.msrb.mxu3 %v6127_v47  ;;  %v6084_v56 = vld [vmem:[#allocation7 + $0x10] sm:$0xff]  ;;  %v6097_v47 = vld [vmem:[#allocation7 + $0x78] sm:$0xff] }
 0x34b   : > { %v2952_v19 = vadd.f32 %v2951_v43, %v2921_v55  ;;  %v2729_v30 = vadd.f32 %v2728_v58, %v2639_v22  ;;  %v6118_v22 = vld [vmem:[#allocation7 + $0x120] sm:$0xff]  ;;  %v6087_v58 = vld [vmem:[#allocation7 + $0x28] sm:$0xff] }
 0x34c   : > { %3884 = vmatpush.bf16.msrb.mxu2 %v6118_v22 }
 0x34d   : > { %v2818_v6 = vadd.f32 %v2817_v24, %v2729_v30  ;;  %v6126_v24 = vld [vmem:[#allocation7 + $0x160] sm:$0xff] }
 0x34e   : > { %4204 = vmatpush.bf16.msrb.mxu0 %v6088_v50  ;;  %3973 = vmatpush.bf16.msrb.mxu3 %v6126_v24 }
 0x34f   : > { %v8058_v38 = vadd.f32 %v2818_v6, %v2262_v17  ;;  %v2641_v62 = vpop.f32.mrf.mxu2  ;;  %v6117_v6 = vld [vmem:[#allocation7 + $0x118] sm:$0xff] }
 0x350   : > { %3885 = vmatpush.bf16.msrb.mxu2 %v6117_v6 }
 0x351   : > { %v2883_v1 = vadd.f32 %v2882_v48, %v8058_v38  ;;  %v2922_v27 = vmul.f32 %v8058_v38, %v8058_v38 }
 0x352   : > { %v2730_v28 = vpop.f32.mrf.mxu3  ;;  %4205 = vmatpush.bf16.msrb.mxu0 %v6087_v58 }
 0x353   : > { %v2953_v12 = vadd.f32 %v2952_v19, %v2922_v27  ;;  %v2731_v21 = vadd.f32 %v2730_v28, %v2641_v62  ;;  %v6086_v27 = vld [vmem:[#allocation7 + $0x20] sm:$0xff] }
 0x355   : > { %v2820_v16 = vadd.f32 %v2819_v29, %v2731_v21  ;;  %v6116_v21 = vld [vmem:[#allocation7 + $0x110] sm:$0xff] }
 0x356   : > { %4206 = vmatpush.bf16.msrb.mxu0 %v6086_v27  ;;  %3886 = vmatpush.bf16.msrb.mxu2 %v6116_v21 }
 0x357   : > { %v8064_v15 = vadd.f32 %v2820_v16, %v2264_v49  ;;  %v6106_v16 = vld [vmem:[#allocation7 + $0xc0] sm:$0xff] }
 0x358   : > { %3799 = vmatpush.bf16.msra.mxu1 %v6106_v16 }
 0x359   : > { %v2884_v20 = vadd.f32 %v2883_v1, %v8064_v15  ;;  %v2923_v41 = vmul.f32 %v8064_v15, %v8064_v15  ;;  %v6125_v1 = vld [vmem:[#allocation7 + $0x158] sm:$0xff] }
 0x35a   : > { %3974 = vmatpush.bf16.msrb.mxu3 %v6125_v1  ;;  %4207 = vmatpush.bf16.msrb.mxu0 %v6085_v3  ;;  %v10458_v1 = vld [vmem:[#allocation22_spill] sm:$0xff] }
 0x35b   : > { %v2885_v7 = vrot.slane %v2884_v20, 4  ;;  %v2954_v43 = vadd.f32 %v2953_v12, %v2923_v41  ;;  %3887 = vmatpush.bf16.msrb.mxu2 %v6115_v0 }
 0x35c   : > { %4292 = vmatpush.bf16.msrb.mxu1 %v6097_v47 }
 0x35d   : > { %v2886_v51 = vadd.f32 %v2885_v7, %v2884_v20  ;;  %v2955_v39 = vrot.slane %v2954_v43, 4  ;;  %v6114_v7 = vld [vmem:[#allocation7 + $0x100] sm:$0xff] }
 0x35e   : > { %3975 = vmatpush.bf16.msrb.mxu3 %v6124_v11  ;;  %4208 = vmatpush.bf16.msrb.mxu0 %v6084_v56 }
 0x35f   : > { %v2887_v48 = vrot.slane %v2886_v51, 2  ;;  %v2956_v55 = vadd.f32 %v2955_v39, %v2954_v43  ;;  %v6122_v43 = vld [vmem:[#allocation7 + $0x140] sm:$0xff]  ;;  %3888 = vmatpush.bf16.msrb.mxu2 %v6114_v7 }
 0x361   : > { %v2888_v19 = vadd.f32 %v2887_v48, %v2886_v51  ;;  %v2957_v30 = vrot.slane %v2956_v55, 2 }
 0x362   : > { %3976 = vmatpush.bf16.msrb.mxu3 %v6123_v52  ;;  %4209 = vmatpush.bf16.msrb.mxu0 %v6083_v9  ;;  %v10461_v52 = vld [vmem:[#allocation48_spill] sm:$0xff] }
 0x363   : > { %v2889_v60 = vrot.slane %v2888_v19, 1  ;;  %v2958_v17 = vadd.f32 %v2957_v30, %v2956_v55  ;;  %v6082_v55 = vld [vmem:[#allocation7] sm:$0xff] }
 0x365   : > { %v2890_v62 = vadd.f32 %v2889_v60, %v2888_v19  ;;  %v2959_v8 = vrot.slane %v2958_v17, 1 }
 0x366   : > { %3977 = vmatpush.bf16.msrb.mxu3 %v6122_v43  ;;  %4210 = vmatpush.bf16.msrb.mxu0 %v6082_v55 }
 0x367   : > { %v8069_v28 = vmul.f32 0.00390625, %v2890_v62  ;;  %v2960_v12 = vadd.f32 %v2959_v8, %v2958_v17  ;;  %v10459_v62 = vld [vmem:[#allocation49_spill] sm:$0xff] }
 0x369   : > { %v2961_v29 = vmul.f32 0.00390625, %v2960_v12  ;;  %v2962_v32 = vmul.f32 %v8069_v28, %v8069_v28  ;;  %v2995_v49 = vsub.f32 %v8064_v15, %v8069_v28  ;;  %v2990_v15 = vsub.f32 %v8030_v63, %v8069_v28 }
 0x36a   : > { %v2992_v51 = vsub.f32 %v8046_v57, %v8069_v28  ;;  %v2993_v39 = vsub.f32 %v8052_v25, %v8069_v28  ;;  %v2994_v48 = vsub.f32 %v8058_v38, %v8069_v28  ;;  %v2964_v6 = vsub.f32 %v7700_v35, %v8069_v28 }
 0x36b   : > { %v2963_v20 = vsub.f32 %v2961_v29, %v2962_v32  ;;  %v2965_v27 = vsub.f32 %v10458_v1, %v8069_v28  ;;  %v2966_v8 = vsub.f32 %v10459_v62, %v8069_v28  ;;  %v2967_v12 = vsub.f32 %v7735_v14, %v8069_v28 }
 0x36c   : > { %v2968_v56 = vsub.f32 %v10461_v52, %v8069_v28  ;;  %v2969_v14 = vsub.f32 %v7757_v33, %v8069_v28 }
 0x36d   : > { %v2996_v41 = vadd.f32 1e-05, %v2963_v20 }
 0x36f   : > { %6244 = vrsqrt.f32 %v2996_v41  ;;  %vm3003_vm10 = vweird.f32 %v2996_v41 }
 0x375   : > { %v6245_v22 = vpop.eup %6244 }
 0x376   : > { %v2998_v24 = vmul.f32 %v6245_v22, %v2996_v41  ;;  %vm3004_vm15 = vweird.f32 %v6245_v22 }
 0x377   : > { %vm3005_vm11 = vmor %vm3003_vm10, %vm3004_vm15 }
 0x378   : > { %v2999_v58 = vmul.f32 %v6245_v22, %v2998_v24 }
 0x37a   : > { %v3000_v19 = vmul.f32 0.5, %v2999_v58 }
 0x37c   : > { %v3001_v30 = vsub.f32 1.5, %v3000_v19  ;;  %v10463_v19 = vld [vmem:[#allocation23_spill] sm:$0xff] }
 0x37d   : > { %vm10468_vm15 = vcmp.lt.s32.totalorder %v10463_v19, 7 }
 0x37e   : > { %v3002_v60 = vmul.f32 %v6245_v22, %v3001_v30 }
 0x380   : > { %v8085_v17 = vsel %vm3005_vm11, %v6245_v22, %v3002_v60  ;;  %vm10464_vm11 = vcmp.lt.s32.totalorder %v10463_v19, 1 }
 0x381   : > { %v3007_v21 = vmul.f32 %v8085_v17, %v2964_v6  ;;  %v3008_v11 = vmul.f32 %v8085_v17, %v2965_v27  ;;  %v3009_v3 = vmul.f32 %v8085_v17, %v2966_v8  ;;  %v3010_v29 = vmul.f32 %v8085_v17, %v2967_v12  ;;  %vm10466_vm10 = vmmov %vm10464_vm11 }
 0x382   : > { %v3038_v0 = vmul.f32 %v8085_v17, %v2995_v49  ;;  %v3011_v47 = vmul.f32 %v8085_v17, %v2968_v56  ;;  %v8350_v57 = vmul.f32 %v8085_v17, %v2994_v48 }
 0x383   : > { %v8099_v32 = vmax.f32 %v3007_v21, 0.0  ;;  %v3040_v35 = vmax.f32 %v3008_v11, 0.0  ;;  %v3041_v16 = vmax.f32 %v3009_v3, 0.0  ;;  %v8106_v20 = vmax.f32 %v3010_v29, 0.0 }
 0x384   : > { %v8117_v60 = vmax.f32 %v3038_v0, 0.0 }
 0x385   : > { %10460 = vst [vmem:[#allocation53_spill] sm:$0xff] %v8099_v32  ;;  %v3072_v41 = vrot.slane %v3040_v35, 7  ;;  %v3073_v7 = vrot.slane %v3041_v16, 7  ;;  %v3137_v43 = vrot.slane %v3041_v16, 1  ;;  %v3265_v9 = vpack.c.bf16 %v3041_v16, %v3041_v16 }
 0x386   : > { %10462 = vst [vmem:[#allocation56_spill] sm:$0xff] %v8106_v20  ;;  %v3074_v55 = vrot.slane %v8106_v20, 7  ;;  %v10106_v22 = vrot.slane %v8106_v20, 1  ;;  %v3266_v49 = vpack.c.bf16 %v8106_v20, %v8106_v20  ;;  %v3263_v58 = vpack.c.bf16 %v8099_v32, %v8099_v32 }
 0x387   : > { %v3505_v24 = vunpack.c.l.b16 %v3265_v9  ;;  %v3264_v33 = vpack.c.bf16 %v3040_v35, %v3040_v35  ;;  %v3132_v30 = vsel %vm10464_vm11, %v3072_v41, %v3073_v7  ;;  %10465 = vst [vmem:[#allocation15_spill] sm:$0xff] %v8117_v60  ;;  %v3012_v16 = vmul.f32 %v8085_v17, %v2969_v14  ;;  %vm10474_vm11 = vmmov %vm10468_vm15 }
 0x388   : > { %v3506_v6 = vunpack.c.l.b16 %v3266_v49  ;;  %v8123_v1 = vsel %vm10466_vm10, %v3073_v7, %v3074_v55  ;;  %v8129_v27 = vsel %vm10468_vm15, %v3137_v43, %v10106_v22  ;;  %v3537_v62 = vunpack.c.l.b16 %v3263_v58  ;;  %vm10476_vm15 = vmmov %vm10474_vm11 }
 0x389   : > { %10467 = vst [vmem:[#allocation14_spill] sm:$0xff] %v8123_v1  ;;  %v3538_v8 = vunpack.c.l.b16 %v3264_v33  ;;  %v3201_v21 = vsel %vm6844_vm5, %v8129_v27, %v3132_v30  ;;  %v3234_v11 = vpack.c.bf16 %v8123_v1, %v8123_v1  ;;  %v3071_v56 = vrot.slane %v8099_v32, 7  ;;  %vm10472_vm5 = vmmov %vm10466_vm10  ;;  %v6096_v33 = vld [vmem:[#allocation7 + $0x70] sm:$0xff] }
 0x38a   : > { %10469 = vst [vmem:[#allocation59_spill] sm:$0xff] %v8129_v27  ;;  %v8136_v3 = vpack.c.b16 %v3506_v6, %v3505_v24  ;;  %v3233_v29 = vpack.c.bf16 %v3201_v21, %v3201_v21  ;;  %v10107_v9 = vrot.slane %v8117_v60, 7  ;;  %v10105_v49 = vrot.slane %v8099_v32, 1  ;;  %4293 = vmatpush.bf16.msrb.mxu1 %v6096_v33  ;;  %vm10475_vm10 = vmmov %vm10472_vm5 }
 0x38b   : > { %v3565_v0 = vpack.c.b16 %v3538_v8, %v3537_v62  ;;  %v3362_v52 = vunpack.c.l.b16 %v3234_v11  ;;  %v8144_v58 = vmax.f32 %v3011_v47, 0.0  ;;  %v3133_v24 = vsel %vm10472_vm5, %v3071_v56, %v3072_v41 }
 0x38c   : > { %3800 = vmatmul.bf16.vlgmr.msra.gmra.mxu1 %v8136_v3  ;;  %3978 = vmatmul.bf16.vlgmr.msrb.gmra.mxu3 %v8136_v3  ;;  %v3361_v7 = vunpack.c.l.b16 %v3233_v29  ;;  %v3136_v14 = vrot.slane %v3040_v35, 1  ;;  %v8150_v6 = vmax.f32 %v3012_v16, 0.0  ;;  %v3134_v47 = vsel %vm10475_vm10, %v10107_v9, %v3071_v56 }
 0x38d   : > { %3889 = vmatmul.bf16.vlgmr.msrb.gmra.mxu2 %v3565_v0  ;;  %10471 = vst [vmem:[#allocation60_spill] sm:$0xff] %v8144_v58  ;;  %v3267_v12 = vpack.c.bf16 %v8144_v58, %v8144_v58  ;;  %v2972_v21 = vsub.f32 %v7790_v2, %v8069_v28  ;;  %v2973_v56 = vsub.f32 %v7910_v23, %v8069_v28 }
 0x38e   : > { %v8148_v30 = vpack.c.b16 %v3362_v52, %v3361_v7  ;;  %v3196_v62 = vsel %vm10474_vm11, %v3136_v14, %v3137_v43  ;;  %v8163_v35 = vsel %vm10476_vm15, %v10105_v49, %v3136_v14  ;;  %v2971_v43 = vsub.f32 %v7779_v31, %v8069_v28 }
 0x38f   : > { %v8167_v8 = vsel %vm6814_vm3, %v3133_v24, %v3196_v62  ;;  %v3268_v11 = vpack.c.bf16 %v8150_v6, %v8150_v6  ;;  %v3199_v16 = vsel %vm6830_vm4, %v8163_v35, %v3134_v47  ;;  %v3015_v31 = vmul.f32 %v8085_v17, %v2972_v21  ;;  %vm10480_vm3 = vmmov %vm10472_vm5 }
 0x390   : > { %10473 = vst [vmem:[#allocation58_spill] sm:$0xff] %v8148_v30  ;;  %4211 = vmatmul.bf16.vlgmr.msrb.gmra.mxu0 %v8148_v30  ;;  %v3014_v52 = vmul.f32 %v8085_v17, %v2971_v43  ;;  %v3539_v7 = vunpack.c.l.b16 %v3267_v12  ;;  %v3231_v33 = vpack.c.bf16 %v3199_v16, %v3199_v16  ;;  %v3232_v62 = vpack.c.bf16 %v3133_v24, %v3133_v24  ;;  %vm10481_vm4 = vmmov %vm10480_vm3 }
 0x391   : > { %v3540_v14 = vunpack.c.l.b16 %v3268_v11  ;;  %v3016_v2 = vmul.f32 %v8085_v17, %v2973_v56  ;;  %v2970_v41 = vsub.f32 %v7766_v42, %v8069_v28  ;;  %v8189_v29 = vmax.f32 %v3015_v31, 0.0  ;;  %vm10483_vm5 = vmmov %vm10474_vm11 }
 0x392   : > { %v8187_v49 = vmax.f32 %v3014_v52, 0.0  ;;  %v3393_v23 = vunpack.c.l.b16 %v3231_v33  ;;  %v3394_v22 = vunpack.c.l.b16 %v3232_v62  ;;  %v2976_v9 = vsub.f32 %v7823_v53, %v8069_v28  ;;  %vm10488_vm11 = vmmov %vm10483_vm5 }
 0x393   : > { %v3013_v47 = vmul.f32 %v8085_v17, %v2970_v41  ;;  %v8192_v43 = vpack.c.b16 %v3540_v14, %v3539_v7  ;;  %v8194_v21 = vmax.f32 %v3016_v2, 0.0  ;;  %v3079_v24 = vrot.slane %v8189_v29, 7  ;;  %vm10489_vm10 = vmmov %vm10480_vm3 }
 0x394   : > { %v10111_v12 = vrot.slane %v8187_v49, 7  ;;  %v8202_v11 = vpack.c.b16 %v3394_v22, %v3393_v23  ;;  %v10109_v56 = vrot.slane %v8189_v29, 1  ;;  %v3270_v7 = vpack.c.bf16 %v8187_v49, %v8187_v49  ;;  %vm10490_vm15 = vmmov %vm10483_vm5 }
 0x395   : > { %v8200_v42 = vmax.f32 %v3013_v47, 0.0  ;;  %v10110_v16 = vrot.slane %v8194_v21, 7  ;;  %v2974_v41 = vsub.f32 %v7814_v59, %v8069_v28  ;;  %v2975_v47 = vsub.f32 %v7923_v10, %v8069_v28 }
 0x396   : > { %10479 = vst [vmem:[#allocation61_spill] sm:$0xff] %v8202_v11  ;;  %v3126_v52 = vsel %vm10480_vm3, %v10111_v12, %v3079_v24  ;;  %v2980_v59 = vsub.f32 %v7841_v54, %v8069_v28  ;;  %v3542_v50 = vunpack.c.l.b16 %v3270_v7  ;;  %v2982_v53 = vsub.f32 %v7852_v34, %v8069_v28 }
 0x397   : > { %v8216_v31 = vsel %vm10481_vm4, %v3079_v24, %v10110_v16  ;;  %v3269_v22 = vpack.c.bf16 %v8200_v42, %v8200_v42  ;;  %v2986_v54 = vsub.f32 %v8004_v44, %v8069_v28  ;;  %v2988_v34 = vsub.f32 %v8019_v46, %v8069_v28  ;;  %vm10493_vm4 = vmmov %vm10480_vm3 }
 0x398   : > { %10482 = vst [vmem:[#allocation17_spill] sm:$0xff] %v8216_v31  ;;  %v3240_v33 = vpack.c.bf16 %v8216_v31, %v8216_v31  ;;  %v10112_v44 = vrot.slane %v8144_v58, 1  ;;  %v10115_v46 = vrot.slane %v8200_v42, 1  ;;  %v10492_v25 = vrot.slane %v8187_v49, 7 }
 0x399   : > { %v3541_v62 = vunpack.c.l.b16 %v3269_v22  ;;  %v10114_v22 = vrot.slane %v8150_v6, 1  ;;  %v8295_v12 = vmul.f32 %v8085_v17, %v2988_v34  ;;  %v3272_v34 = vpack.c.bf16 %v8194_v21, %v8194_v21 }
 0x39a   : > { %v3400_v24 = vunpack.c.l.b16 %v3240_v33 }
 0x39c   : > { %3805 = vmatmul.bf16.gmra.mxu1 %v3565_v0  ;;  %3983 = vmatmul.bf16.gmra.mxu3 %v8192_v43  ;;  %v10108_v0 = vrot.slane %v8194_v21, 1 }
 0x39d   : > { %3894 = vmatmul.bf16.gmra.mxu2 %v8136_v3 }
 0x39e   : > { %v8228_v14 = vsel %vm10483_vm5, %v10109_v56, %v10108_v0  ;;  %v2977_v0 = vsub.f32 %v7938_v26, %v8069_v28  ;;  %v2978_v56 = vsub.f32 %v7832_v13, %v8069_v28  ;;  %v2984_v13 = vsub.f32 %v7863_v4, %v8069_v28 }
 0x39f   : > { %10484 = vst [vmem:[#allocation16_spill] sm:$0xff] %v8228_v14  ;;  %v3207_v2 = vsel %vm6956_vm8, %v8228_v14, %v3126_v52  ;;  %v2979_v52 = vsub.f32 %v7954_v37, %v8069_v28  ;;  %v3075_v4 = vrot.slane %v8144_v58, 7  ;;  %v8271_v26 = vpack.c.b16 %v3542_v50, %v3541_v62  ;;  %vm10487_vm8 = vmmov %vm10480_vm3 }
 0x3a0   : > { %4216 = vmatmul.bf16.gmra.mxu0 %v8202_v11  ;;  %v3239_v23 = vpack.c.bf16 %v3207_v2, %v3207_v2  ;;  %v3076_v37 = vrot.slane %v8150_v6, 7  ;;  %v10113_v2 = vrot.slane %v8187_v49, 1  ;;  %v3021_v33 = vmul.f32 %v8085_v17, %v2978_v56 }
 0x3a1   : > { %v8283_v50 = vmul.f32 %v8085_v17, %v2980_v59  ;;  %v8286_v62 = vmul.f32 %v8085_v17, %v2982_v53  ;;  %v8289_v16 = vmul.f32 %v8085_v17, %v2984_v13  ;;  %v3130_v56 = vsel %vm10487_vm8, %v3074_v55, %v3075_v4  ;;  %v6095_v59 = vld [vmem:[#allocation7 + $0x68] sm:$0xff] }
 0x3a2   : > { %v3399_v10 = vunpack.c.l.b16 %v3239_v23  ;;  %v3017_v23 = vmul.f32 %v8085_v17, %v2974_v41  ;;  %v3019_v41 = vmul.f32 %v8085_v17, %v2976_v9  ;;  %v8303_v9 = vmul.f32 %v8085_v17, %v2990_v15  ;;  %4294 = vmatpush.bf16.msrb.mxu1 %v6095_v59 }
 0x3a3   : > { %v3020_v63 = vmul.f32 %v8085_v17, %v2977_v0  ;;  %v8331_v55 = vsel %vm10490_vm15, %v10115_v46, %v10113_v2  ;;  %v3035_v0 = vmul.f32 %v8085_v17, %v2992_v51  ;;  %v8355_v51 = vsel %vm10480_vm3, %v3075_v4, %v3076_v37  ;;  %vm10520_vm15 = vmmov %vm10480_vm3 }
 0x3a4   : > { %v8263_v7 = vpack.c.b16 %v3400_v24, %v3399_v10  ;;  %v3018_v24 = vmul.f32 %v8085_v17, %v2975_v47  ;;  %v3077_v10 = vrot.slane %v8200_v42, 7  ;;  %v8292_v47 = vmul.f32 %v8085_v17, %v2986_v54 }
 0x3a5   : > { %v8319_v15 = vmax.f32 %v3017_v23, 0.0  ;;  %v3271_v54 = vpack.c.bf16 %v8189_v29, %v8189_v29  ;;  %v3022_v23 = vmul.f32 %v8085_v17, %v2979_v52  ;;  %v8371_v2 = vmax.f32 %v3020_v63, 0.0 }
 0x3a6   : > { %10486 = vst [vmem:[#allocation64_spill] sm:$0xff] %v8263_v7  ;;  %v8321_v53 = vmax.f32 %v3018_v24, 0.0  ;;  %v3128_v13 = vsel %vm10489_vm10, %v3076_v37, %v3077_v10  ;;  %v3036_v24 = vmul.f32 %v8085_v17, %v2993_v39  ;;  %v8364_v39 = vsel %vm10493_vm4, %v3077_v10, %v10492_v25 }
 0x3a7   : > { %v3205_v48 = vsel %vm6915_vm7, %v8331_v55, %v3128_v13  ;;  %v8373_v37 = vmax.f32 %v3021_v33, 0.0  ;;  %v3081_v4 = vrot.slane %v8319_v15, 7  ;;  %v3543_v10 = vunpack.c.l.b16 %v3271_v54  ;;  %vm10499_vm7 = vmmov %vm10483_vm5 }
 0x3a8   : > { %v10126_v59 = vrot.slane %v8321_v53, 1  ;;  %v3544_v25 = vunpack.c.l.b16 %v3272_v34  ;;  %v8380_v46 = vmax.f32 %v3022_v23, 0.0  ;;  %v3273_v33 = vpack.c.bf16 %v8319_v15, %v8319_v15  ;;  %vm10501_vm5 = vmmov %vm10480_vm3 }
 0x3a9   : > { %v3274_v13 = vpack.c.bf16 %v8321_v53, %v8321_v53  ;;  %v3276_v34 = vpack.c.bf16 %v8371_v2, %v8371_v2  ;;  %v3277_v23 = vpack.c.bf16 %v8373_v37, %v8373_v37  ;;  %v3328_v11 = vpack.c.bf16 %v8167_v8, %v8167_v8  ;;  %vm10513_vm8 = vmmov %vm10499_vm7 }
 0x3aa   : > { %v8413_v27 = vpack.c.b16 %v3544_v25, %v3543_v10  ;;  %v3278_v1 = vpack.c.bf16 %v8380_v46, %v8380_v46  ;;  %v3545_v58 = vunpack.c.l.b16 %v3273_v33  ;;  %v10500_v60 = vrot.slane %v8321_v53, 7  ;;  %vm10519_vm10 = vmmov %vm10499_vm7 }
 0x3ab   : > { %v3548_v25 = vunpack.c.l.b16 %v3276_v34  ;;  %v3549_v31 = vunpack.c.l.b16 %v3277_v23 }
 0x3ac   : > { %3810 = vmatmul.bf16.gmra.mxu1 %v8136_v3  ;;  %3988 = vmatmul.bf16.gmra.mxu3 %v8271_v26  ;;  %v8316_v3 = vsel %vm10488_vm11, %v10112_v44, %v10114_v22  ;;  %v8369_v44 = vmax.f32 %v3019_v41, 0.0  ;;  %v8378_v22 = vmax.f32 %v3035_v0, 0.0  ;;  %v3236_v41 = vpack.c.bf16 %v8355_v51, %v8355_v51  ;;  %vm10518_vm11 = vmmov %vm10480_vm3 }
 0x3ad   : > { %3899 = vmatmul.bf16.gmra.mxu2 %v8192_v43  ;;  %v3203_v52 = vsel %vm6872_vm6, %v8316_v3, %v3130_v56  ;;  %v3237_v56 = vpack.c.bf16 %v3205_v48, %v3205_v48  ;;  %v3238_v0 = vpack.c.bf16 %v8364_v39, %v8364_v39  ;;  %vm10497_vm6 = vmmov %vm10480_vm3  ;;  %v10498_v48 = vrot.slane %v8319_v15, 1 }
 0x3ae   : > { %10495 = vst [vmem:[#allocation65_spill] sm:$0xff] %v8378_v22  ;;  %v3235_v38 = vpack.c.bf16 %v3203_v52, %v3203_v52  ;;  %v3275_v54 = vpack.c.bf16 %v8369_v44, %v8369_v44  ;;  %v10496_v52 = vrot.slane %v8194_v21, 7  ;;  %v3396_v20 = vunpack.c.l.b16 %v3236_v41 }
 0x3af   : > { %v8407_v32 = vsel %vm10499_vm7, %v10498_v48, %v10126_v59  ;;  %v8421_v48 = vsel %vm10501_vm5, %v3081_v4, %v10500_v60  ;;  %v3546_v59 = vunpack.c.l.b16 %v3274_v13  ;;  %v3397_v7 = vunpack.c.l.b16 %v3237_v56  ;;  %vm10531_vm5 = vmmov %vm10493_vm4 }
 0x3b0   : > { %4221 = vmatmul.bf16.gmra.mxu0 %v8148_v30  ;;  %v3124_v63 = vsel %vm10497_vm6, %v10496_v52, %v3081_v4  ;;  %v3327_v30 = vpack.c.bf16 %v8163_v35, %v8163_v35  ;;  %v3395_v52 = vunpack.c.l.b16 %v3235_v38  ;;  %v3398_v35 = vunpack.c.l.b16 %v3238_v0 }
 0x3b1   : > { %v3209_v8 = vsel %vm6998_vm9, %v8407_v32, %v3124_v63  ;;  %v3547_v10 = vunpack.c.l.b16 %v3275_v54  ;;  %v10503_v38 = vsub.f32 %v7967_v5, %v8069_v28  ;;  %v3550_v33 = vunpack.c.l.b16 %v3278_v1  ;;  %vm10509_vm9 = vmmov %vm10480_vm3 }
 0x3b2   : > { %v3242_v60 = vpack.c.bf16 %v8421_v48, %v8421_v48  ;;  %v10131_v4 = vrot.slane %v8369_v44, 7  ;;  %v10130_v56 = vrot.slane %v8371_v2, 7  ;;  %v8434_v13 = vmax.f32 %v3036_v24, 0.0  ;;  %vm10524_vm3 = vmmov %vm10499_vm7 }
 0x3b3   : > { %v3024_v41 = vmul.f32 %v8085_v17, %v10503_v38  ;;  %v8437_v63 = vunpack.c.l.b16 %v3327_v30  ;;  %v3241_v5 = vpack.c.bf16 %v3209_v8, %v3209_v8  ;;  %v8441_v0 = vunpack.c.l.b16 %v3328_v11  ;;  %vm10528_vm6 = vmmov %vm10524_vm3 }
 0x3b4   : > { %10504 = vst [vmem:[#allocation63_spill] sm:$0xff] %v8434_v13  ;;  %v8444_v1 = vpack.c.b16 %v3396_v20, %v3395_v52  ;;  %v10135_v54 = vrot.slane %v8369_v44, 1  ;;  %v10132_v24 = vrot.slane %v8371_v2, 1  ;;  %v8448_v34 = vpack.c.b16 %v3546_v59, %v3545_v58  ;;  %vm10529_vm7 = vmmov %vm10493_vm4 }
 0x3b5   : > { %v8450_v23 = vpack.c.b16 %v3398_v35, %v3397_v7  ;;  %v8452_v30 = vpack.c.b16 %v3548_v25, %v3547_v10  ;;  %v8457_v8 = vpack.c.b16 %v3550_v33, %v3549_v31  ;;  %v8459_v11 = vunpack.c.l.b16 %v3242_v60 }
 0x3b6   : > { %10505 = vst [vmem:[#allocation66_spill] sm:$0xff] %v8444_v1  ;;  %v8461_v38 = vmax.f32 %v3024_v41, 0.0  ;;  %v8469_v20 = vsel %vm10509_vm9, %v10131_v4, %v10130_v56  ;;  %v8472_v58 = vunpack.c.l.b16 %v3241_v5  ;;  %v10511_v31 = vsub.f32 %v7982_v36, %v8069_v28  ;;  %vm10534_vm9 = vmmov %vm10493_vm4 }
 0x3b7   : > { %10506 = vst [vmem:[#allocation18_spill] sm:$0xff] %v8450_v23  ;;  %v8483_v52 = vmax.f32 %v8303_v9, 0.0  ;;  %v8491_v35 = vsel %vm10513_vm8, %v10135_v54, %v10132_v24  ;;  %v8494_v36 = vmax.f32 %v8286_v62, 0.0  ;;  %v10134_v10 = vrot.slane %v8373_v37, 7  ;;  %vm10537_vm8 = vmmov %vm10524_vm3 }
 0x3b8   : > { %10507 = vst [vmem:[#allocation69_spill] sm:$0xff] %v8457_v8  ;;  %v3026_v7 = vmul.f32 %v8085_v17, %v10511_v31  ;;  %v10137_v25 = vrot.slane %v8373_v37, 1  ;;  %v10514_v9 = vsub.f32 %v8025_v45, %v8069_v28  ;;  %v10136_v5 = vrot.slane %v8380_v46, 1 }
 0x3b9   : > { %10508 = vst [vmem:[#allocation68_spill] sm:$0xff] %v8459_v11  ;;  %v3289_v60 = vpack.c.bf16 %v8483_v52, %v8483_v52  ;;  %v10516_v62 = vsub.f32 %v7996_v18, %v8069_v28  ;;  %v10138_v56 = vrot.slane %v8461_v38, 7  ;;  %v10517_v45 = vsub.f32 %v8012_v61, %v8069_v28 }
 0x3ba   : > { %10510 = vst [vmem:[#allocation71_spill] sm:$0xff] %v8472_v58  ;;  %v3032_v41 = vmul.f32 %v8085_v17, %v10514_v9  ;;  %v8514_v4 = vmax.f32 %v3026_v7, 0.0  ;;  %v8531_v7 = vmax.f32 %v8289_v16, 0.0  ;;  %v3291_v61 = vpack.c.bf16 %v8378_v22, %v8378_v22 }
 0x3bb   : > { %v3028_v31 = vmul.f32 %v8085_v17, %v10516_v62  ;;  %v3561_v24 = vunpack.c.l.b16 %v3289_v60  ;;  %v8547_v16 = vsel %vm10519_vm10, %v10137_v25, %v10136_v5  ;;  %v3097_v62 = vrot.slane %v8483_v52, 7  ;;  %vm10543_vm10 = vmmov %vm10524_vm3 }
 0x3bc   : > { %3815 = vmatmul.bf16.gmra.mxu1 %v8192_v43  ;;  %3993 = vmatmul.bf16.gmra.mxu3 %v8413_v27  ;;  %v8455_v43 = vmax.f32 %v8283_v50, 0.0  ;;  %v10512_v50 = vsub.f32 %v8040_v40, %v8069_v28  ;;  %v10133_v40 = vrot.slane %v8380_v46, 7  ;;  %v10140_v25 = vrot.slane %v8514_v4, 7 }
 0x3bd   : > { %3904 = vmatmul.bf16.gmra.mxu2 %v8271_v26  ;;  %v10546_v8 = vrot.slane %v8434_v13, 7 }
 0x3be   : > { %v3034_v59 = vmul.f32 %v8085_v17, %v10512_v50  ;;  %v10139_v50 = vrot.slane %v8455_v43, 7  ;;  %v8528_v18 = vsel %vm10518_vm11, %v10134_v10, %v10133_v40  ;;  %v8549_v40 = vmax.f32 %v3028_v31, 0.0  ;;  %vm10540_vm11 = vmmov %vm10493_vm4 }
 0x3bf   : > { %v8560_v10 = vmax.f32 %v8292_v47, 0.0  ;;  %v10141_v31 = vrot.slane %v8494_v36, 7 }
 0x3c0   : > { %4226 = vmatmul.bf16.gmra.mxu0 %v8444_v1  ;;  %v8503_v33 = vmax.f32 %v3034_v59, 0.0  ;;  %v3030_v59 = vmul.f32 %v8085_v17, %v10517_v45  ;;  %v8537_v17 = vmax.f32 %v3032_v41, 0.0  ;;  %v3292_v45 = vpack.c.bf16 %v8434_v13, %v8434_v13 }
 0x3c1   : > { %v8557_v41 = vsel %vm10520_vm15, %v10139_v50, %v10138_v56  ;;  %v10522_v56 = vrot.slane %v8461_v38, 1  ;;  %v10526_v50 = vrot.slane %v8514_v4, 1  ;;  %v10536_v1 = vrot.slane %v8531_v7, 1  ;;  %vm10547_vm15 = vmmov %vm10493_vm4 }
 0x3c2   : > { %10515 = vst [vmem:[#allocation75_spill] sm:$0xff] %v8503_v33  ;;  %v3290_v9 = vpack.c.bf16 %v8503_v33, %v8503_v33  ;;  %v8562_v54 = vmax.f32 %v3030_v59, 0.0  ;;  %v3564_v5 = vunpack.c.l.b16 %v3292_v45  ;;  %v3098_v28 = vrot.slane %v8503_v33, 7 }
 0x3c3   : > { %v10532_v45 = vrot.slane %v8549_v40, 7  ;;  %v10541_v11 = vrot.slane %v8503_v33, 1 }
 0x3c4   : > { %v3562_v60 = vunpack.c.l.b16 %v3290_v9  ;;  %v3563_v9 = vunpack.c.l.b16 %v3291_v61  ;;  %v10523_v61 = vrot.slane %v8455_v43, 1 }
 0x3c6   : > { %v8564_v14 = vpack.c.b16 %v3562_v60, %v3561_v24  ;;  %v8576_v47 = vsel %vm10524_vm3, %v10523_v61, %v10522_v56  ;;  %v8579_v59 = vpack.c.b16 %v3564_v5, %v3563_v9  ;;  %v3096_v60 = vrot.slane %v8537_v17, 7  ;;  %v6094_v24 = vld [vmem:[#allocation7 + $0x60] sm:$0xff]  ;;  %vm10549_vm3 = vmmov %vm10493_vm4 }
 0x3c7   : > { %v10527_v56 = vrot.slane %v8494_v36, 1  ;;  %v8610_v9 = vmax.f32 %v8295_v12, 0.0  ;;  %v8614_v5 = vsel %vm10529_vm7, %v3097_v62, %v3098_v28  ;;  %4295 = vmatpush.bf16.msrb.mxu1 %v6094_v24  ;;  %v3099_v12 = vrot.slane %v8378_v22, 7 }
 0x3c8   : > { %10521 = vst [vmem:[#allocation76_spill] sm:$0xff] %v8564_v14  ;;  %v10535_v24 = vrot.slane %v8549_v40, 1 }
 0x3c9   : > { %10525 = vst [vmem:[#allocation74_spill] sm:$0xff] %v8579_v59  ;;  %v8607_v61 = vsel %vm10528_vm6, %v10527_v56, %v10526_v50  ;;  %v3258_v50 = vpack.c.bf16 %v8614_v5, %v8614_v5  ;;  %v10538_v59 = vrot.slane %v8562_v54, 7  ;;  %v10539_v56 = vrot.slane %v8560_v10, 7 }
 0x3ca   : > { %10530 = vst [vmem:[#allocation79_spill] sm:$0xff] %v8614_v5  ;;  %v8641_v14 = vsel %vm10537_vm8, %v10536_v1, %v10535_v24  ;;  %v10553_v1 = vrot.slane %v8562_v54, 1 }
 0x3cb   : > { %v3418_v33 = vunpack.c.l.b16 %v3258_v50  ;;  %v3159_v50 = vrot.slane %v8610_v9, 1 }
 0x3cc   : > { %3820 = vmatmul.bf16.gmra.mxu1 %v8271_v26  ;;  %3998 = vmatmul.bf16.gmra.mxu3 %v8448_v34  ;;  %v8599_v26 = vsel %vm10493_vm4, %v10141_v31, %v10140_v25  ;;  %v3108_v31 = vsel %vm10531_vm5, %v3096_v60, %v3097_v62  ;;  %v10533_v25 = vrot.slane %v8531_v7, 7  ;;  %vm10552_vm4 = vmmov %vm10528_vm6 }
 0x3cd   : > { %3909 = vmatmul.bf16.gmra.mxu2 %v8413_v27  ;;  %vm10558_vm6 = vmmov %vm10549_vm3 }
 0x3ce   : > { %v8633_v62 = vsel %vm10534_vm9, %v10533_v25, %v10532_v45  ;;  %v10542_v25 = vrot.slane %v8483_v52, 1 }
 0x3d0   : > { %4231 = vmatmul.bf16.gmra.mxu0 %v8450_v23  ;;  %v8649_v23 = vsel %vm10540_vm11, %v10539_v56, %v10538_v59  ;;  %v8657_v45 = vsel %vm10543_vm10, %v10542_v25, %v10541_v11  ;;  %v8667_v59 = vsel %vm10547_vm15, %v3099_v12, %v10546_v8  ;;  %v3106_v56 = vsel %vm10549_vm3, %v3098_v28, %v3099_v12 }
 0x3d1   : > { %10544 = vst [vmem:[#allocation78_spill] sm:$0xff] %v8657_v45  ;;  %v3225_v24 = vsel %vm7330_vm2, %v8657_v45, %v3108_v31  ;;  %v10550_v11 = vrot.slane %v8434_v13, 1  ;;  %v10551_v25 = vrot.slane %v8378_v22, 1  ;;  %v3260_v31 = vpack.c.bf16 %v8667_v59, %v8667_v59  ;;  %vm10555_vm2 = vmmov %vm10552_vm4 }
 0x3d2   : > { %10548 = vst [vmem:[#allocation81_spill] sm:$0xff] %v8667_v59  ;;  %v3257_v5 = vpack.c.bf16 %v3225_v24, %v3225_v24  ;;  %v10554_v8 = vrot.slane %v8560_v10, 1  ;;  %v10557_v22 = vrot.slane %v8610_v9, 7  ;;  %v10560_v12 = vrot.slane %v8150_v6, 1 }
 0x3d3   : > { %v8677_v58 = vsel %vm10552_vm4, %v10551_v25, %v10550_v11  ;;  %v8695_v11 = vpack.c.b16 %v8441_v0, %v8437_v63  ;;  %v10156_v25 = vrot.slane %v8537_v17, 1  ;;  %v3420_v45 = vunpack.c.l.b16 %v3260_v31 }
 0x3d4   : > { %v8687_v28 = vsel %vm10555_vm2, %v10554_v8, %v10553_v1  ;;  %v3227_v24 = vsel %vm7376_vm0, %v8677_v58, %v3106_v56  ;;  %v3417_v59 = vunpack.c.l.b16 %v3257_v5  ;;  %v8702_v1 = vsel %vm10558_vm6, %v10557_v22, %v3096_v60  ;;  %vm10561_vm0 = vmmov %vm10555_vm2 }
 0x3d5   : > { %v3259_v13 = vpack.c.bf16 %v3227_v24, %v3227_v24  ;;  %v10559_v8 = vrot.slane %v8200_v42, 1  ;;  %v3331_v63 = vpack.c.bf16 %v8316_v3, %v8316_v3  ;;  %v10562_v0 = vrot.slane %v8189_v29, 1  ;;  %vm10564_vm7 = vmmov %vm10561_vm0 }
 0x3d6   : > { %v10563_v5 = vrot.slane %v8187_v49, 1  ;;  %v8719_v22 = vmax.f32 %v8350_v57, 0.0  ;;  %v8721_v60 = vpack.c.b16 %v3418_v33, %v3417_v59  ;;  %v3333_v49 = vpack.c.bf16 %v8331_v55, %v8331_v55  ;;  %vm10567_vm5 = vmmov %vm10561_vm0 }
 0x3d7   : > { %v3192_v56 = vsel %vm10561_vm0, %v10560_v12, %v10559_v8  ;;  %v3419_v42 = vunpack.c.l.b16 %v3259_v13  ;;  %v4506_v12 = vunpack.c.l.b16 %v3331_v63  ;;  %v8737_v57 = vsel %vm10567_vm5, %v3159_v50, %v10156_v25  ;;  %v10571_v63 = vld [vmem:[#allocation17_spill] sm:$0xff]  ;;  %vm10585_vm9 = vmmov %vm10561_vm0 }
 0x3d8   : > { %v3190_v31 = vsel %vm10564_vm7, %v10563_v5, %v10562_v0  ;;  %v3300_v24 = vsel %vm7495_vm14, %v8355_v51, %v3192_v56  ;;  %v10568_v33 = vrot.slane %v8319_v15, 1  ;;  %v10569_v59 = vrot.slane %v8194_v21, 1  ;;  %vm10570_vm14 = vmmov %vm10561_vm0 }
 0x3d9   : > { %v3332_v8 = vpack.c.bf16 %v3300_v24, %v3300_v24  ;;  %v3302_v29 = vsel %vm7522_vm1, %v8364_v39, %v3190_v31  ;;  %v8739_v13 = vpack.c.b16 %v3420_v45, %v3419_v42  ;;  %v4508_v55 = vunpack.c.l.b16 %v3333_v49  ;;  %v10573_v31 = vld [vmem:[#allocation16_spill] sm:$0xff]  ;;  %vm10576_vm1 = vmmov %vm10561_vm0 }
 0x3da   : > { %v3334_v51 = vpack.c.bf16 %v3302_v29, %v3302_v29  ;;  %v3188_v39 = vsel %vm10570_vm14, %v10569_v59, %v10568_v33  ;;  %v3335_v6 = vpack.c.bf16 %v10573_v31, %v10573_v31  ;;  %v10574_v42 = vrot.slane %v8369_v44, 1  ;;  %vm10590_vm11 = vmmov %vm10561_vm0 }
 0x3db   : > { %v4507_v56 = vunpack.c.l.b16 %v3332_v8  ;;  %v3304_v5 = vsel %vm7548_vm13, %v10571_v63, %v3188_v39  ;;  %v10575_v15 = vrot.slane %v8321_v53, 1  ;;  %v3337_v8 = vpack.c.bf16 %v8407_v32, %v8407_v32  ;;  %vm10580_vm13 = vmmov %vm10561_vm0 }
 0x3dc   : > { %v4509_v24 = vunpack.c.l.b16 %v3334_v51  ;;  %v3336_v45 = vpack.c.bf16 %v3304_v5, %v3304_v5  ;;  %v4510_v29 = vunpack.c.l.b16 %v3335_v6  ;;  %v10578_v51 = vrot.slane %v8373_v37, 1  ;;  %3825 = vmatmul.bf16.gmra.mxu1 %v8413_v27  ;;  %4003 = vmatmul.bf16.gmra.mxu3 %v8452_v30  ;;  %vm10597_vm15 = vmmov %vm10561_vm0 }
 0x3dd   : > { %v3186_v21 = vsel %vm10576_vm1, %v10575_v15, %v10574_v42  ;;  %v8760_v3 = vpack.c.b16 %v4507_v56, %v4506_v12  ;;  %v10579_v59 = vrot.slane %v8371_v2, 1  ;;  %v4512_v56 = vunpack.c.l.b16 %v3337_v8  ;;  %3914 = vmatmul.bf16.gmra.mxu2 %v8448_v34  ;;  %v10586_v15 = vld [vmem:[#allocation33_spill] sm:$0xff]  ;;  %vm10603_vm4 = vmmov %vm10561_vm0 }
 0x3de   : > { %v3306_v33 = vsel %vm7571_vm12, %v8421_v48, %v3186_v21  ;;  %v8773_v63 = vpack.c.b16 %v4509_v24, %v4508_v55  ;;  %v4511_v32 = vunpack.c.l.b16 %v3336_v45  ;;  %v10581_v48 = vld [vmem:[#allocation34_spill] sm:$0xff]  ;;  %v3339_v5 = vpack.c.bf16 %v8491_v35, %v8491_v35  ;;  %vm10608_vm6 = vmmov %vm10561_vm0 }
 0x3df   : > { %v3184_v39 = vsel %vm10580_vm13, %v10579_v59, %v10578_v51  ;;  %v3338_v12 = vpack.c.bf16 %v3306_v33, %v3306_v33  ;;  %vm10582_vm12 = vnez %v10581_v48  ;;  %v10583_v31 = vrot.slane %v8455_v43, 1  ;;  %v10591_v48 = vld [vmem:[#allocation64_spill] sm:$0xff]  ;;  %vm10614_vm7 = vmmov %vm10576_vm1 }
 0x3e0   : > { %v3308_v0 = vsel %vm10582_vm12, %v8469_v20, %v3184_v39  ;;  %v10584_v27 = vrot.slane %v8380_v46, 1  ;;  %v3341_v6 = vpack.c.bf16 %v8547_v16, %v8547_v16  ;;  %v8789_v24 = vpack.c.b16 %v4511_v32, %v4510_v29  ;;  %4236 = vmatmul.bf16.gmra.mxu0 %v10591_v48  ;;  %vm10622_vm14 = vmmov %vm10576_vm1 }
 0x3e1   : > { %v4513_v45 = vunpack.c.l.b16 %v3338_v12  ;;  %v3340_v42 = vpack.c.bf16 %v3308_v0, %v3308_v0  ;;  %vm10587_vm8 = vnez %v10586_v15  ;;  %v4514_v8 = vunpack.c.l.b16 %v3339_v5  ;;  %v10593_v12 = vld [vmem:[#allocation39_spill] sm:$0xff] }
 0x3e2   : > { %v3182_v55 = vsel %vm10585_vm9, %v10584_v27, %v10583_v31  ;;  %v4516_v33 = vunpack.c.l.b16 %v3341_v6  ;;  %v10588_v51 = vrot.slane %v8494_v36, 1  ;;  %v10589_v59 = vrot.slane %v8461_v38, 1  ;;  %vm10638_vm9 = vmmov %vm10603_vm4 }
 0x3e3   : > { %v3310_v21 = vsel %vm10587_vm8, %v8528_v18, %v3182_v55  ;;  %v8801_v29 = vpack.c.b16 %v4513_v45, %v4512_v56  ;;  %v4515_v32 = vunpack.c.l.b16 %v3340_v42  ;;  %vm10594_vm10 = vnez %v10593_v12  ;;  %vm10640_vm8 = vmmov %vm10603_vm4 }
 0x3e4   : > { %v3342_v49 = vpack.c.bf16 %v3310_v21, %v3310_v21  ;;  %v3180_v39 = vsel %vm10590_vm11, %v10589_v59, %v10588_v51  ;;  %v3343_v5 = vpack.c.bf16 %v8576_v47, %v8576_v47  ;;  %v10595_v55 = vrot.slane %v8531_v7, 1  ;;  %v10599_v21 = vld [vmem:[#allocation41_spill] sm:$0xff] }
 0x3e5   : > { %10592 = vst [vmem:[#allocation13_spill] sm:$0xff] %v8801_v29  ;;  %v3312_v0 = vsel %vm10594_vm10, %v8557_v41, %v3180_v39  ;;  %v10596_v6 = vrot.slane %v8514_v4, 1  ;;  %v3345_v56 = vpack.c.bf16 %v8607_v61, %v8607_v61  ;;  %v8816_v45 = vpack.c.b16 %v4515_v32, %v4514_v8  ;;  %v10605_v8 = vld [vmem:[#allocation45_spill] sm:$0xff] }
 0x3e6   : > { %v4517_v31 = vunpack.c.l.b16 %v3342_v49  ;;  %v3344_v27 = vpack.c.bf16 %v3312_v0, %v3312_v0  ;;  %v4518_v42 = vunpack.c.l.b16 %v3343_v5  ;;  %vm10600_vm3 = vnez %v10599_v21 }
 0x3e7   : > { %v3178_v15 = vsel %vm10597_vm15, %v10596_v6, %v10595_v55  ;;  %10598 = vst [vmem:[#allocation82_spill] sm:$0xff] %v8816_v45  ;;  %v10601_v49 = vrot.slane %v8560_v10, 1  ;;  %v10602_v59 = vrot.slane %v8549_v40, 1  ;;  %v4520_v6 = vunpack.c.l.b16 %v3345_v56  ;;  %v10629_v45 = vld [vmem:[#allocation15_spill] sm:$0xff] }
 0x3e8   : > { %v3314_v51 = vsel %vm10600_vm3, %v8599_v26, %v3178_v15  ;;  %v8827_v12 = vpack.c.b16 %v4517_v31, %v4516_v33  ;;  %v4519_v0 = vunpack.c.l.b16 %v3344_v27  ;;  %vm10606_vm2 = vnez %v10605_v8 }
 0x3e9   : > { %v3176_v39 = vsel %vm10603_vm4, %v10602_v59, %v10601_v49  ;;  %v3346_v55 = vpack.c.bf16 %v3314_v51, %v3314_v51  ;;  %v3347_v5 = vpack.c.bf16 %v8641_v14, %v8641_v14  ;;  %v10607_v15 = vrot.slane %v8562_v54, 1  ;;  %v10610_v51 = vld [vmem:[#allocation46_spill] sm:$0xff] }
 0x3ea   : > { %10604 = vst [vmem:[#allocation86_spill] sm:$0xff] %v8827_v12  ;;  %v3316_v32 = vsel %vm10606_vm2, %v8633_v62, %v3176_v39  ;;  %v3349_v33 = vpack.c.bf16 %v8687_v28, %v8687_v28  ;;  %v8842_v31 = vpack.c.b16 %v4519_v0, %v4518_v42  ;;  %vm10611_vm0 = vnez %v10610_v51  ;;  %v10616_v0 = vld [vmem:[#allocation50_spill] sm:$0xff] }
 0x3eb   : > { %v3174_v21 = vsel %vm10608_vm6, %v10607_v15, %v3159_v50  ;;  %v4521_v27 = vunpack.c.l.b16 %v3346_v55  ;;  %v3348_v56 = vpack.c.bf16 %v3316_v32, %v3316_v32  ;;  %v4522_v59 = vunpack.c.l.b16 %v3347_v5 }
 0x3ec   : > { %10609 = vst [vmem:[#allocation84_spill] sm:$0xff] %v8842_v31  ;;  %v3318_v49 = vsel %vm10611_vm0, %v8649_v23, %v3174_v21  ;;  %v4524_v8 = vunpack.c.l.b16 %v3349_v33  ;;  %v10612_v25 = vrot.slane %v8483_v52, 1  ;;  %v10613_v12 = vrot.slane %v8537_v17, 1  ;;  %v10618_v33 = vld [vmem:[#allocation65_spill] sm:$0xff]  ;;  %v10620_v52 = vld [vmem:[#allocation75_spill] sm:$0xff]  ;;  %3830 = vmatmul.bf16.gmra.mxu1 %v8448_v34 }
 0x3ed   : > { %v3350_v39 = vpack.c.bf16 %v3318_v49, %v3318_v49  ;;  %v8853_v15 = vpack.c.b16 %v4521_v27, %v4520_v6  ;;  %v4523_v42 = vunpack.c.l.b16 %v3348_v56  ;;  %vm10617_vm5 = vnez %v10616_v0  ;;  %v10625_v56 = vld [vmem:[#allocation79_spill] sm:$0xff]  ;;  %3919 = vmatmul.bf16.gmra.mxu2 %v8452_v30 }
 0x3ee   : > { %v3172_v50 = vsel %vm10614_vm7, %v10613_v12, %v10612_v25  ;;  %v3351_v32 = vpack.c.bf16 %v8737_v57, %v8737_v57  ;;  %v10619_v51 = vrot.slane %v10618_v33, 1  ;;  %v10621_v49 = vrot.slane %v10620_v52, 1  ;;  %v10623_v25 = vld [vmem:[#allocation78_spill] sm:$0xff] }
 0x3ef   : > { %10615 = vst [vmem:[#allocation85_spill] sm:$0xff] %v8853_v15  ;;  %v3320_v55 = vsel %vm10617_vm5, %v8702_v1, %v3172_v50  ;;  %v4525_v5 = vunpack.c.l.b16 %v3350_v39  ;;  %v3353_v12 = vpack.c.bf16 %v10623_v25, %v10623_v25  ;;  %v8868_v6 = vpack.c.b16 %v4523_v42, %v4522_v59  ;;  %v10626_v50 = vld [vmem:[#allocation51_spill] sm:$0xff] }
 0x3f0   : > { %v3352_v21 = vpack.c.bf16 %v3320_v55, %v3320_v55  ;;  %v3170_v31 = vsel %vm10622_vm14, %v10621_v49, %v10619_v51  ;;  %v4526_v27 = vunpack.c.l.b16 %v3351_v32  ;;  %vm10627_vm1 = vnez %v10626_v50  ;;  %v10633_v59 = vld [vmem:[#allocation63_spill] sm:$0xff]  ;;  %v10642_v50 = vld [vmem:[#allocation68_spill] sm:$0xff] }
 0x3f1   : > { %10624 = vst [vmem:[#allocation80_spill] sm:$0xff] %v8868_v6  ;;  %v3322_v0 = vsel %vm10627_vm1, %v10625_v56, %v3170_v31  ;;  %v3101_v39 = vrot.slane %v8719_v22, 7  ;;  %v8874_v55 = vpack.c.b16 %v4525_v5, %v4524_v8  ;;  %v4528_v52 = vunpack.c.l.b16 %v3353_v12  ;;  %v10636_v8 = vld [vmem:[#allocation69_spill] sm:$0xff]  ;;  %v6093_v12 = vld [vmem:[#allocation7 + $0x58] sm:$0xff] }
 0x3f2   : > { %v4527_v33 = vunpack.c.l.b16 %v3352_v21  ;;  %v3354_v15 = vpack.c.bf16 %v3322_v0, %v3322_v0  ;;  %v10630_v29 = vrot.slane %v10629_v45, 7  ;;  %vm10631_vm13 = vcmp.lt.s32.totalorder %v10463_v19, 1  ;;  %4008 = vmatmul.bf16.gmra.mxu3 %v10636_v8  ;;  %4296 = vmatpush.bf16.msrb.mxu1 %v6093_v12 }
 0x3f3   : > { %10628 = vst [vmem:[#allocation87_spill] sm:$0xff] %v8874_v55  ;;  %v10634_v42 = vrot.slane %v10633_v59, 7  ;;  %vm10635_vm12 = vmmov %vm10631_vm13  ;;  %v3165_v31 = vrot.slane %v8719_v22, 1  ;;  %v10163_v49 = vrot.slane %v10629_v45, 1  ;;  %v3355_v25 = vpack.c.bf16 %v8677_v58, %v8677_v58  ;;  %v10643_v58 = vld [vmem:[#allocation83_spill] sm:$0xff] }
 0x3f4   : > { %v8880_v51 = vsel %vm10631_vm13, %v3101_v39, %v10630_v29  ;;  %v8890_v5 = vpack.c.b16 %v4527_v33, %v4526_v27  ;;  %v4529_v21 = vunpack.c.l.b16 %v3354_v15  ;;  %v10639_v34 = vrot.slane %v10633_v59, 1  ;;  %v10641_v27 = vld [vmem:[#allocation71_spill] sm:$0xff]  ;;  %vm10650_vm15 = vmmov %vm10635_vm12 }
 0x3f5   : > { %10632 = vst [vmem:[#allocation55_spill] sm:$0xff] %v8880_v51  ;;  %v3104_v32 = vsel %vm10635_vm12, %v10634_v42, %v3101_v39  ;;  %v3262_v29 = vpack.c.bf16 %v8880_v51, %v8880_v51  ;;  %v8901_v56 = vsel %vm10638_vm9, %v3165_v31, %v10163_v49  ;;  %v8909_v0 = vpack.c.b16 %v10642_v50, %v10641_v27  ;;  %v10645_v42 = vld [vmem:[#allocation81_spill] sm:$0xff]  ;;  %v10646_v51 = vld [vmem:[#allocation12_spill] sm:$0xff]  ;;  %vm10655_vm4 = vmmov %vm10635_vm12 }
 0x3f6   : > { %10637 = vst [vmem:[#allocation35_spill] sm:$0xff] %v8890_v5  ;;  %v3168_v15 = vsel %vm10640_vm8, %v10639_v34, %v3165_v31  ;;  %v8911_v39 = vpack.c.b16 %v4529_v21, %v4528_v52  ;;  %vm10644_vm11 = vnez %v10643_v58  ;;  %vm10647_vm10 = vnez %v10646_v51  ;;  %vm10660_vm6 = vmmov %vm10655_vm4 }
 0x3f7   : > { %v3229_v33 = vsel %vm10644_vm11, %v8901_v56, %v3104_v32  ;;  %v3324_v49 = vsel %vm10647_vm10, %v10645_v42, %v3168_v15  ;;  %v3452_v59 = vunpack.c.l.b16 %v3262_v29  ;;  %v4530_v6 = vunpack.c.l.b16 %v3355_v25  ;;  %4241 = vmatmul.bf16.gmra.mxu0 %v8909_v0  ;;  %vm10665_vm7 = vmmov %vm10655_vm4 }
 0x3f8   : > { %v3261_v5 = vpack.c.bf16 %v3229_v33, %v3229_v33  ;;  %v3356_v55 = vpack.c.bf16 %v3324_v49, %v3324_v49  ;;  %v10648_v31 = vrot.slane %v8369_v44, 7  ;;  %v10649_v52 = vrot.slane %v8321_v53, 7  ;;  %v10651_v49 = vld [vmem:[#allocation47_spill] sm:$0xff]  ;;  %vm10670_vm14 = vmmov %vm10655_vm4 }
 0x3f9   : > { %v3279_v51 = vpack.c.bf16 %v8455_v43, %v8455_v43  ;;  %v3280_v12 = vpack.c.bf16 %v8461_v38, %v8461_v38  ;;  %vm10652_vm3 = vnez %v10651_v49  ;;  %vm10675_vm13 = vmmov %vm10655_vm4  ;;  %vm10689_vm11 = vcmp.lt.s32.totalorder %v10463_v19, 7 }
 0x3fa   : > { %v3122_v21 = vsel %vm10650_vm15, %v10649_v52, %v10648_v31  ;;  %v3451_v34 = vunpack.c.l.b16 %v3261_v5  ;;  %v4531_v32 = vunpack.c.l.b16 %v3356_v55  ;;  %v3244_v55 = vpack.c.bf16 %v8469_v20, %v8469_v20  ;;  %vm10681_vm9 = vmmov %vm10655_vm4 }
 0x3fb   : > { %v3211_v29 = vsel %vm10652_vm3, %v8491_v35, %v3122_v21  ;;  %v3551_v53 = vunpack.c.l.b16 %v3279_v51  ;;  %v3552_v15 = vunpack.c.l.b16 %v3280_v12  ;;  %v10653_v35 = vrot.slane %v8373_v37, 7  ;;  %vm10742_vm15 = vmmov %vm10689_vm11 }
 0x3fc   : > { %v8933_v25 = vpack.c.b16 %v3452_v59, %v3451_v34  ;;  %v8935_v44 = vpack.c.b16 %v4531_v32, %v4530_v6  ;;  %v3243_v27 = vpack.c.bf16 %v3211_v29, %v3211_v29  ;;  %v3404_v58 = vunpack.c.l.b16 %v3244_v55  ;;  %3835 = vmatmul.bf16.gmra.mxu1 %v8452_v30  ;;  %v10656_v59 = vld [vmem:[#allocation52_spill] sm:$0xff]  ;;  %v6092_v29 = vld [vmem:[#allocation7 + $0x50] sm:$0xff] }
 0x3fd   : > { %v3572_v5 = vpack.c.b16 %v3552_v15, %v3551_v53  ;;  %3924 = vmatmul.bf16.gmra.mxu2 %v10636_v8  ;;  %v10654_v6 = vrot.slane %v8371_v2, 7  ;;  %v3281_v20 = vpack.c.bf16 %v8494_v36, %v8494_v36  ;;  %v3282_v30 = vpack.c.bf16 %v8514_v4, %v8514_v4  ;;  %4297 = vmatpush.bf16.msrb.mxu1 %v6092_v29 }
 0x3fe   : > { %v3403_v50 = vunpack.c.l.b16 %v3243_v27  ;;  %vm10657_vm2 = vnez %v10656_v59  ;;  %v3246_v37 = vpack.c.bf16 %v8528_v18, %v8528_v18  ;;  %v10658_v18 = vrot.slane %v8455_v43, 7 }
 0x3ff   : > { %v3120_v42 = vsel %vm10655_vm4, %v10654_v6, %v10653_v35  ;;  %v3553_v52 = vunpack.c.l.b16 %v3281_v20  ;;  %v3554_v21 = vunpack.c.l.b16 %v3282_v30  ;;  %v10659_v27 = vrot.slane %v8380_v46, 7 }
 0x400   : > { %v8941_v33 = vpack.c.b16 %v3404_v58, %v3403_v50  ;;  %v3213_v31 = vsel %vm10657_vm2, %v8547_v16, %v3120_v42  ;;  %v3406_v12 = vunpack.c.l.b16 %v3246_v37  ;;  %v3283_v58 = vpack.c.bf16 %v8531_v7, %v8531_v7  ;;  %v10661_v42 = vld [vmem:[#allocation57_spill] sm:$0xff] }
 0x401   : > { %v3245_v34 = vpack.c.bf16 %v3213_v31, %v3213_v31  ;;  %v3573_v32 = vpack.c.b16 %v3554_v21, %v3553_v52  ;;  %v3118_v55 = vsel %vm10660_vm6, %v10659_v27, %v10658_v18  ;;  %v3284_v35 = vpack.c.bf16 %v8549_v40, %v8549_v40 }
 0x402   : > { %4013 = vmatmul.bf16.gmra.mxu3 %v3572_v5  ;;  %vm10662_vm0 = vnez %v10661_v42  ;;  %v3555_v46 = vunpack.c.l.b16 %v3283_v58  ;;  %v3248_v31 = vpack.c.bf16 %v8557_v41, %v8557_v41  ;;  %v10663_v41 = vrot.slane %v8494_v36, 7  ;;  %v10666_v42 = vld [vmem:[#allocation62_spill] sm:$0xff] }
 0x403   : > { %v3405_v51 = vunpack.c.l.b16 %v3245_v34  ;;  %v3215_v20 = vsel %vm10662_vm0, %v8576_v47, %v3118_v55  ;;  %v3556_v30 = vunpack.c.l.b16 %v3284_v35  ;;  %v10664_v27 = vrot.slane %v8461_v38, 7 }
 0x404   : > { %v3247_v59 = vpack.c.bf16 %v3215_v20, %v3215_v20  ;;  %v3286_v58 = vpack.c.bf16 %v8562_v54, %v8562_v54  ;;  %vm10667_vm5 = vnez %v10666_v42  ;;  %v3288_v42 = vpack.c.bf16 %v8537_v17, %v8537_v17 }
 0x405   : > { %v8962_v53 = vpack.c.b16 %v3406_v12, %v3405_v51  ;;  %v3408_v12 = vunpack.c.l.b16 %v3248_v31  ;;  %v3116_v55 = vsel %vm10665_vm7, %v10664_v27, %v10663_v41 }
 0x406   : > { %v3407_v51 = vunpack.c.l.b16 %v3247_v59  ;;  %v3217_v20 = vsel %vm10667_vm5, %v8607_v61, %v3116_v55  ;;  %v3250_v59 = vpack.c.bf16 %v8599_v26, %v8599_v26  ;;  %v10668_v55 = vrot.slane %v8531_v7, 7 }
 0x407   : > { %4246 = vmatmul.bf16.gmra.mxu0 %v8941_v33 }
 0x409   : > { %v3801_v2 = vpop.f32.mrf.mxu1 }
 0x40c   : > { %3840 = vmatmul.bf16.gmra.mxu1 %v10636_v8 }
 0x40d   : > { %3929 = vmatmul.bf16.gmra.mxu2 %v3572_v5  ;;  %v8960_v49 = vpop.f32.mrf.mxu0 }
 0x40f   : > { %v3979_v16 = vpop.f32.mrf.mxu3 }
 0x410   : > { %v3890_v15 = vpop.f32.mrf.mxu2 }
 0x411   : > { %v3891_v8 = vadd.f32 %v3890_v15, %v3801_v2  ;;  %v3803_v50 = vpop.f32.mrf.mxu1  ;;  %v3574_v2 = vpack.c.b16 %v3556_v30, %v3555_v46  ;;  %v3558_v46 = vunpack.c.l.b16 %v3286_v58  ;;  %v3249_v30 = vpack.c.bf16 %v3217_v20, %v3217_v20 }
 0x412   : > { %4018 = vmatmul.bf16.gmra.mxu3 %v3573_v32  ;;  %v3287_v58 = vpack.c.bf16 %v8610_v9, %v8610_v9 }
 0x413   : > { %v8975_v6 = vadd.f32 %v3979_v16, %v3891_v8  ;;  %v8988_v16 = vpack.c.b16 %v3408_v12, %v3407_v51  ;;  %v3409_v51 = vunpack.c.l.b16 %v3249_v30  ;;  %v3410_v12 = vunpack.c.l.b16 %v3250_v59 }
 0x414   : > { %v3560_v30 = vunpack.c.l.b16 %v3288_v42  ;;  %v10676_v42 = vld [vmem:[#allocation70_spill] sm:$0xff] }
 0x415   : > { %v8980_v43 = vpop.f32.mrf.mxu0  ;;  %v9014_v41 = vpack.c.b16 %v3410_v12, %v3409_v51  ;;  %vm10677_vm12 = vnez %v10676_v42  ;;  %v10682_v42 = vld [vmem:[#allocation72_spill] sm:$0xff] }
 0x416   : > { %vm10683_vm8 = vnez %v10682_v42 }
 0x417   : > { %4251 = vmatmul.bf16.gmra.mxu0 %v8962_v53  ;;  %v3981_v52 = vpop.f32.mrf.mxu3 }
 0x418   : > { %v3892_v21 = vpop.f32.mrf.mxu2 }
 0x419   : > { %v3893_v34 = vadd.f32 %v3892_v21, %v3803_v50  ;;  %v3806_v37 = vpop.f32.mrf.mxu1 }
 0x41b   : > { %v8984_v29 = vadd.f32 %v3981_v52, %v3893_v34 }
 0x41c   : > { %3845 = vmatmul.bf16.gmra.mxu1 %v3572_v5  ;;  %v3285_v5 = vpack.c.bf16 %v8560_v10, %v8560_v10 }
 0x41d   : > { %3934 = vmatmul.bf16.gmra.mxu2 %v3573_v32  ;;  %v8986_v47 = vpop.f32.mrf.mxu0 }
 0x41e   : > { %v3557_v38 = vunpack.c.l.b16 %v3285_v5 }
 0x41f   : > { %v3984_v15 = vpop.f32.mrf.mxu3 }
 0x420   : > { %v3895_v18 = vpop.f32.mrf.mxu2 }
 0x421   : > { %v3896_v8 = vadd.f32 %v3895_v18, %v3806_v37  ;;  %v3808_v50 = vpop.f32.mrf.mxu1  ;;  %v3575_v37 = vpack.c.b16 %v3558_v46, %v3557_v38  ;;  %v6091_v18 = vld [vmem:[#allocation7 + $0x48] sm:$0xff]  ;;  %v10671_v38 = vld [vmem:[#allocation67_spill] sm:$0xff] }
 0x422   : > { %4023 = vmatmul.bf16.gmra.mxu3 %v3574_v2  ;;  %4298 = vmatpush.bf16.msrb.mxu1 %v6091_v18  ;;  %vm10672_vm1 = vnez %v10671_v38 }
 0x423   : > { %v9001_v35 = vadd.f32 %v3984_v15, %v3896_v8  ;;  %v10669_v8 = vrot.slane %v8514_v4, 7  ;;  %v3559_v4 = vunpack.c.l.b16 %v3287_v58 }
 0x425   : > { %v9006_v36 = vpop.f32.mrf.mxu0  ;;  %v9036_v12 = vpack.c.b16 %v3560_v30, %v3559_v4  ;;  %v3254_v30 = vpack.c.bf16 %v8649_v23, %v8649_v23  ;;  %v6090_v23 = vld [vmem:[#allocation7 + $0x40] sm:$0xff] }
 0x426   : > { %4299 = vmatpush.bf16.msrb.mxu1 %v6090_v23 }
 0x427   : > { %4256 = vmatmul.bf16.gmra.mxu0 %v8988_v16  ;;  %v3986_v31 = vpop.f32.mrf.mxu3 }
 0x428   : > { %v3897_v52 = vpop.f32.mrf.mxu2 }
 0x429   : > { %v3898_v21 = vadd.f32 %v3897_v52, %v3808_v50  ;;  %v3811_v34 = vpop.f32.mrf.mxu1  ;;  %v3114_v50 = vsel %vm10670_vm14, %v10669_v8, %v10668_v55  ;;  %v10673_v8 = vrot.slane %v8560_v10, 7 }
 0x42a   : > { %v3219_v46 = vsel %vm10672_vm1, %v8641_v14, %v3114_v50  ;;  %v10674_v50 = vrot.slane %v8549_v40, 7 }
 0x42b   : > { %v9010_v15 = vadd.f32 %v3986_v31, %v3898_v21  ;;  %v3251_v59 = vpack.c.bf16 %v3219_v46, %v3219_v46  ;;  %v3252_v31 = vpack.c.bf16 %v8633_v62, %v8633_v62 }
 0x42c   : > { %3850 = vmatmul.bf16.gmra.mxu1 %v3573_v32 }
 0x42d   : > { %3939 = vmatmul.bf16.gmra.mxu2 %v3574_v2  ;;  %v9012_v61 = vpop.f32.mrf.mxu0  ;;  %v3411_v17 = vunpack.c.l.b16 %v3251_v59  ;;  %v3412_v18 = vunpack.c.l.b16 %v3252_v31 }
 0x42f   : > { %v3989_v27 = vpop.f32.mrf.mxu3 }
 0x430   : > { %v3900_v26 = vpop.f32.mrf.mxu2 }
 0x431   : > { %v3901_v32 = vadd.f32 %v3900_v26, %v3811_v34  ;;  %v3813_v5 = vpop.f32.mrf.mxu1  ;;  %v9043_v26 = vpack.c.b16 %v3412_v18, %v3411_v17  ;;  %v6105_v18 = vld [vmem:[#allocation7 + $0xb8] sm:$0xff] }
 0x432   : > { %4028 = vmatmul.bf16.gmra.mxu3 %v3575_v37  ;;  %4381 = vmatpush.bf16.msra.mxu2 %v6105_v18 }
 0x433   : > { %v9027_v20 = vadd.f32 %v3989_v27, %v3901_v32  ;;  %v3112_v32 = vsel %vm10675_vm13, %v10674_v50, %v10673_v8 }
 0x434   : > { %v3221_v38 = vsel %vm10677_vm12, %v8687_v28, %v3112_v32  ;;  %v10678_v28 = vld [vmem:[#allocation76_spill] sm:$0xff] }
 0x435   : > { %v9032_v7 = vpop.f32.mrf.mxu0  ;;  %v3253_v4 = vpack.c.bf16 %v3221_v38, %v3221_v38 }
 0x437   : > { %4261 = vmatmul.bf16.gmra.mxu0 %v9014_v41  ;;  %v3991_v52 = vpop.f32.mrf.mxu3 }
 0x438   : > { %v3902_v21 = vpop.f32.mrf.mxu2 }
 0x439   : > { %v3903_v34 = vadd.f32 %v3902_v21, %v3813_v5  ;;  %v3816_v51 = vpop.f32.mrf.mxu1  ;;  %v3413_v21 = vunpack.c.l.b16 %v3253_v4  ;;  %v6104_v4 = vld [vmem:[#allocation7 + $0xb0] sm:$0xff] }
 0x43a   : > { %4382 = vmatpush.bf16.msra.mxu2 %v6104_v4  ;;  %v6142_v4 = vld [vmem:[#allocation7 + $0x1e0] sm:$0xff] }
 0x43b   : > { %v9038_v27 = vadd.f32 %v3991_v52, %v3903_v34  ;;  %v9063_v52 = vadd.f32 %v8960_v49, %v8975_v6  ;;  %v3414_v34 = vunpack.c.l.b16 %v3254_v30  ;;  %v10679_v6 = vrot.slane %v8610_v9, 7  ;;  %v6136_v30 = vld [vmem:[#allocation7 + $0x1b0] sm:$0xff] }
 0x43c   : > { %3855 = vmatmul.bf16.gmra.mxu1 %v3574_v2  ;;  %v9087_v9 = vadd.f32 %v8980_v43, %v8984_v29 }
 0x43d   : > { %3944 = vmatmul.bf16.gmra.mxu2 %v3575_v37  ;;  %v9041_v14 = vpop.f32.mrf.mxu0 }
 0x43f   : > { %v3994_v55 = vpop.f32.mrf.mxu3 }
 0x440   : > { %v3905_v62 = vpop.f32.mrf.mxu2 }
 0x441   : > { %v3906_v5 = vadd.f32 %v3905_v62, %v3816_v51  ;;  %v3818_v2 = vpop.f32.mrf.mxu1  ;;  %v9071_v62 = vpack.c.b16 %v3414_v34, %v3413_v21  ;;  %v3256_v21 = vpack.c.bf16 %v8702_v1, %v8702_v1  ;;  %v6144_v34 = vld [vmem:[#allocation7 + $0x1f0] sm:$0xff] }
 0x442   : > { %4033 = vmatmul.bf16.gmra.mxu3 %v9036_v12  ;;  %v10684_v1 = vld [vmem:[#allocation74_spill] sm:$0xff] }
 0x443   : > { %v9052_v58 = vadd.f32 %v3994_v55, %v3906_v5  ;;  %v6137_v55 = vld [vmem:[#allocation7 + $0x1b8] sm:$0xff]  ;;  %v3416_v29 = vunpack.c.l.b16 %v3256_v21  ;;  %v6132_v21 = vld [vmem:[#allocation7 + $0x190] sm:$0xff] }
 0x444   : > { %4759 = vmatpush.bf16.msra.mxu3 %v6137_v55 }
 0x445   : > { %v9057_v46 = vpop.f32.mrf.mxu0 }
 0x447   : > { %4266 = vmatmul.bf16.gmra.mxu0 %v9043_v26  ;;  %v3996_v10 = vpop.f32.mrf.mxu3 }
 0x448   : > { %v3907_v59 = vpop.f32.mrf.mxu2  ;;  %4760 = vmatpush.bf16.msra.mxu3 %v6136_v30 }
 0x449   : > { %v3908_v40 = vadd.f32 %v3907_v59, %v3818_v2  ;;  %v3821_v31 = vpop.f32.mrf.mxu1  ;;  %v6103_v59 = vld [vmem:[#allocation7 + $0xa8] sm:$0xff] }
 0x44a   : > { %4383 = vmatpush.bf16.msra.mxu2 %v6103_v59  ;;  %v3294_v59 = vpack.c.bf16 %v10629_v45, %v10629_v45 }
 0x44b   : > { %v9065_v51 = vadd.f32 %v3996_v10, %v3908_v40  ;;  %v6145_v10 = vld [vmem:[#allocation7 + $0x1f8] sm:$0xff]  ;;  %v6135_v40 = vld [vmem:[#allocation7 + $0x1a8] sm:$0xff] }
 0x44c   : > { %3860 = vmatmul.bf16.gmra.mxu1 %v3575_v37  ;;  %v10680_v37 = vrot.slane %v8562_v54, 7  ;;  %4848 = vmatpush.bf16.msra.mxu0 %v6145_v10 }
 0x44d   : > { %3949 = vmatmul.bf16.gmra.mxu2 %v9036_v12  ;;  %v9069_v17 = vpop.f32.mrf.mxu0  ;;  %4761 = vmatpush.bf16.msra.mxu3 %v6135_v40 }
 0x44e   : > { %v3110_v50 = vsel %vm10681_vm9, %v10680_v37, %v10679_v6  ;;  %v6134_v6 = vld [vmem:[#allocation7 + $0x1a0] sm:$0xff]  ;;  %v6143_v37 = vld [vmem:[#allocation7 + $0x1e8] sm:$0xff] }
 0x44f   : > { %v3999_v8 = vpop.f32.mrf.mxu3  ;;  %v3223_v38 = vsel %vm10683_vm8, %v8737_v57, %v3110_v50  ;;  %v9097_v50 = vadd.f32 %v8986_v47, %v9001_v35 }
 0x450   : > { %v3910_v49 = vpop.f32.mrf.mxu2  ;;  %4849 = vmatpush.bf16.msra.mxu0 %v6144_v34  ;;  %v6141_v34 = vld [vmem:[#allocation7 + $0x1d8] sm:$0xff] }
 0x451   : > { %v3911_v32 = vadd.f32 %v3910_v49, %v3821_v31  ;;  %v3823_v5 = vpop.f32.mrf.mxu1  ;;  %v3255_v31 = vpack.c.bf16 %v3223_v38, %v3223_v38  ;;  %v6102_v49 = vld [vmem:[#allocation7 + $0xa0] sm:$0xff]  ;;  %4762 = vmatpush.bf16.msra.mxu3 %v6134_v6  ;;  %v6101_v38 = vld [vmem:[#allocation7 + $0x98] sm:$0xff] }
 0x452   : > { %4038 = vmatmul.bf16.gmra.mxu3 %v10678_v28  ;;  %4384 = vmatpush.bf16.msra.mxu2 %v6102_v49 }
 0x453   : > { %v9080_v2 = vadd.f32 %v3999_v8, %v3911_v32  ;;  %v3415_v43 = vunpack.c.l.b16 %v3255_v31  ;;  %v6100_v31 = vld [vmem:[#allocation7 + $0x90] sm:$0xff] }
 0x454   : > { %4850 = vmatpush.bf16.msra.mxu0 %v6143_v37 }
 0x455   : > { %v9089_v54 = vpop.f32.mrf.mxu0  ;;  %v9104_v42 = vpack.c.b16 %v3416_v29, %v3415_v43  ;;  %v6099_v43 = vld [vmem:[#allocation7 + $0x88] sm:$0xff]  ;;  %v6140_v29 = vld [vmem:[#allocation7 + $0x1d0] sm:$0xff] }
 0x456   : > { %4385 = vmatpush.bf16.msra.mxu2 %v6101_v38 }
 0x457   : > { %4271 = vmatmul.bf16.gmra.mxu0 %v9071_v62  ;;  %v4001_v57 = vpop.f32.mrf.mxu3 }
 0x458   : > { %v3912_v23 = vpop.f32.mrf.mxu2  ;;  %4851 = vmatpush.bf16.msra.mxu0 %v6142_v4 }
 0x459   : > { %v3913_v18 = vadd.f32 %v3912_v23, %v3823_v5  ;;  %v3826_v55 = vpop.f32.mrf.mxu1  ;;  %v6133_v5 = vld [vmem:[#allocation7 + $0x198] sm:$0xff]  ;;  %v6131_v23 = vld [vmem:[#allocation7 + $0x188] sm:$0xff] }
 0x45a   : > { %4763 = vmatpush.bf16.msra.mxu3 %v6133_v5  ;;  %4386 = vmatpush.bf16.msra.mxu2 %v6100_v31 }
 0x45b   : > { %v9093_v8 = vadd.f32 %v4001_v57, %v3913_v18  ;;  %v9117_v18 = vadd.f32 %v9006_v36, %v9010_v15  ;;  %v6139_v36 = vld [vmem:[#allocation7 + $0x1c8] sm:$0xff] }
 0x45c   : > { %3865 = vmatmul.bf16.gmra.mxu1 %v9036_v12  ;;  %v3293_v12 = vpack.c.bf16 %v8719_v22, %v8719_v22  ;;  %v3596_v22 = vunpack.c.l.b16 %v3294_v59  ;;  %4852 = vmatpush.bf16.msra.mxu0 %v6141_v34 }
 0x45d   : > { %3954 = vmatmul.bf16.gmra.mxu2 %v10678_v28  ;;  %v9102_v32 = vpop.f32.mrf.mxu0 }
 0x45e   : > { %4764 = vmatpush.bf16.msra.mxu3 %v6132_v21  ;;  %4387 = vmatpush.bf16.msra.mxu2 %v6099_v43 }
 0x45f   : > { %v4004_v30 = vpop.f32.mrf.mxu3 }
 0x460   : > { %v3915_v10 = vpop.f32.mrf.mxu2  ;;  %4853 = vmatpush.bf16.msra.mxu0 %v6140_v29 }
 0x461   : > { %v3916_v47 = vadd.f32 %v3915_v10, %v3826_v55  ;;  %v3828_v35 = vpop.f32.mrf.mxu1  ;;  %v3595_v55 = vunpack.c.l.b16 %v3293_v12  ;;  %v6130_v10 = vld [vmem:[#allocation7 + $0x180] sm:$0xff] }
 0x462   : > { %4043 = vmatmul.bf16.gmra.mxu3 %v10684_v1  ;;  %v6138_v12 = vld [vmem:[#allocation7 + $0x1c0] sm:$0xff] }
 0x463   : > { %v9111_v40 = vadd.f32 %v4004_v30, %v3916_v47  ;;  %4765 = vmatpush.bf16.msra.mxu3 %v6131_v23  ;;  %v3597_v38 = vpack.c.b16 %v3596_v22, %v3595_v55  ;;  %v6098_v30 = vld [vmem:[#allocation7 + $0x80] sm:$0xff]  ;;  %v6153_v47 = vld [vmem:[#allocation7 + $0x238] sm:$0xff] }
 0x464   : > { %4388 = vmatpush.bf16.msra.mxu2 %v6098_v30  ;;  %4854 = vmatpush.bf16.msra.mxu0 %v6139_v36  ;;  %v10691_v36 = vld [vmem:[#allocation24_spill] sm:$0xff] }
 0x465   : > { %v9113_v57 = vpop.f32.mrf.mxu0  ;;  %4937 = vmatpush.bf16.msra.mxu1 %v6153_v47  ;;  %vm10692_vm10 = vnez %v10691_v36 }
 0x467   : > { %4276 = vmatmul.bf16.gmra.mxu0 %v9104_v42  ;;  %v4006_v49 = vpop.f32.mrf.mxu3  ;;  %4766 = vmatpush.bf16.msra.mxu3 %v6130_v10 }
 0x468   : > { %v3917_v6 = vpop.f32.mrf.mxu2  ;;  %4855 = vmatpush.bf16.msra.mxu0 %v6138_v12  ;;  %v9155_v12 = vadd.f32 %v9041_v14, %v9052_v58  ;;  %v9166_v14 = vadd.f32 %v9057_v46, %v9065_v51  ;;  %v9180_v46 = vadd.f32 %v9069_v17, %v9080_v2  ;;  %v10696_v17 = vld [vmem:[#allocation66_spill] sm:$0xff] }
 0x469   : > { %v3918_v37 = vadd.f32 %v3917_v6, %v3828_v35  ;;  %v3831_v5 = vpop.f32.mrf.mxu1  ;;  %v9127_v35 = vadd.f32 %v9012_v61, %v9027_v20  ;;  %v9136_v61 = vadd.f32 %v9032_v7, %v9038_v27  ;;  %v10690_v27 = vld [vmem:[#allocation14_spill] sm:$0xff] }
 0x46b   : > { %v9119_v4 = vadd.f32 %v4006_v49, %v3918_v37  ;;  %v10685_v49 = vld [vmem:[#allocation60_spill] sm:$0xff] }
 0x46c   : > { %3870 = vmatmul.bf16.gmra.mxu1 %v10678_v28  ;;  %v10686_v6 = vrot.slane %v10685_v49, 1  ;;  %v10687_v37 = vld [vmem:[#allocation56_spill] sm:$0xff] }
 0x46d   : > { %3959 = vmatmul.bf16.gmra.mxu2 %v10684_v1 }
 0x470   : > { %v3920_v31 = vpop.f32.mrf.mxu2 }
 0x471   : > { %v3921_v28 = vadd.f32 %v3920_v31, %v3831_v5  ;;  %v3833_v21 = vpop.f32.mrf.mxu1  ;;  %v10688_v5 = vrot.slane %v10687_v37, 1 }
 0x472   : > { %4048 = vmatmul.bf16.gmra.mxu3 %v3597_v38 }
 0x473   : > { %v3194_v30 = vsel %vm10689_vm11, %v10688_v5, %v10686_v6 }
 0x474   : > { %v9123_v15 = vpop.f32.mrf.mxu0  ;;  %v3298_v47 = vsel %vm10692_vm10, %v10690_v27, %v3194_v30  ;;  %v10694_v27 = vld [vmem:[#allocation61_spill] sm:$0xff] }
 0x475   : > { %v4009_v59 = vpop.f32.mrf.mxu3 }
 0x476   : > { %v9130_v34 = vadd.f32 %v4009_v59, %v3921_v28  ;;  %v10693_v28 = vld [vmem:[#allocation59_spill] sm:$0xff] }
 0x477   : > { %4281 = vmatmul.bf16.gmra.mxu0 %v8721_v60 }
 0x478   : > { %v3922_v20 = vpop.f32.mrf.mxu2 }
 0x479   : > { %v3923_v22 = vadd.f32 %v3922_v20, %v3833_v21  ;;  %v3836_v43 = vpop.f32.mrf.mxu1  ;;  %v3329_v21 = vpack.c.bf16 %v10693_v28, %v10693_v28 }
 0x47c   : > { %v9132_v23 = vpop.f32.mrf.mxu0  ;;  %3875 = vmatmul.bf16.gmra.mxu1 %v10684_v1 }
 0x47d   : > { %v4011_v55 = vpop.f32.mrf.mxu3  ;;  %3964 = vmatmul.bf16.gmra.mxu2 %v3597_v38  ;;  %v3330_v38 = vpack.c.bf16 %v3298_v47, %v3298_v47  ;;  %v6152_v47 = vld [vmem:[#allocation7 + $0x230] sm:$0xff] }
 0x47e   : > { %v9138_v29 = vadd.f32 %v4011_v55, %v3923_v22  ;;  %v4472_v22 = vunpack.c.l.b16 %v3329_v21  ;;  %4938 = vmatpush.bf16.msra.mxu1 %v6152_v47 }
 0x47f   : > { %v4473_v49 = vunpack.c.l.b16 %v3330_v38 }
 0x481   : > { %v3838_v31 = vpop.f32.mrf.mxu1 }
 0x482   : > { %4053 = vmatmul.bf16.gmra.mxu3 %v10684_v1  ;;  %v3925_v1 = vpop.f32.mrf.mxu2 }
 0x483   : > { %v3926_v59 = vadd.f32 %v3925_v1, %v3836_v43  ;;  %v9168_v43 = vpack.c.b16 %v4473_v49, %v4472_v22 }
 0x484   : > { %v9148_v10 = vpop.f32.mrf.mxu0 }
 0x485   : > { %v4014_v7 = vpop.f32.mrf.mxu3 }
 0x486   : > { %v9160_v55 = vadd.f32 %v4014_v7, %v3926_v59  ;;  %v10695_v7 = vld [vmem:[#allocation58_spill] sm:$0xff] }
 0x487   : > { %4286 = vmatmul.bf16.gmra.mxu0 %v8739_v13 }
 0x488   : > { %v4248_v19 = vadd.f32 %v9148_v10, %v9160_v55 }
 0x489   : > { %v3841_v5 = vpop.f32.mrf.mxu1 }
 0x48a   : > { %v3927_v37 = vpop.f32.mrf.mxu2 }
 0x48b   : > { %v3928_v58 = vadd.f32 %v3927_v37, %v3838_v31  ;;  %v9188_v37 = vadd.f32 %v9089_v54, %v9093_v8  ;;  %v9200_v54 = vadd.f32 %v9102_v32, %v9111_v40  ;;  %v10697_v32 = vld [vmem:[#allocation18_spill] sm:$0xff] }
 0x48c   : > { %v9162_v20 = vpop.f32.mrf.mxu0  ;;  %4300 = vmatmul.bf16.vlgmr.msrb.gmra.mxu1 %v10694_v27 }
 0x48d   : > { %v4016_v6 = vpop.f32.mrf.mxu3  ;;  %4389 = vmatmul.bf16.vlgmr.msra.gmra.mxu2 %v10695_v7 }
 0x48e   : > { %v9170_v30 = vadd.f32 %v4016_v6, %v3928_v58 }
 0x490   : > { %v4250_v10 = vadd.f32 %v9162_v20, %v9170_v30 }
 0x491   : > { %v3843_v31 = vpop.f32.mrf.mxu1 }
 0x492   : > { %4767 = vmatmul.bf16.vlgmr.msra.gmra.mxu3 %v9168_v43  ;;  %v3930_v59 = vpop.f32.mrf.mxu2 }
 0x493   : > { %v3931_v51 = vadd.f32 %v3930_v59, %v3841_v5 }
 0x494   : > { %v9175_v36 = vpop.f32.mrf.mxu0 }
 0x495   : > { %v4019_v1 = vpop.f32.mrf.mxu3 }
 0x496   : > { %v9182_v28 = vadd.f32 %v4019_v1, %v3931_v51 }
 0x497   : > { %4856 = vmatmul.bf16.vlgmr.msra.gmra.mxu0 %v8695_v11 }
 0x499   : > { %v3846_v6 = vpop.f32.mrf.mxu1 }
 0x49a   : > { %v3932_v22 = vpop.f32.mrf.mxu2 }
 0x49b   : > { %v3933_v49 = vadd.f32 %v3932_v22, %v3843_v31  ;;  %v9212_v22 = vadd.f32 %v9113_v57, %v9119_v4 }
 0x49c   : > { %v9184_v21 = vpop.f32.mrf.mxu0  ;;  %4305 = vmatmul.bf16.gmra.mxu1 %v10695_v7 }
 0x49d   : > { %v4021_v38 = vpop.f32.mrf.mxu3  ;;  %4394 = vmatmul.bf16.gmra.mxu2 %v10696_v17 }
 0x49e   : > { %v9190_v58 = vadd.f32 %v4021_v38, %v3933_v49  ;;  %v6151_v49 = vld [vmem:[#allocation7 + $0x228] sm:$0xff] }
 0x49f   : > { %4939 = vmatpush.bf16.msra.mxu1 %v6151_v49 }
 0x4a1   : > { %v3848_v1 = vpop.f32.mrf.mxu1 }
 0x4a2   : > { %4772 = vmatmul.bf16.gmra.mxu3 %v8695_v11  ;;  %v3935_v27 = vpop.f32.mrf.mxu2 }
 0x4a3   : > { %v3936_v47 = vadd.f32 %v3935_v27, %v3846_v6 }
 0x4a4   : > { %v9195_v2 = vpop.f32.mrf.mxu0 }
 0x4a5   : > { %v4024_v5 = vpop.f32.mrf.mxu3 }
 0x4a6   : > { %v9202_v8 = vadd.f32 %v4024_v5, %v3936_v47 }
 0x4a7   : > { %4861 = vmatmul.bf16.gmra.mxu0 %v9168_v43 }
 0x4a9   : > { %v3851_v31 = vpop.f32.mrf.mxu1 }
 0x4aa   : > { %v3937_v11 = vpop.f32.mrf.mxu2 }
 0x4ab   : > { %v3938_v51 = vadd.f32 %v3937_v11, %v3848_v1 }
 0x4ac   : > { %v9204_v59 = vpop.f32.mrf.mxu0  ;;  %4310 = vmatmul.bf16.gmra.mxu1 %v10696_v17  ;;  %v9222_v17 = vadd.f32 %v9123_v15, %v9130_v34 }
 0x4ad   : > { %v4026_v7 = vpop.f32.mrf.mxu3  ;;  %4399 = vmatmul.bf16.gmra.mxu2 %v10697_v32 }
 0x4ae   : > { %v9206_v38 = vadd.f32 %v4026_v7, %v3938_v51 }
 0x4b1   : > { %v3853_v47 = vpop.f32.mrf.mxu1 }
 0x4b2   : > { %4777 = vmatmul.bf16.gmra.mxu3 %v9168_v43  ;;  %v3940_v5 = vpop.f32.mrf.mxu2 }
 0x4b3   : > { %v3941_v27 = vadd.f32 %v3940_v5, %v3851_v31 }
 0x4b4   : > { %v9215_v40 = vpop.f32.mrf.mxu0 }
 0x4b5   : > { %10698 = vst [vmem:[#allocation36_spill] sm:$0xff] %v9215_v40  ;;  %v4029_v6 = vpop.f32.mrf.mxu3 }
 0x4b6   : > { %v9218_v1 = vadd.f32 %v4029_v6, %v3941_v27 }
 0x4b7   : > { %4866 = vmatmul.bf16.gmra.mxu0 %v8760_v3 }
 0x4b9   : > { %v3856_v51 = vpop.f32.mrf.mxu1 }
 0x4ba   : > { %v3942_v7 = vpop.f32.mrf.mxu2 }
 0x4bb   : > { %v3943_v11 = vadd.f32 %v3942_v7, %v3853_v47 }
 0x4bc   : > { %v9224_v57 = vpop.f32.mrf.mxu0  ;;  %4315 = vmatmul.bf16.gmra.mxu1 %v10697_v32 }
 0x4bd   : > { %v4031_v4 = vpop.f32.mrf.mxu3  ;;  %4404 = vmatmul.bf16.gmra.mxu2 %v10591_v48 }
 0x4be   : > { %v9226_v40 = vadd.f32 %v4031_v4, %v3943_v11 }
 0x4c1   : > { %v3858_v34 = vpop.f32.mrf.mxu1 }
 0x4c2   : > { %4782 = vmatmul.bf16.gmra.mxu3 %v8760_v3  ;;  %v3945_v6 = vpop.f32.mrf.mxu2 }
 0x4c3   : > { %v3946_v15 = vadd.f32 %v3945_v6, %v3856_v51  ;;  %v6150_v51 = vld [vmem:[#allocation7 + $0x220] sm:$0xff] }
 0x4c4   : > { %v9231_v31 = vpop.f32.mrf.mxu0  ;;  %4940 = vmatpush.bf16.msra.mxu1 %v6150_v51 }
 0x4c5   : > { %10699 = vst [vmem:[#allocation20_spill] sm:$0xff] %v9231_v31  ;;  %v4034_v49 = vpop.f32.mrf.mxu3 }
 0x4c6   : > { %v9234_v5 = vadd.f32 %v4034_v49, %v3946_v15 }
 0x4c7   : > { %4871 = vmatmul.bf16.gmra.mxu0 %v8773_v63 }
 0x4c8   : > { %10700 = vst [vmem:[#allocation40_spill] sm:$0xff] %v9234_v5 }
 0x4c9   : > { %v3861_v32 = vpop.f32.mrf.mxu1 }
 0x4ca   : > { %v3947_v4 = vpop.f32.mrf.mxu2 }
 0x4cb   : > { %v3948_v7 = vadd.f32 %v3947_v4, %v3858_v34 }
 0x4cc   : > { %v9236_v27 = vpop.f32.mrf.mxu0  ;;  %4320 = vmatmul.bf16.gmra.mxu1 %v10591_v48 }
 0x4cd   : > { %10701 = vst [vmem:[#allocation38_spill] sm:$0xff] %v9236_v27  ;;  %v4036_v47 = vpop.f32.mrf.mxu3  ;;  %4409 = vmatmul.bf16.gmra.mxu2 %v8909_v0 }
 0x4ce   : > { %v9238_v11 = vadd.f32 %v4036_v47, %v3948_v7 }
 0x4d0   : > { %10702 = vst [vmem:[#allocation21_spill] sm:$0xff] %v9238_v11 }
 0x4d1   : > { %v3863_v27 = vpop.f32.mrf.mxu1 }
 0x4d2   : > { %4787 = vmatmul.bf16.gmra.mxu3 %v8773_v63  ;;  %v3950_v49 = vpop.f32.mrf.mxu2 }
 0x4d3   : > { %v3951_v15 = vadd.f32 %v3950_v49, %v3861_v32 }
 0x4d4   : > { %v9243_v31 = vpop.f32.mrf.mxu0 }
 0x4d5   : > { %10703 = vst [vmem:[#allocation44_spill] sm:$0xff] %v9243_v31  ;;  %v4039_v6 = vpop.f32.mrf.mxu3 }
 0x4d6   : > { %v9246_v34 = vadd.f32 %v4039_v6, %v3951_v15  ;;  %v10707_v6 = vld [vmem:[#allocation13_spill] sm:$0xff] }
 0x4d7   : > { %4876 = vmatmul.bf16.gmra.mxu0 %v8789_v24 }
 0x4d9   : > { %v3866_v11 = vpop.f32.mrf.mxu1 }
 0x4da   : > { %v3952_v48 = vpop.f32.mrf.mxu2 }
 0x4db   : > { %v3953_v7 = vadd.f32 %v3952_v48, %v3863_v27 }
 0x4dc   : > { %v9248_v47 = vpop.f32.mrf.mxu0  ;;  %4325 = vmatmul.bf16.gmra.mxu1 %v8909_v0 }
 0x4dd   : > { %10704 = vst [vmem:[#allocation43_spill] sm:$0xff] %v9248_v47  ;;  %v4041_v4 = vpop.f32.mrf.mxu3  ;;  %4414 = vmatmul.bf16.gmra.mxu2 %v8941_v33 }
 0x4de   : > { %v9250_v5 = vadd.f32 %v4041_v4, %v3953_v7 }
 0x4e0   : > { %10705 = vst [vmem:[#allocation22_spill] sm:$0xff] %v9250_v5 }
 0x4e1   : > { %v3868_v47 = vpop.f32.mrf.mxu1 }
 0x4e2   : > { %4792 = vmatmul.bf16.gmra.mxu3 %v8789_v24  ;;  %v3955_v49 = vpop.f32.mrf.mxu2 }
 0x4e3   : > { %v3956_v15 = vadd.f32 %v3955_v49, %v3866_v11  ;;  %v6149_v11 = vld [vmem:[#allocation7 + $0x218] sm:$0xff] }
 0x4e4   : > { %v9255_v51 = vpop.f32.mrf.mxu0  ;;  %4941 = vmatpush.bf16.msra.mxu1 %v6149_v11 }
 0x4e5   : > { %10706 = vst [vmem:[#allocation49_spill] sm:$0xff] %v9255_v51  ;;  %v4044_v32 = vpop.f32.mrf.mxu3 }
 0x4e6   : > { %v9258_v31 = vadd.f32 %v4044_v32, %v3956_v15  ;;  %v10712_v15 = vld [vmem:[#allocation82_spill] sm:$0xff] }
 0x4e7   : > { %4881 = vmatmul.bf16.gmra.mxu0 %v10707_v6 }
 0x4e8   : > { %10708 = vst [vmem:[#allocation48_spill] sm:$0xff] %v9258_v31 }
 0x4e9   : > { %v3871_v0 = vpop.f32.mrf.mxu1 }
 0x4ea   : > { %v3957_v48 = vpop.f32.mrf.mxu2 }
 0x4eb   : > { %v3958_v7 = vadd.f32 %v3957_v48, %v3868_v47 }
 0x4ec   : > { %v9260_v27 = vpop.f32.mrf.mxu0  ;;  %4330 = vmatmul.bf16.gmra.mxu1 %v8941_v33 }
 0x4ed   : > { %10709 = vst [vmem:[#allocation23_spill] sm:$0xff] %v9260_v27  ;;  %v4046_v4 = vpop.f32.mrf.mxu3  ;;  %4419 = vmatmul.bf16.gmra.mxu2 %v8962_v53 }
 0x4ee   : > { %v9262_v5 = vadd.f32 %v4046_v4, %v3958_v7 }
 0x4f0   : > { %10710 = vst [vmem:[#allocation28_spill] sm:$0xff] %v9262_v5 }
 0x4f1   : > { %v3873_v31 = vpop.f32.mrf.mxu1 }
 0x4f2   : > { %4797 = vmatmul.bf16.gmra.mxu3 %v10707_v6  ;;  %v3960_v32 = vpop.f32.mrf.mxu2 }
 0x4f3   : > { %v3961_v27 = vadd.f32 %v3960_v32, %v3871_v0 }
 0x4f4   : > { %v9267_v51 = vpop.f32.mrf.mxu0 }
 0x4f5   : > { %10711 = vst [vmem:[#allocation26_spill] sm:$0xff] %v9267_v51  ;;  %v4049_v49 = vpop.f32.mrf.mxu3 }
 0x4f6   : > { %v9270_v47 = vadd.f32 %v4049_v49, %v3961_v27  ;;  %v10717_v27 = vld [vmem:[#allocation86_spill] sm:$0xff] }
 0x4f7   : > { %4886 = vmatmul.bf16.gmra.mxu0 %v10712_v15 }
 0x4f8   : > { %10713 = vst [vmem:[#allocation27_spill] sm:$0xff] %v9270_v47 }
 0x4f9   : > { %v3876_v5 = vpop.f32.mrf.mxu1 }
 0x4fa   : > { %v3962_v33 = vpop.f32.mrf.mxu2 }
 0x4fb   : > { %v3963_v7 = vadd.f32 %v3962_v33, %v3873_v31 }
 0x4fc   : > { %v9272_v4 = vpop.f32.mrf.mxu0  ;;  %4335 = vmatmul.bf16.gmra.mxu1 %v8962_v53 }
 0x4fd   : > { %10714 = vst [vmem:[#allocation37_spill] sm:$0xff] %v9272_v4  ;;  %v4051_v48 = vpop.f32.mrf.mxu3  ;;  %4424 = vmatmul.bf16.gmra.mxu2 %v8988_v16 }
 0x4fe   : > { %v9274_v6 = vadd.f32 %v4051_v48, %v3963_v7 }
 0x500   : > { %10715 = vst [vmem:[#allocation29_spill] sm:$0xff] %v9274_v6 }
 0x501   : > { %v3878_v4 = vpop.f32.mrf.mxu1 }
 0x502   : > { %4802 = vmatmul.bf16.gmra.mxu3 %v10712_v15  ;;  %v3965_v32 = vpop.f32.mrf.mxu2 }
 0x503   : > { %v3966_v49 = vadd.f32 %v3965_v32, %v3876_v5  ;;  %v6148_v32 = vld [vmem:[#allocation7 + $0x210] sm:$0xff] }
 0x504   : > { %v9279_v11 = vpop.f32.mrf.mxu0  ;;  %4942 = vmatpush.bf16.msra.mxu1 %v6148_v32 }
 0x505   : > { %10716 = vst [vmem:[#allocation32_spill] sm:$0xff] %v9279_v11  ;;  %v4054_v0 = vpop.f32.mrf.mxu3  ;;  %v10721_v11 = vld [vmem:[#allocation84_spill] sm:$0xff] }
 0x506   : > { %v9282_v51 = vadd.f32 %v4054_v0, %v3966_v49 }
 0x507   : > { %4891 = vmatmul.bf16.gmra.mxu0 %v10717_v27 }
 0x508   : > { %10718 = vst [vmem:[#allocation42_spill] sm:$0xff] %v9282_v51 }
 0x509   : > { %v4301_v53 = vpop.f32.mrf.mxu1 }
 0x50a   : > { %v3967_v33 = vpop.f32.mrf.mxu2  ;;  %v4302_v6 = vadd.f32 %v4301_v53, %v9063_v52 }
 0x50b   : > { %v3968_v7 = vadd.f32 %v3967_v33, %v3878_v4 }
 0x50c   : > { %v9284_v31 = vpop.f32.mrf.mxu0  ;;  %4340 = vmatmul.bf16.gmra.mxu1 %v8988_v16 }
 0x50d   : > { %10719 = vst [vmem:[#allocation73_spill] sm:$0xff] %v9284_v31  ;;  %v4056_v48 = vpop.f32.mrf.mxu3  ;;  %4429 = vmatmul.bf16.gmra.mxu2 %v9014_v41 }
 0x50e   : > { %v9287_v47 = vadd.f32 %v4056_v48, %v3968_v7 }
 0x510   : > { %10720 = vst [vmem:[#allocation77_spill] sm:$0xff] %v9287_v47 }
 0x511   : > { %v4303_v52 = vpop.f32.mrf.mxu1 }
 0x512   : > { %4807 = vmatmul.bf16.gmra.mxu3 %v10717_v27  ;;  %v4390_v49 = vpop.f32.mrf.mxu2  ;;  %v4304_v48 = vadd.f32 %v4303_v52, %v9087_v9 }
 0x513   : > { %v9295_v4 = vadd.f32 %v4390_v49, %v4302_v6  ;;  %v10724_v49 = vld [vmem:[#allocation85_spill] sm:$0xff] }
 0x514   : > { %v4857_v5 = vpop.f32.mrf.mxu0 }
 0x515   : > { %v4768_v0 = vpop.f32.mrf.mxu3 }
 0x516   : > { %v9292_v31 = vadd.f32 %v4857_v5, %v4768_v0 }
 0x517   : > { %4896 = vmatmul.bf16.gmra.mxu0 %v10721_v11 }
 0x519   : > { %v4306_v51 = vpop.f32.mrf.mxu1 }
 0x51a   : > { %v4392_v7 = vpop.f32.mrf.mxu2  ;;  %v4307_v32 = vadd.f32 %v4306_v51, %v9097_v50 }
 0x51b   : > { %v9300_v47 = vadd.f32 %v4392_v7, %v4304_v48 }
 0x51c   : > { %v4859_v33 = vpop.f32.mrf.mxu0  ;;  %4345 = vmatmul.bf16.gmra.mxu1 %v9014_v41 }
 0x51d   : > { %v4770_v16 = vpop.f32.mrf.mxu3  ;;  %10723 = vst [vmem:[#allocation30_spill] sm:$0xff] %v9300_v47  ;;  %4434 = vmatmul.bf16.gmra.mxu2 %v9043_v26 }
 0x51e   : > { %v9298_v53 = vadd.f32 %v4859_v33, %v4770_v16 }
 0x520   : > { %10722 = vst [vmem:[#allocation25_spill] sm:$0xff] %v9298_v53 }
 0x521   : > { %v4308_v48 = vpop.f32.mrf.mxu1 }
 0x522   : > { %4812 = vmatmul.bf16.gmra.mxu3 %v10721_v11  ;;  %v4395_v0 = vpop.f32.mrf.mxu2  ;;  %v4309_v33 = vadd.f32 %v4308_v48, %v9117_v18  ;;  %v10727_v48 = vld [vmem:[#allocation80_spill] sm:$0xff] }
 0x523   : > { %v9309_v52 = vadd.f32 %v4395_v0, %v4307_v32 }
 0x524   : > { %v4862_v6 = vpop.f32.mrf.mxu0 }
 0x525   : > { %v4773_v5 = vpop.f32.mrf.mxu3 }
 0x526   : > { %v9306_v9 = vadd.f32 %v4862_v6, %v4773_v5  ;;  %v6147_v6 = vld [vmem:[#allocation7 + $0x208] sm:$0xff] }
 0x527   : > { %4901 = vmatmul.bf16.gmra.mxu0 %v10724_v49  ;;  %4943 = vmatpush.bf16.msra.mxu1 %v6147_v6 }
 0x529   : > { %v4311_v47 = vpop.f32.mrf.mxu1 }
 0x52a   : > { %v4397_v51 = vpop.f32.mrf.mxu2  ;;  %v4312_v53 = vadd.f32 %v4311_v47, %v9127_v35 }
 0x52b   : > { %v9314_v7 = vadd.f32 %v4397_v51, %v4309_v33 }
 0x52c   : > { %v4864_v16 = vpop.f32.mrf.mxu0  ;;  %4350 = vmatmul.bf16.gmra.mxu1 %v9043_v26 }
 0x52d   : > { %v4775_v50 = vpop.f32.mrf.mxu3  ;;  %10726 = vst [vmem:[#allocation31_spill] sm:$0xff] %v9314_v7  ;;  %4439 = vmatmul.bf16.gmra.mxu2 %v9071_v62 }
 0x52e   : > { %v9312_v41 = vadd.f32 %v4864_v16, %v4775_v50 }
 0x530   : > { %10725 = vst [vmem:[#allocation17_spill] sm:$0xff] %v9312_v41 }
 0x531   : > { %v4313_v16 = vpop.f32.mrf.mxu1 }
 0x532   : > { %4817 = vmatmul.bf16.gmra.mxu3 %v10724_v49  ;;  %v4400_v18 = vpop.f32.mrf.mxu2  ;;  %v4314_v35 = vadd.f32 %v4313_v16, %v9136_v61 }
 0x533   : > { %v9323_v33 = vadd.f32 %v4400_v18, %v4312_v53  ;;  %v10730_v18 = vld [vmem:[#allocation87_spill] sm:$0xff] }
 0x534   : > { %v4867_v32 = vpop.f32.mrf.mxu0 }
 0x535   : > { %v4778_v5 = vpop.f32.mrf.mxu3 }
 0x536   : > { %v9320_v0 = vadd.f32 %v4867_v32, %v4778_v5 }
 0x537   : > { %4906 = vmatmul.bf16.gmra.mxu0 %v10727_v48 }
 0x539   : > { %v4316_v41 = vpop.f32.mrf.mxu1 }
 0x53a   : > { %v4402_v50 = vpop.f32.mrf.mxu2  ;;  %v4317_v6 = vadd.f32 %v4316_v41, %v9155_v12 }
 0x53b   : > { %v9328_v7 = vadd.f32 %v4402_v50, %v4314_v35 }
 0x53c   : > { %v4869_v47 = vpop.f32.mrf.mxu0  ;;  %4355 = vmatmul.bf16.gmra.mxu1 %v9071_v62 }
 0x53d   : > { %v4780_v26 = vpop.f32.mrf.mxu3  ;;  %10729 = vst [vmem:[#allocation19_spill] sm:$0xff] %v9328_v7  ;;  %4444 = vmatmul.bf16.gmra.mxu2 %v9104_v42 }
 0x53e   : > { %v9326_v51 = vadd.f32 %v4869_v47, %v4780_v26 }
 0x540   : > { %10728 = vst [vmem:[#allocation16_spill] sm:$0xff] %v9326_v51 }
 0x541   : > { %v4318_v35 = vpop.f32.mrf.mxu1 }
 0x542   : > { %4822 = vmatmul.bf16.gmra.mxu3 %v10727_v48  ;;  %v4405_v5 = vpop.f32.mrf.mxu2  ;;  %v4319_v47 = vadd.f32 %v4318_v35, %v9166_v14  ;;  %v10733_v35 = vld [vmem:[#allocation35_spill] sm:$0xff] }
 0x543   : > { %v9337_v16 = vadd.f32 %v4405_v5, %v4317_v6 }
 0x544   : > { %v4872_v53 = vpop.f32.mrf.mxu0 }
 0x545   : > { %v4783_v32 = vpop.f32.mrf.mxu3 }
 0x546   : > { %v9334_v61 = vadd.f32 %v4872_v53, %v4783_v32  ;;  %v6146_v53 = vld [vmem:[#allocation7 + $0x200] sm:$0xff] }
 0x547   : > { %4911 = vmatmul.bf16.gmra.mxu0 %v10730_v18  ;;  %4944 = vmatpush.bf16.msra.mxu1 %v6146_v53 }
 0x549   : > { %v4321_v7 = vpop.f32.mrf.mxu1 }
 0x54a   : > { %v4407_v41 = vpop.f32.mrf.mxu2  ;;  %v4322_v51 = vadd.f32 %v4321_v7, %v9180_v46 }
 0x54b   : > { %v9342_v50 = vadd.f32 %v4407_v41, %v4319_v47 }
 0x54c   : > { %v4874_v26 = vpop.f32.mrf.mxu0  ;;  %4360 = vmatmul.bf16.gmra.mxu1 %v9104_v42 }
 0x54d   : > { %v4785_v12 = vpop.f32.mrf.mxu3  ;;  %10732 = vst [vmem:[#allocation33_spill] sm:$0xff] %v9342_v50  ;;  %4449 = vmatmul.bf16.gmra.mxu2 %v8721_v60 }
 0x54e   : > { %v9340_v62 = vadd.f32 %v4874_v26, %v4785_v12 }
 0x550   : > { %10731 = vst [vmem:[#allocation34_spill] sm:$0xff] %v9340_v62 }
 0x551   : > { %v4323_v26 = vpop.f32.mrf.mxu1 }
 0x552   : > { %4827 = vmatmul.bf16.gmra.mxu3 %v10730_v18  ;;  %v4410_v14 = vpop.f32.mrf.mxu2  ;;  %v4324_v46 = vadd.f32 %v4323_v26, %v9188_v37 }
 0x553   : > { %v9351_v47 = vadd.f32 %v4410_v14, %v4322_v51 }
 0x554   : > { %v4877_v6 = vpop.f32.mrf.mxu0 }
 0x555   : > { %v4788_v32 = vpop.f32.mrf.mxu3 }
 0x556   : > { %v9348_v5 = vadd.f32 %v4877_v6, %v4788_v32 }
 0x557   : > { %4916 = vmatmul.bf16.gmra.mxu0 %v10733_v35 }
 0x559   : > { %v4326_v62 = vpop.f32.mrf.mxu1 }
 0x55a   : > { %v4412_v12 = vpop.f32.mrf.mxu2  ;;  %v4327_v53 = vadd.f32 %v4326_v62, %v9200_v54 }
 0x55b   : > { %v9356_v50 = vadd.f32 %v4412_v12, %v4324_v46 }
 0x55c   : > { %v4879_v7 = vpop.f32.mrf.mxu0  ;;  %4365 = vmatmul.bf16.gmra.mxu1 %v8721_v60 }
 0x55d   : > { %v4790_v42 = vpop.f32.mrf.mxu3  ;;  %10734 = vst [vmem:[#allocation64_spill] sm:$0xff] %v9356_v50  ;;  %4454 = vmatmul.bf16.gmra.mxu2 %v8739_v13 }
 0x55e   : > { %v9354_v41 = vadd.f32 %v4879_v7, %v4790_v42 }
 0x561   : > { %v4328_v26 = vpop.f32.mrf.mxu1 }
 0x562   : > { %4832 = vmatmul.bf16.gmra.mxu3 %v10733_v35  ;;  %v4415_v32 = vpop.f32.mrf.mxu2  ;;  %v4329_v46 = vadd.f32 %v4328_v26, %v9212_v22  ;;  %v10739_v26 = vld [vmem:[#allocation53_spill] sm:$0xff] }
 0x563   : > { %v9365_v14 = vadd.f32 %v4415_v32, %v4327_v53  ;;  %v4245_v32 = vadd.f32 %v9132_v23, %v9138_v29 }
 0x564   : > { %v4882_v51 = vpop.f32.mrf.mxu0 }
 0x565   : > { %v4793_v6 = vpop.f32.mrf.mxu3  ;;  %10735 = vst [vmem:[#allocation39_spill] sm:$0xff] %v9365_v14 }
 0x566   : > { %v9362_v37 = vadd.f32 %v4882_v51, %v4793_v6 }
 0x567   : > { %4921 = vmatmul.bf16.gmra.mxu0 %v8911_v39 }
 0x569   : > { %v4331_v12 = vpop.f32.mrf.mxu1 }
 0x56a   : > { %v4417_v62 = vpop.f32.mrf.mxu2  ;;  %v4332_v50 = vadd.f32 %v4331_v12, %v9222_v17  ;;  %v10741_v17 = vrot.slane %v10629_v45, 1 }
 0x56b   : > { %v9370_v42 = vadd.f32 %v4417_v62, %v4329_v46  ;;  %v10740_v46 = vrot.slane %v10739_v26, 1 }
 0x56c   : > { %v4884_v7 = vpop.f32.mrf.mxu0  ;;  %4370 = vmatmul.bf16.gmra.mxu1 %v8739_v13 }
 0x56d   : > { %v4795_v54 = vpop.f32.mrf.mxu3  ;;  %10737 = vst [vmem:[#allocation45_spill] sm:$0xff] %v9370_v42  ;;  %4459 = vmatmul.bf16.gmra.mxu2 %v8933_v25  ;;  %v10743_v42 = vld [vmem:[#allocation55_spill] sm:$0xff] }
 0x56e   : > { %v9368_v60 = vadd.f32 %v4884_v7, %v4795_v54  ;;  %v3198_v7 = vsel %vm10742_vm15, %v10741_v17, %v10740_v46 }
 0x570   : > { %10736 = vst [vmem:[#allocation41_spill] sm:$0xff] %v9368_v60  ;;  %v10744_v60 = vld [vmem:[#allocation54_spill] sm:$0xff] }
 0x571   : > { %v4333_v62 = vpop.f32.mrf.mxu1  ;;  %vm10745_vm3 = vnez %v10744_v60 }
 0x572   : > { %4837 = vmatmul.bf16.gmra.mxu3 %v8911_v39  ;;  %v4420_v6 = vpop.f32.mrf.mxu2  ;;  %v4334_v12 = vadd.f32 %v4333_v62, %v4245_v32 }
 0x573   : > { %v9387_v54 = vadd.f32 %v4420_v6, %v4332_v50 }
 0x574   : > { %v4887_v53 = vpop.f32.mrf.mxu0 }
 0x575   : > { %v4798_v51 = vpop.f32.mrf.mxu3 }
 0x576   : > { %v9376_v22 = vadd.f32 %v4887_v53, %v4798_v51  ;;  %v3326_v53 = vsel %vm10745_vm3, %v10743_v42, %v3198_v7 }
 0x577   : > { %4926 = vmatmul.bf16.gmra.mxu0 %v8935_v44  ;;  %v3358_v23 = vpack.c.bf16 %v3326_v53, %v3326_v53 }
 0x578   : > { %10738 = vst [vmem:[#allocation46_spill] sm:$0xff] %v9376_v22  ;;  %v3357_v22 = vpack.c.bf16 %v8901_v56, %v8901_v56 }
 0x579   : > { %v4336_v50 = vpop.f32.mrf.mxu1  ;;  %v4563_v46 = vunpack.c.l.b16 %v3358_v23 }
 0x57a   : > { %v4422_v26 = vpop.f32.mrf.mxu2  ;;  %v4337_v6 = vadd.f32 %v4336_v50, %v4248_v19  ;;  %v4562_v32 = vunpack.c.l.b16 %v3357_v22 }
 0x57b   : > { %v9398_v45 = vadd.f32 %v4422_v26, %v4334_v12 }
 0x57c   : > { %v4889_v51 = vpop.f32.mrf.mxu0  ;;  %4375 = vmatmul.bf16.gmra.mxu1 %v8933_v25  ;;  %v9403_v60 = vpack.c.b16 %v4563_v46, %v4562_v32 }
 0x57d   : > { %v4800_v29 = vpop.f32.mrf.mxu3  ;;  %4464 = vmatmul.bf16.gmra.mxu2 %v8739_v13 }
 0x57e   : > { %v9394_v14 = vadd.f32 %v4889_v51, %v4800_v29  ;;  %v4253_v51 = vadd.f32 %v9175_v36, %v9182_v28 }
 0x581   : > { %v4338_v22 = vpop.f32.mrf.mxu1 }
 0x582   : > { %4842 = vmatmul.bf16.gmra.mxu3 %v8935_v44  ;;  %v4425_v17 = vpop.f32.mrf.mxu2  ;;  %v4339_v25 = vadd.f32 %v4338_v22, %v4250_v10 }
 0x583   : > { %v9410_v55 = vadd.f32 %v4425_v17, %v4337_v6  ;;  %v4255_v6 = vadd.f32 %v9184_v21, %v9190_v58 }
 0x584   : > { %v4892_v56 = vpop.f32.mrf.mxu0 }
 0x585   : > { %v4803_v42 = vpop.f32.mrf.mxu3 }
 0x586   : > { %v9405_v7 = vadd.f32 %v4892_v56, %v4803_v42 }
 0x587   : > { %4931 = vmatmul.bf16.gmra.mxu0 %v9403_v60 }
 0x589   : > { %v4341_v29 = vpop.f32.mrf.mxu1 }
 0x58a   : > { %v4427_v53 = vpop.f32.mrf.mxu2  ;;  %v4342_v26 = vadd.f32 %v4341_v29, %v4253_v51 }
 0x58b   : > { %v9416_v23 = vadd.f32 %v4427_v53, %v4339_v25  ;;  %v4260_v53 = vadd.f32 %v9204_v59, %v9206_v38 }
 0x58c   : > { %v4894_v62 = vpop.f32.mrf.mxu0  ;;  %4945 = vmatmul.bf16.vlgmr.msra.gmra.mxu1 %v9168_v43  ;;  %v4258_v43 = vadd.f32 %v9195_v2, %v9202_v8 }
 0x58d   : > { %v4805_v12 = vpop.f32.mrf.mxu3 }
 0x58e   : > { %v9412_v13 = vadd.f32 %v4894_v62, %v4805_v12 }
 0x591   : > { %v4343_v46 = vpop.f32.mrf.mxu1 }
 0x592   : > { %v4430_v30 = vpop.f32.mrf.mxu2  ;;  %v4344_v56 = vadd.f32 %v4343_v46, %v4255_v6 }
 0x593   : > { %v9423_v32 = vadd.f32 %v4430_v30, %v4342_v26  ;;  %v10746_v30 = vld [vmem:[#allocation36_spill] sm:$0xff] }
 0x594   : > { %v4897_v19 = vpop.f32.mrf.mxu0 }
 0x595   : > { %v4808_v20 = vpop.f32.mrf.mxu3 }
 0x596   : > { %v9419_v50 = vadd.f32 %v4897_v19, %v4808_v20 }
 0x599   : > { %v4346_v22 = vpop.f32.mrf.mxu1 }
 0x59a   : > { %v4432_v28 = vpop.f32.mrf.mxu2  ;;  %v4347_v25 = vadd.f32 %v4346_v22, %v4258_v43 }
 0x59b   : > { %v9429_v10 = vadd.f32 %v4432_v28, %v4344_v56  ;;  %v4265_v28 = vadd.f32 %v9224_v57, %v9226_v40  ;;  %v10751_v40 = vld [vmem:[#allocation44_spill] sm:$0xff] }
 0x59c   : > { %v4899_v42 = vpop.f32.mrf.mxu0  ;;  %4950 = vmatmul.bf16.gmra.mxu1 %v8760_v3  ;;  %v4263_v3 = vadd.f32 %v10746_v30, %v9218_v1  ;;  %v10747_v1 = vld [vmem:[#allocation40_spill] sm:$0xff]  ;;  %v4273_v57 = vadd.f32 %v10751_v40, %v9246_v34 }
 0x59d   : > { %v4810_v36 = vpop.f32.mrf.mxu3  ;;  %v10757_v34 = vld [vmem:[#allocation28_spill] sm:$0xff] }
 0x59e   : > { %v9425_v17 = vadd.f32 %v4899_v42, %v4810_v36 }
 0x5a1   : > { %v4348_v29 = vpop.f32.mrf.mxu1 }
 0x5a2   : > { %v4435_v58 = vpop.f32.mrf.mxu2  ;;  %v4349_v26 = vadd.f32 %v4348_v29, %v4260_v53  ;;  %v10750_v29 = vld [vmem:[#allocation38_spill] sm:$0xff] }
 0x5a3   : > { %v9436_v51 = vadd.f32 %v4435_v58, %v4347_v25 }
 0x5a4   : > { %v4902_v62 = vpop.f32.mrf.mxu0 }
 0x5a5   : > { %v4813_v21 = vpop.f32.mrf.mxu3 }
 0x5a6   : > { %v9432_v12 = vadd.f32 %v4902_v62, %v4813_v21  ;;  %v10748_v62 = vld [vmem:[#allocation20_spill] sm:$0xff] }
 0x5a7   : > { %v4268_v21 = vadd.f32 %v10748_v62, %v10747_v1 }
 0x5a9   : > { %v4351_v46 = vpop.f32.mrf.mxu1 }
 0x5aa   : > { %v4437_v8 = vpop.f32.mrf.mxu2  ;;  %v4352_v56 = vadd.f32 %v4351_v46, %v4263_v3  ;;  %v10752_v3 = vld [vmem:[#allocation13_spill] sm:$0xff]  ;;  %v10753_v46 = vld [vmem:[#allocation22_spill] sm:$0xff] }
 0x5ab   : > { %v9442_v6 = vadd.f32 %v4437_v8, %v4349_v26 }
 0x5ac   : > { %v4904_v19 = vpop.f32.mrf.mxu0  ;;  %4955 = vmatmul.bf16.gmra.mxu1 %v8773_v63  ;;  %v10749_v63 = vld [vmem:[#allocation21_spill] sm:$0xff] }
 0x5ad   : > { %v4815_v2 = vpop.f32.mrf.mxu3  ;;  %v4270_v26 = vadd.f32 %v10750_v29, %v10749_v63 }
 0x5ae   : > { %v9438_v20 = vadd.f32 %v4904_v19, %v4815_v2 }
 0x5b1   : > { %v4353_v22 = vpop.f32.mrf.mxu1 }
 0x5b2   : > { %v4440_v38 = vpop.f32.mrf.mxu2  ;;  %v9451_v25 = vadd.f32 %v4353_v22, %v4265_v28  ;;  %v10756_v28 = vld [vmem:[#allocation49_spill] sm:$0xff] }
 0x5b3   : > { %v9449_v43 = vadd.f32 %v4440_v38, %v4352_v56  ;;  %v10754_v56 = vld [vmem:[#allocation43_spill] sm:$0xff] }
 0x5b4   : > { %v4907_v42 = vpop.f32.mrf.mxu0 }
 0x5b5   : > { %v4818_v59 = vpop.f32.mrf.mxu3 }
 0x5b6   : > { %v9445_v36 = vadd.f32 %v4907_v42, %v4818_v59  ;;  %v4275_v42 = vadd.f32 %v10754_v56, %v10753_v46  ;;  %v10762_v46 = vld [vmem:[#allocation37_spill] sm:$0xff] }
 0x5b9   : > { %v4356_v58 = vpop.f32.mrf.mxu1 }
 0x5ba   : > { %v9455_v53 = vadd.f32 %v4356_v58, %v4268_v21  ;;  %v10758_v21 = vld [vmem:[#allocation23_spill] sm:$0xff] }
 0x5bb   : > { %v4280_v58 = vadd.f32 %v10758_v21, %v10757_v34  ;;  %v10765_v34 = vld [vmem:[#allocation77_spill] sm:$0xff] }
 0x5bc   : > { %4960 = vmatmul.bf16.gmra.mxu1 %v8789_v24  ;;  %v10755_v24 = vld [vmem:[#allocation48_spill] sm:$0xff]  ;;  %v10766_v21 = vld [vmem:[#allocation73_spill] sm:$0xff] }
 0x5bd   : > { %v4278_v22 = vadd.f32 %v10756_v28, %v10755_v24  ;;  %v10764_v24 = vld [vmem:[#allocation32_spill] sm:$0xff] }
 0x5c1   : > { %v4358_v19 = vpop.f32.mrf.mxu1 }
 0x5c2   : > { %v9460_v2 = vadd.f32 %v4358_v19, %v4270_v26  ;;  %v10759_v26 = vld [vmem:[#allocation27_spill] sm:$0xff]  ;;  %v10760_v19 = vld [vmem:[#allocation26_spill] sm:$0xff] }
 0x5c3   : > { %v4283_v40 = vadd.f32 %v10760_v19, %v10759_v26 }
 0x5c9   : > { %v4361_v8 = vpop.f32.mrf.mxu1 }
 0x5ca   : > { %v9464_v30 = vadd.f32 %v4361_v8, %v4273_v57 }
 0x5cc   : > { %4965 = vmatmul.bf16.gmra.mxu1 %v10752_v3  ;;  %v10761_v3 = vld [vmem:[#allocation29_spill] sm:$0xff] }
 0x5cd   : > { %v4285_v56 = vadd.f32 %v10762_v46, %v10761_v3  ;;  %v10767_v3 = vld [vmem:[#allocation25_spill] sm:$0xff] }
 0x5d1   : > { %v4363_v59 = vpop.f32.mrf.mxu1 }
 0x5d2   : > { %v9469_v38 = vadd.f32 %v4363_v59, %v4275_v42 }
 0x5d9   : > { %v4366_v1 = vpop.f32.mrf.mxu1 }
 0x5da   : > { %v9473_v62 = vadd.f32 %v4366_v1, %v4278_v22 }
 0x5dc   : > { %4970 = vmatmul.bf16.gmra.mxu1 %v10712_v15  ;;  %v10763_v15 = vld [vmem:[#allocation42_spill] sm:$0xff] }
 0x5dd   : > { %v4288_v28 = vadd.f32 %v10764_v24, %v10763_v15 }
 0x5e1   : > { %v4368_v63 = vpop.f32.mrf.mxu1 }
 0x5e2   : > { %v9478_v29 = vadd.f32 %v4368_v63, %v4280_v58  ;;  %v4290_v58 = vadd.f32 %v10766_v21, %v10765_v34 }
 0x5e9   : > { %v4371_v57 = vpop.f32.mrf.mxu1 }
 0x5ea   : > { %v9482_v8 = vadd.f32 %v4371_v57, %v4283_v40 }
 0x5ec   : > { %4975 = vmatmul.bf16.gmra.mxu1 %v10717_v27 }
 0x5f1   : > { %v4373_v42 = vpop.f32.mrf.mxu1 }
 0x5f2   : > { %v9487_v59 = vadd.f32 %v4373_v42, %v4285_v56  ;;  %v10768_v56 = vld [vmem:[#allocation30_spill] sm:$0xff] }
 0x5f9   : > { %v4376_v22 = vpop.f32.mrf.mxu1 }
 0x5fa   : > { %v9491_v1 = vadd.f32 %v4376_v22, %v4288_v28  ;;  %v10769_v28 = vld [vmem:[#allocation17_spill] sm:$0xff]  ;;  %v10770_v22 = vld [vmem:[#allocation31_spill] sm:$0xff] }
 0x5fc   : > { %4980 = vmatmul.bf16.gmra.mxu1 %v10721_v11 }
 0x601   : > { %v4378_v63 = vpop.f32.mrf.mxu1 }
 0x602   : > { %v9496_v26 = vadd.f32 %v4378_v63, %v4290_v58  ;;  %v10771_v63 = vld [vmem:[#allocation16_spill] sm:$0xff] }
 0x609   : > { %v4946_v27 = vpop.f32.mrf.mxu1 }
 0x60a   : > { %v4947_v19 = vadd.f32 %v4946_v27, %v9292_v31  ;;  %v10772_v27 = vld [vmem:[#allocation19_spill] sm:$0xff] }
 0x60c   : > { %v9500_v40 = vadd.f32 %v4947_v19, %v9295_v4  ;;  %4985 = vmatmul.bf16.gmra.mxu1 %v10724_v49 }
 0x611   : > { %v4948_v57 = vpop.f32.mrf.mxu1 }
 0x612   : > { %v4949_v46 = vadd.f32 %v4948_v57, %v10767_v3 }
 0x614   : > { %v9505_v42 = vadd.f32 %v4949_v46, %v10768_v56  ;;  %v10773_v46 = vld [vmem:[#allocation34_spill] sm:$0xff]  ;;  %v10774_v56 = vld [vmem:[#allocation33_spill] sm:$0xff] }
 0x619   : > { %v4951_v11 = vpop.f32.mrf.mxu1 }
 0x61a   : > { %v4952_v15 = vadd.f32 %v4951_v11, %v9306_v9 }
 0x61c   : > { %v9509_v24 = vadd.f32 %v4952_v15, %v9309_v52  ;;  %4990 = vmatmul.bf16.gmra.mxu1 %v10727_v48 }
 0x621   : > { %v4953_v31 = vpop.f32.mrf.mxu1 }
 0x622   : > { %v4954_v4 = vadd.f32 %v4953_v31, %v10769_v28  ;;  %v10775_v28 = vld [vmem:[#allocation64_spill] sm:$0xff] }
 0x624   : > { %v9514_v34 = vadd.f32 %v4954_v4, %v10770_v22 }
 0x629   : > { %v4956_v49 = vpop.f32.mrf.mxu1 }
 0x62a   : > { %v4957_v21 = vadd.f32 %v4956_v49, %v9320_v0  ;;  %v10777_v49 = vld [vmem:[#allocation39_spill] sm:$0xff] }
 0x62c   : > { %v9518_v58 = vadd.f32 %v4957_v21, %v9323_v33  ;;  %4995 = vmatmul.bf16.gmra.mxu1 %v10730_v18 }
 0x631   : > { %v4958_v9 = vpop.f32.mrf.mxu1 }
 0x632   : > { %v4959_v52 = vadd.f32 %v4958_v9, %v10771_v63  ;;  %v10779_v9 = vld [vmem:[#allocation41_spill] sm:$0xff] }
 0x633   : > { %v10780_v63 = vld [vmem:[#allocation45_spill] sm:$0xff] }
 0x634   : > { %v9523_v19 = vadd.f32 %v4959_v52, %v10772_v27  ;;  %v10781_v27 = vld [vmem:[#allocation46_spill] sm:$0xff] }
 0x639   : > { %v4961_v48 = vpop.f32.mrf.mxu1 }
 0x63a   : > { %v4962_v57 = vadd.f32 %v4961_v48, %v9334_v61 }
 0x63c   : > { %v9527_v3 = vadd.f32 %v4962_v57, %v9337_v16  ;;  %5000 = vmatmul.bf16.gmra.mxu1 %v10733_v35 }
 0x641   : > { %v4963_v0 = vpop.f32.mrf.mxu1 }
 0x642   : > { %v4964_v33 = vadd.f32 %v4963_v0, %v10773_v46 }
 0x644   : > { %v9532_v11 = vadd.f32 %v4964_v33, %v10774_v56 }
 0x649   : > { %v4966_v18 = vpop.f32.mrf.mxu1 }
 0x64a   : > { %v4967_v15 = vadd.f32 %v4966_v18, %v9348_v5 }
 0x64c   : > { %v9536_v31 = vadd.f32 %v4967_v15, %v9351_v47  ;;  %5005 = vmatmul.bf16.gmra.mxu1 %v8911_v39 }
 0x651   : > { %v4968_v61 = vpop.f32.mrf.mxu1 }
 0x652   : > { %v4969_v16 = vadd.f32 %v4968_v61, %v9354_v41 }
 0x654   : > { %v9541_v4 = vadd.f32 %v4969_v16, %v10775_v28  ;;  %v9578_v16 = vpop.f32.mrf.mxu3  ;;  %v9580_v28 = vpop.f32.mrf.mxu0 }
 0x656   : > { %10776 = vst [vmem:[#allocation50_spill] sm:$0xff] %v9541_v4 }
 0x659   : > { %v4971_v35 = vpop.f32.mrf.mxu1 }
 0x65a   : > { %v4972_v22 = vadd.f32 %v4971_v35, %v9362_v37 }
 0x65c   : > { %v9545_v21 = vadd.f32 %v4972_v22, %v10777_v49  ;;  %5010 = vmatmul.bf16.gmra.mxu1 %v8935_v44  ;;  %v9589_v22 = vpop.f32.mrf.mxu3 }
 0x65e   : > { %10778 = vst [vmem:[#allocation65_spill] sm:$0xff] %v9545_v21 }
 0x661   : > { %v4973_v5 = vpop.f32.mrf.mxu1 }
 0x662   : > { %v4974_v47 = vadd.f32 %v4973_v5, %v10779_v9 }
 0x664   : > { %v9550_v52 = vadd.f32 %v4974_v47, %v10780_v63  ;;  %v5097_v63 = vmul.f32 %v9505_v42, %v9505_v42 }
 0x669   : > { %v4976_v39 = vpop.f32.mrf.mxu1 }
 0x66a   : > { %v4977_v41 = vadd.f32 %v4976_v39, %v10781_v27  ;;  %v5098_v39 = vmul.f32 %v9509_v24, %v9509_v24 }
 0x66c   : > { %v9554_v48 = vadd.f32 %v4977_v41, %v9387_v54  ;;  %5015 = vmatmul.bf16.gmra.mxu1 %v9403_v60  ;;  %v5099_v41 = vmul.f32 %v9514_v34, %v9514_v34 }
 0x66e   : > { %10782 = vst [vmem:[#allocation75_spill] sm:$0xff] %v9554_v48 }
 0x671   : > { %v4978_v37 = vpop.f32.mrf.mxu1 }
 0x672   : > { %v4979_v57 = vadd.f32 %v4978_v37, %v9394_v14 }
 0x674   : > { %v9559_v0 = vadd.f32 %v4979_v57, %v9398_v45 }
 0x679   : > { %v4981_v46 = vpop.f32.mrf.mxu1 }
 0x67a   : > { %v4982_v33 = vadd.f32 %v4981_v46, %v9405_v7  ;;  %v5100_v46 = vmul.f32 %v9518_v58, %v9518_v58 }
 0x67c   : > { %v9563_v56 = vadd.f32 %v4982_v33, %v9410_v55  ;;  %5020 = vmatmul.bf16.gmra.mxu1 %v8935_v44 }
 0x67e   : > { %10783 = vst [vmem:[#allocation78_spill] sm:$0xff] %v9563_v56 }
 0x681   : > { %v4983_v18 = vpop.f32.mrf.mxu1 }
 0x682   : > { %v4984_v54 = vadd.f32 %v4983_v18, %v9412_v13 }
 0x684   : > { %v9568_v15 = vadd.f32 %v4984_v54, %v9416_v23  ;;  %v9583_v23 = vpop.f32.mrf.mxu2 }
 0x689   : > { %v4986_v60 = vpop.f32.mrf.mxu1 }
 0x68a   : > { %v4987_v14 = vadd.f32 %v4986_v60, %v9419_v50  ;;  %v5101_v60 = vmul.f32 %v9523_v19, %v9523_v19 }
 0x68c   : > { %v9572_v45 = vadd.f32 %v4987_v14, %v9423_v32  ;;  %v9596_v49 = vpop.f32.mrf.mxu2 }
 0x691   : > { %v4988_v61 = vpop.f32.mrf.mxu1 }
 0x692   : > { %v4989_v7 = vadd.f32 %v4988_v61, %v9425_v17  ;;  %v9591_v17 = vpop.f32.mrf.mxu0 }
 0x694   : > { %v9576_v55 = vadd.f32 %v4989_v7, %v9429_v10 }
 0x699   : > { %v4991_v44 = vpop.f32.mrf.mxu1 }
 0x69a   : > { %v4992_v13 = vadd.f32 %v4991_v44, %v9432_v12  ;;  %v9604_v47 = vpop.f32.mrf.mxu0 }
 0x69c   : > { %v9586_v50 = vadd.f32 %v4992_v13, %v9436_v51  ;;  %v9602_v51 = vpop.f32.mrf.mxu3  ;;  %v5102_v13 = vmul.f32 %v9527_v3, %v9527_v3 }
 0x6a1   : > { %v4993_v32 = vpop.f32.mrf.mxu1 }
 0x6a2   : > { %v4994_v35 = vadd.f32 %v4993_v32, %v9438_v20  ;;  %v9606_v20 = vpop.f32.mrf.mxu2  ;;  %v4917_v14 = vpop.f32.mrf.mxu0 }
 0x6a4   : > { %v9594_v10 = vadd.f32 %v4994_v35, %v9442_v6  ;;  %v5096_v6 = vmul.f32 %v9500_v40, %v9500_v40  ;;  %v9622_v18 = vpop.f32.mrf.mxu3 }
 0x6a9   : > { %v4996_v5 = vpop.f32.mrf.mxu1 }
 0x6aa   : > { %v4997_v12 = vadd.f32 %v4996_v5, %v9445_v36  ;;  %v5058_v36 = vadd.f32 %v9505_v42, %v9500_v40  ;;  %v9627_v7 = vpop.f32.mrf.mxu2 }
 0x6ac   : > { %v9600_v9 = vadd.f32 %v4997_v12, %v9449_v43  ;;  %v5128_v43 = vadd.f32 %v5097_v63, %v5096_v6  ;;  %v5059_v37 = vadd.f32 %v5058_v36, %v9509_v24  ;;  %v5103_v12 = vmul.f32 %v9532_v11, %v9532_v11 }
 0x6ae   : > { %v5129_v57 = vadd.f32 %v5128_v43, %v5098_v39  ;;  %v5060_v33 = vadd.f32 %v5059_v37, %v9514_v34  ;;  %v5104_v39 = vmul.f32 %v9536_v31, %v9536_v31 }
 0x6b0   : > { %v5130_v54 = vadd.f32 %v5129_v57, %v5099_v41  ;;  %v5061_v61 = vadd.f32 %v5060_v33, %v9518_v58  ;;  %v5105_v41 = vmul.f32 %v9541_v4, %v9541_v4  ;;  %v4830_v57 = vpop.f32.mrf.mxu3  ;;  %v5106_v33 = vmul.f32 %v9545_v21, %v9545_v21 }
 0x6b1   : > { %v4998_v27 = vpop.f32.mrf.mxu1 }
 0x6b2   : > { %v5131_v44 = vadd.f32 %v5130_v54, %v5100_v46  ;;  %v5062_v35 = vadd.f32 %v5061_v61, %v9523_v19 }
 0x6b4   : > { %v5132_v5 = vadd.f32 %v5131_v44, %v5101_v60  ;;  %v5063_v63 = vadd.f32 %v5062_v35, %v9527_v3  ;;  %v4919_v60 = vpop.f32.mrf.mxu0  ;;  %v4452_v44 = vpop.f32.mrf.mxu2  ;;  %v5107_v35 = vmul.f32 %v9550_v52, %v9550_v52 }
 0x6b6   : > { %v5133_v6 = vadd.f32 %v5132_v5, %v5102_v13  ;;  %v5064_v36 = vadd.f32 %v5063_v63, %v9532_v11  ;;  %v5108_v63 = vmul.f32 %v9554_v48, %v9554_v48 }
 0x6b8   : > { %v5134_v43 = vadd.f32 %v5133_v6, %v5103_v12  ;;  %v5065_v37 = vadd.f32 %v5064_v36, %v9536_v31  ;;  %v5109_v36 = vmul.f32 %v9559_v0, %v9559_v0 }
 0x6b9   : > { %v5001_v32 = vpop.f32.mrf.mxu1 }
 0x6ba   : > { %v5135_v46 = vadd.f32 %v5134_v43, %v5104_v39  ;;  %v5066_v61 = vadd.f32 %v5065_v37, %v9541_v4 }
 0x6bc   : > { %v5136_v13 = vadd.f32 %v5135_v46, %v5105_v41  ;;  %v5067_v5 = vadd.f32 %v5066_v61, %v9545_v21  ;;  %v5110_v41 = vmul.f32 %v9563_v56, %v9563_v56  ;;  %v4833_v61 = vpop.f32.mrf.mxu3  ;;  %v4922_v21 = vpop.f32.mrf.mxu0 }
 0x6be   : > { %v5137_v12 = vadd.f32 %v5136_v13, %v5106_v33  ;;  %v5068_v6 = vadd.f32 %v5067_v5, %v9550_v52  ;;  %v5111_v13 = vmul.f32 %v9568_v15, %v9568_v15  ;;  %v4455_v5 = vpop.f32.mrf.mxu2 }
 0x6c0   : > { %v5138_v39 = vadd.f32 %v5137_v12, %v5107_v35  ;;  %v5069_v43 = vadd.f32 %v5068_v6, %v9554_v48  ;;  %v5112_v6 = vmul.f32 %v9572_v45, %v9572_v45 }
 0x6c1   : > { %v5003_v54 = vpop.f32.mrf.mxu1 }
 0x6c2   : > { %v5139_v37 = vadd.f32 %v5138_v39, %v5108_v63  ;;  %v5070_v4 = vadd.f32 %v5069_v43, %v9559_v0  ;;  %v4910_v63 = vadd.f32 %v9580_v28, %v9578_v16  ;;  %v4913_v43 = vadd.f32 %v9591_v17, %v9589_v22 }
 0x6c3   : > { %v4443_v16 = vadd.f32 %v9583_v23, %v9451_v25  ;;  %v4915_v28 = vadd.f32 %v9604_v47, %v9602_v51  ;;  %v4446_v22 = vadd.f32 %v9596_v49, %v9455_v53  ;;  %v4448_v23 = vadd.f32 %v9606_v20, %v9460_v2 }
 0x6c4   : > { %v5140_v33 = vadd.f32 %v5139_v37, %v5109_v36  ;;  %v5071_v35 = vadd.f32 %v5070_v4, %v9563_v56  ;;  %v5113_v36 = vmul.f32 %v9576_v55, %v9576_v55  ;;  %v4999_v4 = vadd.f32 %v4998_v27, %v4910_v63  ;;  %v4835_v51 = vpop.f32.mrf.mxu3 }
 0x6c5   : > { %v4918_v27 = vadd.f32 %v4917_v14, %v9622_v18  ;;  %v5004_v25 = vadd.f32 %v5003_v54, %v4915_v28  ;;  %v4920_v53 = vadd.f32 %v4919_v60, %v4830_v57  ;;  %v4451_v14 = vadd.f32 %v9627_v7, %v9464_v30 }
 0x6c6   : > { %v5141_v12 = vadd.f32 %v5140_v33, %v5110_v41  ;;  %v5072_v39 = vadd.f32 %v5071_v35, %v9568_v15  ;;  %v5114_v41 = vmul.f32 %v9586_v50, %v9586_v50  ;;  %v5002_v35 = vadd.f32 %v5001_v32, %v4913_v43  ;;  %v4457_v54 = vpop.f32.mrf.mxu2 }
 0x6c7   : > { %v5116_v32 = vmul.f32 %v9600_v9, %v9600_v9  ;;  %v9696_v43 = vadd.f32 %v5004_v25, %v4448_v23  ;;  %v4453_v60 = vadd.f32 %v4452_v44, %v9469_v38 }
 0x6c8   : > { %v5142_v48 = vadd.f32 %v5141_v12, %v5111_v13  ;;  %v5073_v37 = vadd.f32 %v5072_v39, %v9572_v45  ;;  %v9689_v63 = vadd.f32 %v5002_v35, %v4446_v22  ;;  %v4923_v39 = vadd.f32 %v4922_v21, %v4833_v61 }
 0x6c9   : > { %v5006_v46 = vpop.f32.mrf.mxu1  ;;  %v4456_v61 = vadd.f32 %v4455_v5, %v9473_v62 }
 0x6ca   : > { %v5143_v56 = vadd.f32 %v5142_v48, %v5112_v6  ;;  %v5074_v13 = vadd.f32 %v5073_v37, %v9576_v55  ;;  %v5115_v48 = vmul.f32 %v9594_v10, %v9594_v10  ;;  %v9682_v6 = vadd.f32 %v4999_v4, %v4443_v16 }
 0x6cb   : > { %v5007_v18 = vadd.f32 %v5006_v46, %v4918_v27  ;;  %v5118_v30 = vmul.f32 %v9689_v63, %v9689_v63 }
 0x6cc   : > { %v5144_v17 = vadd.f32 %v5143_v56, %v5113_v36  ;;  %v5075_v12 = vadd.f32 %v5074_v13, %v9586_v50  ;;  %v4924_v56 = vpop.f32.mrf.mxu0  ;;  %v5117_v20 = vmul.f32 %v9682_v6, %v9682_v6  ;;  %v4838_v22 = vpop.f32.mrf.mxu3 }
 0x6cd   : > { %v9702_v21 = vadd.f32 %v5007_v18, %v4451_v14 }
 0x6ce   : > { %v5145_v47 = vadd.f32 %v5144_v17, %v5114_v41  ;;  %v5076_v49 = vadd.f32 %v5075_v12, %v9594_v10  ;;  %v4925_v17 = vadd.f32 %v4924_v56, %v4835_v51  ;;  %v4458_v12 = vadd.f32 %v4457_v54, %v9478_v29  ;;  %v4460_v25 = vpop.f32.mrf.mxu2 }
 0x6cf   : > { %v5120_v13 = vmul.f32 %v9702_v21, %v9702_v21 }
 0x6d0   : > { %v5146_v36 = vadd.f32 %v5145_v47, %v5115_v48  ;;  %v5077_v2 = vadd.f32 %v5076_v49, %v9600_v9 }
 0x6d1   : > { %v5008_v33 = vpop.f32.mrf.mxu1 }
 0x6d2   : > { %v5009_v57 = vadd.f32 %v5008_v33, %v4920_v53  ;;  %v5147_v37 = vadd.f32 %v5146_v36, %v5116_v32  ;;  %v5078_v46 = vadd.f32 %v5077_v2, %v9682_v6  ;;  %v5119_v33 = vmul.f32 %v9696_v43, %v9696_v43 }
 0x6d4   : > { %v5148_v41 = vadd.f32 %v5147_v37, %v5117_v20  ;;  %v5079_v16 = vadd.f32 %v5078_v46, %v9689_v63  ;;  %v9708_v28 = vadd.f32 %v5009_v57, %v4453_v60  ;;  %v4927_v48 = vpop.f32.mrf.mxu0  ;;  %v4840_v2 = vpop.f32.mrf.mxu3  ;;  %v4461_v57 = vadd.f32 %v4460_v25, %v9482_v8 }
 0x6d5   : > { %v4928_v54 = vadd.f32 %v4927_v48, %v4838_v22 }
 0x6d6   : > { %v5149_v38 = vadd.f32 %v5148_v41, %v5118_v30  ;;  %v5080_v44 = vadd.f32 %v5079_v16, %v9696_v43  ;;  %v5121_v27 = vmul.f32 %v9708_v28, %v9708_v28 }
 0x6d8   : > { %v5150_v62 = vadd.f32 %v5149_v38, %v5119_v33  ;;  %v5081_v5 = vadd.f32 %v5080_v44, %v9702_v21 }
 0x6d9   : > { %v5011_v4 = vpop.f32.mrf.mxu1 }
 0x6da   : > { %v5012_v7 = vadd.f32 %v5011_v4, %v4923_v39  ;;  %v5151_v47 = vadd.f32 %v5150_v62, %v5120_v13  ;;  %v5082_v32 = vadd.f32 %v5081_v5, %v9708_v28  ;;  %v4462_v4 = vpop.f32.mrf.mxu2 }
 0x6db   : > { %v4463_v33 = vadd.f32 %v4462_v4, %v9487_v59 }
 0x6dc   : > { %v9713_v35 = vadd.f32 %v5012_v7, %v4456_v61  ;;  %v5152_v18 = vadd.f32 %v5151_v47, %v5121_v27  ;;  %v4929_v37 = vpop.f32.mrf.mxu0  ;;  %v4843_v44 = vpop.f32.mrf.mxu3 }
 0x6dd   : > { %v4930_v61 = vadd.f32 %v4929_v37, %v4840_v2 }
 0x6de   : > { %v5122_v53 = vmul.f32 %v9713_v35, %v9713_v35  ;;  %v5083_v51 = vadd.f32 %v5082_v32, %v9713_v35 }
 0x6e0   : > { %v5153_v14 = vadd.f32 %v5152_v18, %v5122_v53 }
 0x6e1   : > { %v5013_v23 = vpop.f32.mrf.mxu1 }
 0x6e2   : > { %v5014_v49 = vadd.f32 %v5013_v23, %v4925_v17  ;;  %v4465_v22 = vpop.f32.mrf.mxu2 }
 0x6e4   : > { %v9723_v56 = vadd.f32 %v5014_v49, %v4458_v12  ;;  %v4932_v8 = vpop.f32.mrf.mxu0  ;;  %v4466_v12 = vadd.f32 %v4465_v22, %v9491_v1  ;;  %v4845_v59 = vpop.f32.mrf.mxu3 }
 0x6e5   : > { %v4933_v62 = vadd.f32 %v4932_v8, %v4843_v44 }
 0x6e6   : > { %v5084_v39 = vadd.f32 %v5083_v51, %v9723_v56  ;;  %v5123_v29 = vmul.f32 %v9723_v56, %v9723_v56 }
 0x6e8   : > { %v5154_v36 = vadd.f32 %v5153_v14, %v5123_v29 }
 0x6e9   : > { %v5016_v20 = vpop.f32.mrf.mxu1 }
 0x6ea   : > { %v5017_v60 = vadd.f32 %v5016_v20, %v4928_v54  ;;  %v4467_v49 = vpop.f32.mrf.mxu2 }
 0x6ec   : > { %v9729_v46 = vadd.f32 %v5017_v60, %v4461_v57  ;;  %v4934_v53 = vpop.f32.mrf.mxu0 }
 0x6ed   : > { %v4935_v18 = vadd.f32 %v4934_v53, %v4845_v59 }
 0x6ee   : > { %v5085_v30 = vadd.f32 %v5084_v39, %v9729_v46  ;;  %v5124_v7 = vmul.f32 %v9729_v46, %v9729_v46  ;;  %v4468_v39 = vadd.f32 %v4467_v49, %v9496_v26 }
 0x6f0   : > { %v5155_v41 = vadd.f32 %v5154_v36, %v5124_v7 }
 0x6f1   : > { %v5018_v16 = vpop.f32.mrf.mxu1 }
 0x6f2   : > { %v5019_v38 = vadd.f32 %v5018_v16, %v4930_v61 }
 0x6f4   : > { %v9735_v13 = vadd.f32 %v5019_v38, %v4463_v33 }
 0x6f6   : > { %v5086_v17 = vadd.f32 %v5085_v30, %v9735_v13  ;;  %v5125_v48 = vmul.f32 %v9735_v13, %v9735_v13 }
 0x6f8   : > { %v5156_v5 = vadd.f32 %v5155_v41, %v5125_v48 }
 0x6f9   : > { %v5021_v27 = vpop.f32.mrf.mxu1 }
 0x6fa   : > { %v5022_v25 = vadd.f32 %v5021_v27, %v4933_v62 }
 0x6fc   : > { %v9741_v23 = vadd.f32 %v5022_v25, %v4466_v12 }
 0x6fe   : > { %v5087_v47 = vadd.f32 %v5086_v17, %v9741_v23  ;;  %v5126_v32 = vmul.f32 %v9741_v23, %v9741_v23 }
 0x700   : > { %v5157_v51 = vadd.f32 %v5156_v5, %v5126_v32 }
 0x701   : > { %v5023_v14 = vpop.f32.mrf.mxu1 }
 0x702   : > { %v5024_v29 = vadd.f32 %v5023_v14, %v4935_v18 }
 0x704   : > { %v9747_v54 = vadd.f32 %v5024_v29, %v4468_v39 }
 0x706   : > { %v5088_v1 = vadd.f32 %v5087_v47, %v9747_v54  ;;  %v5127_v36 = vmul.f32 %v9747_v54, %v9747_v54 }
 0x708   : > { %v5089_v2 = vrot.slane %v5088_v1, 4  ;;  %v5158_v20 = vadd.f32 %v5157_v51, %v5127_v36 }
 0x70a   : > { %v5090_v57 = vadd.f32 %v5089_v2, %v5088_v1  ;;  %v5159_v60 = vrot.slane %v5158_v20, 4 }
 0x70c   : > { %v5091_v37 = vrot.slane %v5090_v57, 2  ;;  %v5160_v4 = vadd.f32 %v5159_v60, %v5158_v20  ;;  %v10787_v20 = vld [vmem:[#allocation78_spill] sm:$0xff] }
 0x70e   : > { %v5092_v30 = vadd.f32 %v5091_v37, %v5090_v57  ;;  %v5161_v7 = vrot.slane %v5160_v4, 2 }
 0x710   : > { %v5093_v61 = vrot.slane %v5092_v30, 1  ;;  %v5162_v41 = vadd.f32 %v5161_v7, %v5160_v4 }
 0x712   : > { %v5094_v16 = vadd.f32 %v5093_v61, %v5092_v30  ;;  %v5163_v26 = vrot.slane %v5162_v41, 1 }
 0x714   : > { %v9752_v33 = vmul.f32 0.00390625, %v5094_v16  ;;  %v5164_v38 = vadd.f32 %v5163_v26, %v5162_v41 }
 0x716   : > { %v5165_v44 = vmul.f32 0.00390625, %v5164_v38  ;;  %v5166_v8 = vmul.f32 %v9752_v33, %v9752_v33  ;;  %v5199_v22 = vsub.f32 %v9747_v54, %v9752_v33  ;;  %v5194_v62 = vsub.f32 %v9713_v35, %v9752_v33 }
 0x717   : > { %v5195_v5 = vsub.f32 %v9723_v56, %v9752_v33  ;;  %v5196_v27 = vsub.f32 %v9729_v46, %v9752_v33  ;;  %v5197_v12 = vsub.f32 %v9735_v13, %v9752_v33  ;;  %v5198_v25 = vsub.f32 %v9741_v23, %v9752_v33  ;;  %v6255_v56 = vld [vmem:[%s6578_s30] sm:$0xff]  ;;  %v6258_v13 = vld [vmem:[%s6578_s30 + $0x18] sm:$0xff]  ;;  %v6260_v23 = vld [vmem:[%s6578_s30 + $0x28] sm:$0xff] }
 0x718   : > { %v5167_v17 = vsub.f32 %v5165_v44, %v5166_v8  ;;  %v5168_v53 = vsub.f32 %v9500_v40, %v9752_v33  ;;  %v5169_v49 = vsub.f32 %v9505_v42, %v9752_v33  ;;  %v5170_v18 = vsub.f32 %v9509_v24, %v9752_v33  ;;  %v10784_v24 = vld [vmem:[#allocation50_spill] sm:$0xff] }
 0x719   : > { %v5171_v51 = vsub.f32 %v9514_v34, %v9752_v33  ;;  %v5172_v39 = vsub.f32 %v9518_v58, %v9752_v33  ;;  %v5173_v29 = vsub.f32 %v9523_v19, %v9752_v33  ;;  %v5174_v54 = vsub.f32 %v9527_v3, %v9752_v33  ;;  %v10785_v34 = vld [vmem:[#allocation65_spill] sm:$0xff]  ;;  %v10786_v19 = vld [vmem:[#allocation75_spill] sm:$0xff] }
 0x71a   : > { %v5200_v48 = vadd.f32 1e-05, %v5167_v17  ;;  %v5175_v40 = vsub.f32 %v9532_v11, %v9752_v33  ;;  %v5176_v42 = vsub.f32 %v9536_v31, %v9752_v33  ;;  %v5177_v1 = vsub.f32 %v10784_v24, %v9752_v33 }
 0x71b   : > { %v5178_v36 = vsub.f32 %v10785_v34, %v9752_v33  ;;  %v5179_v58 = vsub.f32 %v9550_v52, %v9752_v33  ;;  %v5180_v3 = vsub.f32 %v10786_v19, %v9752_v33  ;;  %v5181_v11 = vsub.f32 %v9559_v0, %v9752_v33 }
 0x71c   : > { %6246 = vrsqrt.f32 %v5200_v48  ;;  %v5182_v31 = vsub.f32 %v10787_v20, %v9752_v33  ;;  %v5183_v57 = vsub.f32 %v9568_v15, %v9752_v33  ;;  %v5184_v60 = vsub.f32 %v9572_v45, %v9752_v33 }
 0x71d   : > { %vm5207_vm2 = vweird.f32 %v5200_v48  ;;  %v5185_v52 = vsub.f32 %v9576_v55, %v9752_v33  ;;  %v5186_v4 = vsub.f32 %v9586_v50, %v9752_v33  ;;  %v5187_v0 = vsub.f32 %v9594_v10, %v9752_v33 }
 0x71e   : > { %v5188_v30 = vsub.f32 %v9600_v9, %v9752_v33  ;;  %v5189_v15 = vsub.f32 %v9682_v6, %v9752_v33  ;;  %v5190_v45 = vsub.f32 %v9689_v63, %v9752_v33  ;;  %v5191_v55 = vsub.f32 %v9696_v43, %v9752_v33  ;;  %v6254_v63 = vld [vmem:[%s6578_s30 + $0xf8] sm:$0xff] }
 0x71f   : > { %v5192_v50 = vsub.f32 %v9702_v21, %v9752_v33  ;;  %v5193_v10 = vsub.f32 %v9708_v28, %v9752_v33 }
 0x722   : > { %v6247_v59 = vpop.eup %6246 }
 0x723   : > { %v5202_v47 = vmul.f32 %v6247_v59, %v5200_v48  ;;  %vm5208_vm4 = vweird.f32 %v6247_v59 }
 0x724   : > { %vm5209_vm6 = vmor %vm5207_vm2, %vm5208_vm4 }
 0x725   : > { %v5203_v32 = vmul.f32 %v6247_v59, %v5202_v47 }
 0x727   : > { %v5204_v14 = vmul.f32 0.5, %v5203_v32 }
 0x729   : > { %v5205_v2 = vsub.f32 1.5, %v5204_v14 }
 0x72b   : > { %v5206_v37 = vmul.f32 %v6247_v59, %v5205_v2 }
 0x72d   : > { %v5210_v7 = vsel %vm5209_vm6, %v6247_v59, %v5206_v37 }
 0x72e   : > { %v5242_v61 = vmul.f32 %v5210_v7, %v5199_v22  ;;  %v5211_v41 = vmul.f32 %v5210_v7, %v5168_v53  ;;  %v5212_v9 = vmul.f32 %v5210_v7, %v5169_v49  ;;  %v5213_v16 = vmul.f32 %v5210_v7, %v5170_v18 }
 0x72f   : > { %v5214_v26 = vmul.f32 %v5210_v7, %v5171_v51  ;;  %v5215_v6 = vmul.f32 %v5210_v7, %v5172_v39  ;;  %v5216_v38 = vmul.f32 %v5210_v7, %v5173_v29  ;;  %v5217_v44 = vmul.f32 %v5210_v7, %v5174_v54 }
 0x730   : > { %v5274_v8 = vadd.f32 %v6254_v63, %v5242_v61  ;;  %v5218_v17 = vmul.f32 %v5210_v7, %v5175_v40  ;;  %v5219_v48 = vmul.f32 %v5210_v7, %v5176_v42  ;;  %v5220_v43 = vmul.f32 %v5210_v7, %v5177_v1  ;;  %v6270_v61 = vld [vmem:[%s6578_s30 + $0x78] sm:$0xff] }
 0x731   : > { %v5221_v59 = vmul.f32 %v5210_v7, %v5178_v36  ;;  %v5222_v47 = vmul.f32 %v5210_v7, %v5179_v58  ;;  %v5223_v21 = vmul.f32 %v5210_v7, %v5180_v3  ;;  %v5224_v32 = vmul.f32 %v5210_v7, %v5181_v11  ;;  %v6259_v58 = vld [vmem:[%s6578_s30 + $0x20] sm:$0xff]  ;;  %v6262_v11 = vld [vmem:[%s6578_s30 + $0x38] sm:$0xff] }
 0x732   : > { %5306 = vst [vmem:[%s9823_s18 + $0xf8] sm:$0xff] %v5274_v8  ;;  %v5225_v28 = vmul.f32 %v5210_v7, %v5182_v31  ;;  %v5226_v22 = vmul.f32 %v5210_v7, %v5183_v57  ;;  %v5227_v53 = vmul.f32 %v5210_v7, %v5184_v60  ;;  %v5228_v49 = vmul.f32 %v5210_v7, %v5185_v52  ;;  %v6263_v31 = vld [vmem:[%s6578_s30 + $0x40] sm:$0xff]  ;;  %v6264_v60 = vld [vmem:[%s6578_s30 + $0x48] sm:$0xff]  ;;  %v6265_v52 = vld [vmem:[%s6578_s30 + $0x50] sm:$0xff] }
 0x733   : > { %v9826_v18 = vmul.f32 %v5210_v7, %v5186_v4  ;;  %v9828_v51 = vmul.f32 %v5210_v7, %v5187_v0  ;;  %v9830_v14 = vmul.f32 %v5210_v7, %v5188_v30  ;;  %v9832_v39 = vmul.f32 %v5210_v7, %v5189_v15  ;;  %v6266_v0 = vld [vmem:[%s6578_s30 + $0x58] sm:$0xff]  ;;  %v6267_v15 = vld [vmem:[%s6578_s30 + $0x60] sm:$0xff] }
 0x734   : > { %v9834_v29 = vmul.f32 %v5210_v7, %v5190_v45  ;;  %v9836_v54 = vmul.f32 %v5210_v7, %v5191_v55  ;;  %v9838_v40 = vmul.f32 %v5210_v7, %v5192_v50  ;;  %v9840_v42 = vmul.f32 %v5210_v7, %v5193_v10  ;;  %v6269_v50 = vld [vmem:[%s6578_s30 + $0x70] sm:$0xff]  ;;  %v6274_v63 = vld [vmem:[%s6578_s30 + $0x98] sm:$0xff] }
 0x735   : > { %v9845_v24 = vmul.f32 %v5210_v7, %v5194_v62  ;;  %v9850_v1 = vmul.f32 %v5210_v7, %v5195_v5  ;;  %v9855_v34 = vmul.f32 %v5210_v7, %v5196_v27  ;;  %v9860_v36 = vmul.f32 %v5210_v7, %v5197_v12  ;;  %v6256_v5 = vld [vmem:[%s6578_s30 + $0x8] sm:$0xff]  ;;  %v6257_v27 = vld [vmem:[%s6578_s30 + $0x10] sm:$0xff] }
 0x736   : > { %v9865_v35 = vmul.f32 %v5210_v7, %v5198_v25  ;;  %v5243_v62 = vadd.f32 %v6255_v56, %v5211_v41  ;;  %v5244_v46 = vadd.f32 %v6256_v5, %v5212_v9  ;;  %v5245_v2 = vadd.f32 %v6257_v27, %v5213_v16  ;;  %v6261_v25 = vld [vmem:[%s6578_s30 + $0x30] sm:$0xff]  ;;  %v6268_v7 = vld [vmem:[%s6578_s30 + $0x68] sm:$0xff]  ;;  %v6271_v9 = vld [vmem:[%s6578_s30 + $0x80] sm:$0xff] }
 0x737   : > { %v5246_v12 = vadd.f32 %v6258_v13, %v5214_v26  ;;  %v5247_v19 = vadd.f32 %v6259_v58, %v5215_v6  ;;  %v5248_v33 = vadd.f32 %v6260_v23, %v5216_v38  ;;  %v5249_v3 = vadd.f32 %v6261_v25, %v5217_v44  ;;  %v6272_v26 = vld [vmem:[%s6578_s30 + $0x88] sm:$0xff]  ;;  %v6273_v38 = vld [vmem:[%s6578_s30 + $0x90] sm:$0xff] }
 0x738   : > { %5275 = vst [vmem:[%s9823_s18] sm:$0xff] %v5243_v62  ;;  %v5250_v20 = vadd.f32 %v6262_v11, %v5218_v17  ;;  %v5251_v57 = vadd.f32 %v6263_v31, %v5219_v48  ;;  %v5252_v37 = vadd.f32 %v6264_v60, %v5220_v43  ;;  %v5253_v4 = vadd.f32 %v6265_v52, %v5221_v59  ;;  %v6275_v17 = vld [vmem:[%s6578_s30 + $0xa0] sm:$0xff]  ;;  %v6276_v43 = vld [vmem:[%s6578_s30 + $0xa8] sm:$0xff] }
 0x739   : > { %5276 = vst [vmem:[%s9823_s18 + $0x8] sm:$0xff] %v5244_v46  ;;  %v5254_v30 = vadd.f32 %v6266_v0, %v5222_v47  ;;  %v5255_v45 = vadd.f32 %v6267_v15, %v5223_v21  ;;  %v5256_v55 = vadd.f32 %v6268_v7, %v5224_v32  ;;  %v5257_v10 = vadd.f32 %v6269_v50, %v5225_v28  ;;  %v6277_v47 = vld [vmem:[%s6578_s30 + $0xb0] sm:$0xff]  ;;  %v6278_v32 = vld [vmem:[%s6578_s30 + $0xb8] sm:$0xff] }
 0x73a   : > { %5277 = vst [vmem:[%s9823_s18 + $0x10] sm:$0xff] %v5245_v2  ;;  %v5258_v41 = vadd.f32 %v6270_v61, %v5226_v22  ;;  %v5259_v16 = vadd.f32 %v6271_v9, %v5227_v53  ;;  %v5260_v6 = vadd.f32 %v6272_v26, %v5228_v49  ;;  %v5261_v44 = vadd.f32 %v6273_v38, %v9826_v18  ;;  %v6279_v22 = vld [vmem:[%s6578_s30 + $0xc0] sm:$0xff]  ;;  %v6280_v49 = vld [vmem:[%s6578_s30 + $0xc8] sm:$0xff] }
 0x73b   : > { %5278 = vst [vmem:[%s9823_s18 + $0x18] sm:$0xff] %v5246_v12  ;;  %v5262_v8 = vadd.f32 %v6274_v63, %v9828_v51  ;;  %v5263_v48 = vadd.f32 %v6275_v17, %v9830_v14  ;;  %v5264_v59 = vadd.f32 %v6276_v43, %v9832_v39  ;;  %v5265_v21 = vadd.f32 %v6277_v47, %v9834_v29  ;;  %v6281_v51 = vld [vmem:[%s6578_s30 + $0xd0] sm:$0xff]  ;;  %v6282_v39 = vld [vmem:[%s6578_s30 + $0xd8] sm:$0xff] }
 0x73c   : > { %5279 = vst [vmem:[%s9823_s18 + $0x20] sm:$0xff] %v5247_v19  ;;  %v5266_v28 = vadd.f32 %v6278_v32, %v9836_v54  ;;  %v5267_v53 = vadd.f32 %v6279_v22, %v9838_v40  ;;  %v5268_v18 = vadd.f32 %v6280_v49, %v9840_v42  ;;  %v5269_v14 = vadd.f32 %v6281_v51, %v9845_v24  ;;  %v6283_v54 = vld [vmem:[%s6578_s30 + $0xe0] sm:$0xff]  ;;  %v6284_v42 = vld [vmem:[%s6578_s30 + $0xe8] sm:$0xff]  ;;  %v6285_v24 = vld [vmem:[%s6578_s30 + $0xf0] sm:$0xff] }
 0x73d   : > { %5280 = vst [vmem:[%s9823_s18 + $0x28] sm:$0xff] %v5248_v33  ;;  %v5270_v29 = vadd.f32 %v6282_v39, %v9850_v1  ;;  %v5271_v40 = vadd.f32 %v6283_v54, %v9855_v34  ;;  %v5272_v56 = vadd.f32 %v6284_v42, %v9860_v36  ;;  %v5273_v62 = vadd.f32 %v6285_v24, %v9865_v35 }
 0x73e   : > { %5281 = vst [vmem:[%s9823_s18 + $0x30] sm:$0xff] %v5249_v3 }
 0x73f   : > { %5282 = vst [vmem:[%s9823_s18 + $0x38] sm:$0xff] %v5250_v20 }
 0x740   : > { %5283 = vst [vmem:[%s9823_s18 + $0x40] sm:$0xff] %v5251_v57 }
 0x741   : > { %5284 = vst [vmem:[%s9823_s18 + $0x48] sm:$0xff] %v5252_v37 }
 0x742   : > { %5285 = vst [vmem:[%s9823_s18 + $0x50] sm:$0xff] %v5253_v4 }
 0x743   : > { %5286 = vst [vmem:[%s9823_s18 + $0x58] sm:$0xff] %v5254_v30 }
 0x744   : > { %5287 = vst [vmem:[%s9823_s18 + $0x60] sm:$0xff] %v5255_v45 }
 0x745   : > { %5288 = vst [vmem:[%s9823_s18 + $0x68] sm:$0xff] %v5256_v55 }
 0x746   : > { %5289 = vst [vmem:[%s9823_s18 + $0x70] sm:$0xff] %v5257_v10 }
 0x747   : > { %5290 = vst [vmem:[%s9823_s18 + $0x78] sm:$0xff] %v5258_v41 }
 0x748   : > { %5291 = vst [vmem:[%s9823_s18 + $0x80] sm:$0xff] %v5259_v16 }
 0x749   : > { %5292 = vst [vmem:[%s9823_s18 + $0x88] sm:$0xff] %v5260_v6 }
 0x74a   : > { %5293 = vst [vmem:[%s9823_s18 + $0x90] sm:$0xff] %v5261_v44 }
 0x74b   : > { %5294 = vst [vmem:[%s9823_s18 + $0x98] sm:$0xff] %v5262_v8 }
 0x74c   : > { %5295 = vst [vmem:[%s9823_s18 + $0xa0] sm:$0xff] %v5263_v48 }
 0x74d   : > { %5296 = vst [vmem:[%s9823_s18 + $0xa8] sm:$0xff] %v5264_v59 }
 0x74e   : > { %5297 = vst [vmem:[%s9823_s18 + $0xb0] sm:$0xff] %v5265_v21 }
 0x74f   : > { %5298 = vst [vmem:[%s9823_s18 + $0xb8] sm:$0xff] %v5266_v28 }
 0x750   : > { %5299 = vst [vmem:[%s9823_s18 + $0xc0] sm:$0xff] %v5267_v53 }
 0x751   : > { %5300 = vst [vmem:[%s9823_s18 + $0xc8] sm:$0xff] %v5268_v18 }
 0x752   : > { %5301 = vst [vmem:[%s9823_s18 + $0xd0] sm:$0xff] %v5269_v14 }
 0x753   : > { %5302 = vst [vmem:[%s9823_s18 + $0xd8] sm:$0xff] %v5270_v29 }
 0x754   : > { %5303 = vst [vmem:[%s9823_s18 + $0xe0] sm:$0xff] %v5271_v40 }
 0x755   : > { %5304 = vst [vmem:[%s9823_s18 + $0xe8] sm:$0xff] %v5272_v56 }
 0x756   : > { %5305 = vst [vmem:[%s9823_s18 + $0xf0] sm:$0xff] %v5273_v62 }
 0x757   : > { %6403 = shalt.err (!%p6400_p10)
}
 0x758   : > { %s6454_s22 = smov 128   ;;  %s6455_s24 = smov 8  }
 0x759   : > { %6181 = dma.vmem_to_hbm [thread:$0]  (%p6542_p3), %s5321_s28, 4096, %s5323_s29, %s5308_s4, %s6454_s22, %s6454_s22, %s6455_s24  }
 0x75a PF: > { %s5337_s25 = sand.u32 1, %s6434_s12   ;;  %p10788_p12 = scmp.ge.s32.totalorder %s6446_s15, 2 }
 0x75b   : > { %s5338_s30 = scalar_lea.sflag [#allocation4], %s5337_s25 }
 0x75c   : > { %p6195_p13 = pnand %p10788_p12, %p6511_p6 }
 0x75e   : > { %p6196_p0 = pneg %p6195_p13 }
 0x760   : > { %6429 = dma.done.wait (%p6196_p0), %s5338_s30, 4096  }
 0x761   : > { %6431 = vsyncadd (%p6196_p0), %s5338_s30, 4294963200  ;;  %p17_p5 = scmp.ge.s32.totalorder %s6532_s6, 4   ;;  %s10789_s12 = smov %s6438_s13 }
 0x762   : > { %s10790_s13 = smov %s6442_s14  ;;  %s10791_s14 = smov %s6548_s10 }
 0x763   : > { %s10792_s15 = smov %s6532_s6  ;;  %19 = sbr.rel (!%p17_p5) target bundleno = 6 (0x6), region = 89 }
 0x768   :  { %5344 = vsyncpa [#allocation3], 1 }
 0x769   :  { %5346 = vsyncpa [#allocation3 + $0x1], 1 }
 0x76a   :  { %5347 = vsyncpa [#allocation6], 1 }
 0x76b   :  { %5348 = vsyncpa [#allocation4], 1 }
 0x76c   :  { %5350 = vsyncpa [#allocation4 + $0x1], 1 }

</bundles_post_ra>
